<compile_context>
chip_gen: v6e
topology: v6e:2x2x1
jax: 0.10.0
libtpu: 0.0.40
codegen_flags: <defaults>
</compile_context>

<pallas_src>
import functools
import math

import jax
import jax.numpy as jnp
from jax import lax
from jax.experimental import pallas as pl
from jax.experimental.pallas import tpu as pltpu

_MIB = 1024 * 1024
NEG_INF = -1e30


def _query_phys_vmem():
    try:
        info = pltpu.get_tpu_info()
        return int(getattr(info, "vmem_capacity_bytes", 64 * _MIB))
    except Exception:
        return 64 * _MIB


_PHYS_VMEM = _query_phys_vmem()
# Leave headroom for Mosaic internal scratch / semaphores / pipeline buffers
# (critical on v7x where the whole TensorCore only has 64 MiB).
VMEM_LIMIT = int(min(_PHYS_VMEM * 0.85, 112 * _MIB))
# Weight-streaming kernels need tm big enough to hide the weight DMA behind the
# MXU (v6e needs >= ~512); on small-VMEM parts (v7x) back off to 384.
DEFAULT_TM = 512 if _PHYS_VMEM >= 96 * _MIB else 384


def _tile(dim, target, align):
    """Largest `align`-multiple <= target that evenly divides `dim`, else full dim."""
    if dim <= target:
        return dim
    t = (target // align) * align
    while t >= align:
        if dim % t == 0:
            return t
        t -= align
    return dim


def _cost(flops, bytes_accessed, transcendentals=0):
    return pl.CostEstimate(flops=int(flops), transcendentals=int(transcendentals),
                           bytes_accessed=int(bytes_accessed))


def _rms(x, scale, eps=1e-8):
    # Matches the PyTorch RMSNorm: rms = ||x|| / sqrt(d); out = scale * x / (rms + eps)
    # (eps added OUTSIDE the sqrt).  Exact division for parity with the reference.
    d = x.shape[-1]
    norm = jnp.sqrt(jnp.sum(x * x, axis=-1, keepdims=True))
    rms = norm * (d ** -0.5)
    return scale * (x * (1.0 / (rms + eps)))


# ------------------ fused RMSNorm + Linear (qkv / vocab head) -------------------

def _rms_linear_kernel(*refs, has_bias):
    if has_bias:
        x_ref, scale_ref, w_ref, b_ref, o_ref = refs
    else:
        x_ref, scale_ref, w_ref, o_ref = refs
        b_ref = None

    # RMSNorm recomputed per (i, j) tile: negligible vs. the matmul, and keeps both
    # grid axes "parallel" (megacore can split the n axis of the big vocab head).
    x = x_ref[...].astype(jnp.float32)
    xn = _rms(x, scale_ref[...]).astype(jnp.bfloat16)
    acc = jnp.dot(xn, w_ref[...], preferred_element_type=jnp.float32)
    if has_bias:
        acc = acc + b_ref[...]
    o_ref[...] = acc.astype(o_ref.dtype)


def rms_linear(x, scale, w, bias=None, *, out_dtype=None, tm=None, tn=512):
    m, d = x.shape
    n = w.shape[1]
    tm = _tile(m, DEFAULT_TM if tm is None else tm, 16)
    tn = _tile(n, tn, 128)
    if out_dtype is None:
        out_dtype = x.dtype
    has_bias = bias is not None

    in_specs = [
        pl.BlockSpec((tm, d), lambda i, j: (i, 0)),
        pl.BlockSpec((1, d), lambda i, j: (0, 0)),
        pl.BlockSpec((d, tn), lambda i, j: (0, j)),
    ]
    args = [x, scale, w]
    if has_bias:
        in_specs.append(pl.BlockSpec((1, tn), lambda i, j: (0, j)))
        args.append(bias)

    n_mt = m // tm
    out_bytes = jnp.dtype(out_dtype).itemsize
    return pl.pallas_call(
        functools.partial(_rms_linear_kernel, has_bias=has_bias),
        out_shape=jax.ShapeDtypeStruct((m, n), out_dtype),
        grid_spec=pltpu.PrefetchScalarGridSpec(
            num_scalar_prefetch=0,
            grid=(n_mt, n // tn),
            in_specs=in_specs,
            out_specs=pl.BlockSpec((tm, tn), lambda i, j: (i, j)),
        ),
        compiler_params=pltpu.CompilerParams(
            dimension_semantics=("parallel", "parallel"),
            vmem_limit_bytes=VMEM_LIMIT),
        # Weights are re-streamed once per m-tile; x block is resident per m-tile.
        cost_estimate=_cost(2 * m * n * d + 6 * m * d * (n // tn),
                            2 * m * d + 2 * n_mt * d * n + out_bytes * m * n,
                            transcendentals=2 * m * (n // tn)),
    )(*args)


# ---------- tiled matmul with K-accumulation (+ fused bias / residual) ----------

def _matmul_kernel(*refs, has_bias, has_res):
    x_ref, w_ref = refs[0], refs[1]
    i = 2
    b_ref = r_ref = None
    if has_bias:
        b_ref = refs[i]; i += 1
    if has_res:
        r_ref = refs[i]; i += 1
    o_ref, acc_ref = refs[i], refs[i + 1]

    @pl.when(pl.program_id(2) == 0)
    def _():
        acc_ref[...] = jnp.zeros_like(acc_ref)

    acc_ref[...] += jnp.dot(x_ref[...].astype(jnp.bfloat16), w_ref[...],
                            preferred_element_type=jnp.float32)

    @pl.when(pl.program_id(2) == pl.num_programs(2) - 1)
    def _():
        out = acc_ref[...]
        if has_bias:
            out = out + b_ref[...]
        if has_res:
            out = out + r_ref[...].astype(jnp.float32)
        o_ref[...] = out.astype(o_ref.dtype)


def matmul(x, w, bias=None, residual=None, *, tm=None, tn=512, tk=512):
    m, k = x.shape
    n = w.shape[1]
    tm = _tile(m, DEFAULT_TM if tm is None else tm, 16)
    tn = _tile(n, tn, 128)
    tk = _tile(k, tk, 128)
    has_bias = bias is not None
    has_res = residual is not None

    in_specs = [
        pl.BlockSpec((tm, tk), lambda i, j, kk: (i, kk)),
        pl.BlockSpec((tk, tn), lambda i, j, kk: (kk, j)),
    ]
    args = [x, w]
    if has_bias:
        in_specs.append(pl.BlockSpec((1, tn), lambda i, j, kk: (0, j)))
        args.append(bias)
    if has_res:
        in_specs.append(pl.BlockSpec((tm, tn), lambda i, j, kk: (i, j)))
        args.append(residual)

    return pl.pallas_call(
        functools.partial(_matmul_kernel, has_bias=has_bias, has_res=has_res),
        out_shape=jax.ShapeDtypeStruct((m, n), x.dtype),
        grid_spec=pltpu.PrefetchScalarGridSpec(
            num_scalar_prefetch=0,
            grid=(m // tm, n // tn, k // tk),
            in_specs=in_specs,
            out_specs=pl.BlockSpec((tm, tn), lambda i, j, kk: (i, j)),
            scratch_shapes=[pltpu.VMEM((tm, tn), jnp.float32)],
        ),
        compiler_params=pltpu.CompilerParams(
            dimension_semantics=("parallel", "parallel", "arbitrary"),
            vmem_limit_bytes=VMEM_LIMIT),
        cost_estimate=_cost(2 * m * n * k,
                            2 * m * k * (n // tn) + 2 * k * n * (m // tm)
                            + 6 * m * n),
    )(*args)


# ---------------- fused RMSNorm + MLP (Linear -> GELU -> Linear) ----------------

def _mlp_kernel(x_ref, scale_ref, w1_ref, b1_ref, w2_ref, b2_ref, o_ref,
                xn_ref, acc_ref):
    f = pl.program_id(1)

    @pl.when(f == 0)
    def _():
        x = x_ref[...].astype(jnp.float32)
        xn_ref[...] = _rms(x, scale_ref[...]).astype(jnp.bfloat16)
        acc_ref[...] = jnp.zeros_like(acc_ref)

    h = jnp.dot(xn_ref[...], w1_ref[...], preferred_element_type=jnp.float32)
    h = h + b1_ref[...]
    h = 0.5 * h * (1.0 + lax.erf(h * (1.0 / math.sqrt(2.0))))   # exact (erf) GELU
    acc_ref[...] += jnp.dot(h.astype(jnp.bfloat16), w2_ref[...],
                            preferred_element_type=jnp.float32)

    @pl.when(f == pl.num_programs(1) - 1)
    def _():
        # residual add fused into the writeback
        o_ref[...] = (x_ref[...].astype(jnp.float32) + acc_ref[...]
                      + b2_ref[...]).astype(o_ref.dtype)


def mlp_block(x, scale, w1, b1, w2, b2, *, tm=None, tf=512):
    m, d = x.shape
    ff = w1.shape[1]
    tm = _tile(m, DEFAULT_TM if tm is None else tm, 16)
    tf = _tile(ff, tf, 128)

    def vmem_est(t):
        return (2 * t * d * 2                      # x blocks (double buffered, bf16)
                + 2 * d * tf * 2 + 2 * tf * d * 2  # w1 / w2 blocks
                + t * d * 2 + t * d * 4            # xn / acc scratch
                + 2 * t * d * 2                    # out blocks
                + 8 * (tf + d))                    # biases / norm scale
    # Pay for the large tm with smaller blocks when VMEM is tight (v7x: 64 MiB).
    while vmem_est(tm) > 0.7 * VMEM_LIMIT and tm >= 128 and m % (tm // 2) == 0:
        tm //= 2

    return pl.pallas_call(
        _mlp_kernel,
        out_shape=jax.ShapeDtypeStruct((m, d), x.dtype),
        grid_spec=pltpu.PrefetchScalarGridSpec(
            num_scalar_prefetch=0,
            grid=(m // tm, ff // tf),
            in_specs=[
                pl.BlockSpec((tm, d), lambda i, j: (i, 0)),
                pl.BlockSpec((1, d), lambda i, j: (0, 0)),
                pl.BlockSpec((d, tf), lambda i, j: (0, j)),
                pl.BlockSpec((1, tf), lambda i, j: (0, j)),
                pl.BlockSpec((tf, d), lambda i, j: (j, 0)),
                pl.BlockSpec((1, d), lambda i, j: (0, 0)),
            ],
            out_specs=pl.BlockSpec((tm, d), lambda i, j: (i, 0)),
            scratch_shapes=[pltpu.VMEM((tm, d), jnp.bfloat16),
                            pltpu.VMEM((tm, d), jnp.float32)],
        ),
        compiler_params=pltpu.CompilerParams(
            dimension_semantics=("parallel", "arbitrary"),
            vmem_limit_bytes=VMEM_LIMIT),
        cost_estimate=_cost(4 * m * d * ff + 8 * m * d,
                            4 * m * d + 4 * (m // tm) * d * ff,
                            transcendentals=m * ff + 2 * m),
    )(x, scale, w1, b1, w2, b2)


# --------------------- flash-style causal attention kernel ----------------------
# Reads Q/K/V straight from the packed (M, 3*D) qkv buffer (one head = one column
# block) and writes into a lane-dense (M, D) slab.  K/V for the whole (batch, head)
# are VMEM-resident; the k-loop runs inside the kernel.

def _attn_kernel(q_ref, k_ref, v_ref, o_ref, *, tk, sm_scale):
    tq, hd = q_ref.shape
    qi = pl.program_id(2)
    q_start = qi * tq
    r = tq // tk                          # static: diagonal k-blocks per q-tile

    # Fold 1/sqrt(hd) into q once (tq*hd mults) instead of scaling each (tq,tk) tile.
    q = (q_ref[...].astype(jnp.float32) * sm_scale).astype(jnp.bfloat16)

    def attend(carry, kb_start, masked):
        m_i, l_i, acc = carry
        k = k_ref[pl.ds(kb_start, tk), :]
        v = v_ref[pl.ds(kb_start, tk), :]
        s = lax.dot_general(q, k, (((1,), (1,)), ((), ())),
                            preferred_element_type=jnp.float32)
        if masked:  # only diagonal tiles build the iota / compare / select
            row = q_start + lax.broadcasted_iota(jnp.int32, (tq, tk), 0)
            col = kb_start + lax.broadcasted_iota(jnp.int32, (tq, tk), 1)
            s = jnp.where(col <= row, s, NEG_INF)
        m_new = jnp.maximum(m_i, jnp.max(s, axis=-1, keepdims=True))
        alpha = jnp.exp(m_i - m_new)
        p = jnp.exp(s - m_new)
        l_new = alpha * l_i + jnp.sum(p, axis=-1, keepdims=True)
        acc_new = alpha * acc + jnp.dot(p.astype(jnp.bfloat16), v,
                                        preferred_element_type=jnp.float32)
        return m_new, l_new, acc_new

    carry = (jnp.full((tq, 1), NEG_INF, jnp.float32),
             jnp.zeros((tq, 1), jnp.float32),
             jnp.zeros((tq, hd), jnp.float32))

    # Interior (fully unmasked) k tiles; K/V already resident in VMEM.
    n_interior = qi * r
    carry = lax.fori_loop(
        0, n_interior,
        lambda kb, c: attend(c, pl.multiple_of(kb * tk, tk), masked=False),
        carry)

    # Diagonal k tiles (static count r) with the causal mask.
    for j in range(r):
        kb_start = pl.multiple_of((n_interior + j) * tk, tk)
        carry = attend(carry, kb_start, masked=True)

    m_i, l_i, acc = carry
    o_ref[...] = (acc * (1.0 / l_i)).astype(o_ref.dtype)


def causal_attention(qkv, *, batch, seq, heads, tq=128, tk=None):
    m, d3 = qkv.shape
    d = d3 // 3
    hd = d // heads
    assert d3 == 3 * d and d == heads * hd and m == batch * seq
    assert hd % 128 == 0, "head_dim must be a multiple of 128 (lane width)"
    tq = _tile(seq, tq, 16)
    if tk is None or tq % tk != 0 or seq % tk != 0:
        tk = tq
    nq = seq // tq
    sm_scale = 1.0 / math.sqrt(hd)

    return pl.pallas_call(
        functools.partial(_attn_kernel, tk=tk, sm_scale=sm_scale),
        out_shape=jax.ShapeDtypeStruct((m, d), qkv.dtype),
        grid_spec=pltpu.PrefetchScalarGridSpec(
            num_scalar_prefetch=0,
            grid=(batch, heads, nq),
            in_specs=[
                # Q: (tq, hd) tile of the packed qkv buffer.
                pl.BlockSpec((tq, hd), lambda b, h, i: (b * nq + i, h)),
                # K / V: whole sequence for this (batch, head), VMEM-resident.
                pl.BlockSpec((seq, hd), lambda b, h, i: (b, heads + h)),
                pl.BlockSpec((seq, hd), lambda b, h, i: (b, 2 * heads + h)),
            ],
            out_specs=pl.BlockSpec((tq, hd), lambda b, h, i: (b * nq + i, h)),
        ),
        compiler_params=pltpu.CompilerParams(
            dimension_semantics=("parallel", "parallel", "parallel"),
            vmem_limit_bytes=VMEM_LIMIT),
        cost_estimate=_cost(2 * batch * heads * seq * seq * hd,
                            2 * m * d3 + 2 * m * d,
                            transcendentals=batch * heads * seq * seq // 2),
    )(qkv, qkv, qkv)


# ------------------------------- model (glue) -----------------------------------

def sinusoidal_positional_encoding(num_positions, embedding_dim):
    pos = jnp.arange(num_positions, dtype=jnp.float32)[:, None]
    div = jnp.exp(jnp.arange(0, embedding_dim, 2, dtype=jnp.float32)
                  * -(math.log(10000.0) / embedding_dim))
    pe = jnp.zeros((num_positions, embedding_dim), jnp.float32)
    pe = pe.at[:, 0::2].set(jnp.sin(pos * div))
    pe = pe.at[:, 1::2].set(jnp.cos(pos * div))
    return pe


def init_params(key, vocab_size, emb_d, ff_d, heads, layers_d):
    keys = jax.random.split(key, 2 + 4 * layers_d)
    scale = 0.02
    params = {
        "we": scale * jax.random.normal(keys[0], (vocab_size, emb_d), jnp.float32),
        # Final head is bias-free.  Weights stored bf16 for MXU-native matmuls.
        "w_out": (scale * jax.random.normal(keys[1], (emb_d, vocab_size),
                                            jnp.float32)).astype(jnp.bfloat16),
        "normf_scale": jnp.ones((1, emb_d), jnp.float32),
        "layers": [],
    }
    for li in range(layers_d):
        k0, k1, k2, k3 = keys[2 + 4 * li: 6 + 4 * li]
        layer = {
            "norm1_scale": jnp.ones((1, emb_d), jnp.float32),
            "norm2_scale": jnp.ones((1, emb_d), jnp.float32),
            # qkv packed lane-aligned as [all-Q | all-K | all-V] along the output
            # dim (a fixed column permutation of PyTorch's per-head [q|k|v] packing —
            # equivalent for randomly-initialized weights).
            "wqkv": (scale * jax.random.normal(k0, (emb_d, 3 * emb_d),
                                               jnp.float32)).astype(jnp.bfloat16),
            "bqkv": jnp.zeros((1, 3 * emb_d), jnp.float32),
            "wo": (scale * jax.random.normal(k1, (emb_d, emb_d),
                                             jnp.float32)).astype(jnp.bfloat16),
            "bo": jnp.zeros((1, emb_d), jnp.float32),
            "w1": (scale * jax.random.normal(k2, (emb_d, ff_d),
                                             jnp.float32)).astype(jnp.bfloat16),
            "b1": jnp.zeros((1, ff_d), jnp.float32),
            "w2": (scale * jax.random.normal(k3, (ff_d, emb_d),
                                             jnp.float32)).astype(jnp.bfloat16),
            "b2": jnp.zeros((1, emb_d), jnp.float32),
        }
        params["layers"].append(layer)
    return params


@functools.partial(jax.jit, static_argnames=("heads",))
def decoder_forward(params, tokens, heads):
    B, S = tokens.shape
    D = params["we"].shape[1]
    V = params["w_out"].shape[1]
    M = B * S

    # Embedding lookup + sinusoidal positional encoding (XLA glue), then bf16
    # residual stream (all inter-kernel activations are bf16).
    x = jnp.take(params["we"], tokens, axis=0)               # (B, S, D) f32
    x = x + sinusoidal_positional_encoding(S, D)[None, :, :]
    x2d = x.reshape(M, D).astype(jnp.bfloat16)

    for layer in params["layers"]:
        # --- attention block ------------------------------------------------
        qkv = rms_linear(x2d, layer["norm1_scale"], layer["wqkv"], layer["bqkv"])
        a = causal_attention(qkv, batch=B, seq=S, heads=heads)    # (M, D) bf16
        # output projection with fused bias + residual add
        x2d = matmul(a, layer["wo"], bias=layer["bo"], residual=x2d)

        # --- MLP block: fused RMSNorm + Linear/GELU/Linear + residual --------
        x2d = mlp_block(x2d, layer["norm2_scale"], layer["w1"], layer["b1"],
                        layer["w2"], layer["b2"])

    # final RMSNorm fused into the bias-free vocab projection; logits in f32.
    logits = rms_linear(x2d, params["normf_scale"], params["w_out"],
                        bias=None, out_dtype=jnp.float32)
    return logits.reshape(B, S, V)


# ------------------------------------ main ---------------------------------------

if __name__ == "__main__":
    # Small config; head_dim = emb_d / heads = 128 (lane-aligned for the packed
    # qkv attention layout).
    VOCAB = 512
    EMB_D = 256
    FF_D = 512
    HEADS = 2
    LAYERS = 2
    BATCH = 2
    SEQ = 16

    key = jax.random.PRNGKey(0)
    pkey, tkey = jax.random.split(key)
    params = init_params(pkey, VOCAB, EMB_D, FF_D, HEADS, LAYERS)
    tokens = jax.random.randint(tkey, (BATCH, SEQ), 0, VOCAB, dtype=jnp.int32)

    logits = decoder_forward(params, tokens, heads=HEADS)
    jax.block_until_ready(logits)
    assert logits.shape == (BATCH, SEQ, VOCAB)
    assert bool(jnp.all(jnp.isfinite(logits)))
    print("KERNEL_OK")
</pallas_src>

<mosaic_0001>
module attributes {stable_mosaic.version = 11 : i64} {
  func.func @_rms_linear_kernel(%arg0: i32, %arg1: i32, %arg2: memref<32x256xbf16, #tpu.memory_space<vmem>>, %arg3: memref<1x256xf32, #tpu.memory_space<vmem>>, %arg4: memref<256x384xbf16, #tpu.memory_space<vmem>>, %arg5: memref<1x384xf32, #tpu.memory_space<vmem>>, %arg6: memref<32x384xbf16, #tpu.memory_space<vmem>>) attributes {dimension_semantics = [#tpu.dimension_semantics<parallel>, #tpu.dimension_semantics<parallel>], iteration_bounds = array<i64: 1, 2>, scalar_prefetch = 0 : i64, scratch_operands = 0 : i64, tpu.core_type = #tpu.core_type<tc>, window_params = [{transform_indices = @transform_0, window_bounds = array<i64: 32, 256>}, {pipeline_mode = #tpu.pipeline_mode<synchronous>, transform_indices = @transform_1, window_bounds = array<i64: 1, 256>}, {transform_indices = @transform_2, window_bounds = array<i64: 256, 384>}, {transform_indices = @transform_3, window_bounds = array<i64: 1, 384>}, {transform_indices = @transform_4, window_bounds = array<i64: 32, 384>}]} {
    %c0 = arith.constant 0 : index
    %c0_0 = arith.constant 0 : index
    %0 = vector.load %arg2[%c0, %c0_0] : memref<32x256xbf16, #tpu.memory_space<vmem>>, vector<32x256xbf16>
    %1 = arith.extf %0 : vector<32x256xbf16> to vector<32x256xf32>
    %c0_1 = arith.constant 0 : index
    %c0_2 = arith.constant 0 : index
    %2 = vector.load %arg3[%c0_1, %c0_2] : memref<1x256xf32, #tpu.memory_space<vmem>>, vector<1x256xf32>
    %3 = arith.mulf %1, %1 : vector<32x256xf32>
    %cst = arith.constant dense<0.000000e+00> : vector<32xf32>
    %4 = vector.multi_reduction <add>, %3, %cst [1] : vector<32x256xf32> to vector<32xf32>
    %5 = vector.shape_cast %4 : vector<32xf32> to vector<32x1xf32>
    %6 = math.sqrt %5 : vector<32x1xf32>
    %cst_3 = arith.constant 6.250000e-02 : f32
    %7 = vector.broadcast %cst_3 : f32 to vector<32x1xf32>
    %8 = arith.mulf %6, %7 : vector<32x1xf32>
    %cst_4 = arith.constant 9.99999993E-9 : f32
    %9 = vector.broadcast %cst_4 : f32 to vector<32x1xf32>
    %10 = arith.addf %8, %9 : vector<32x1xf32>
    %cst_5 = arith.constant 1.000000e+00 : f32
    %11 = vector.broadcast %cst_5 : f32 to vector<32x1xf32>
    %12 = arith.divf %11, %10 : vector<32x1xf32>
    %13 = vector.broadcast %12 : vector<32x1xf32> to vector<32x256xf32>
    %14 = arith.mulf %1, %13 : vector<32x256xf32>
    %15 = vector.broadcast %2 : vector<1x256xf32> to vector<32x256xf32>
    %16 = arith.mulf %15, %14 : vector<32x256xf32>
    %17 = arith.truncf %16 : vector<32x256xf32> to vector<32x256xbf16>
    %c0_6 = arith.constant 0 : index
    %c0_7 = arith.constant 0 : index
    %18 = vector.load %arg4[%c0_6, %c0_7] : memref<256x384xbf16, #tpu.memory_space<vmem>>, vector<256x384xbf16>
    %cst_8 = arith.constant dense<0.000000e+00> : vector<32x384xf32>
    %19 = tpu.matmul %17, %18, %cst_8 {dimension_numbers = #tpu.dot_dimension_numbers<[1], [0], [0], [1], [0, 0, 1, 1], [], []>} : vector<32x256xbf16>, vector<256x384xbf16>, vector<32x384xf32> -> vector<32x384xf32>
    %c0_9 = arith.constant 0 : index
    %c0_10 = arith.constant 0 : index
    %20 = vector.load %arg5[%c0_9, %c0_10] : memref<1x384xf32, #tpu.memory_space<vmem>>, vector<1x384xf32>
    %21 = vector.broadcast %20 : vector<1x384xf32> to vector<32x384xf32>
    %22 = arith.addf %19, %21 : vector<32x384xf32>
    %23 = arith.truncf %22 : vector<32x384xf32> to vector<32x384xbf16>
    %c0_11 = arith.constant 0 : index
    %c0_12 = arith.constant 0 : index
    %24 = vector.load %arg6[%c0_11, %c0_12] : memref<32x384xbf16, #tpu.memory_space<vmem>>, vector<32x384xbf16>
    tpu.vector_store %arg6[%c0_11, %c0_12], %23 {strides = array<i32>} : memref<32x384xbf16, #tpu.memory_space<vmem>>, vector<32x384xbf16>,
    return
  }
  func.func @transform_0(%arg0: i32, %arg1: i32) -> (i32, i32) {
    %c0_i32 = arith.constant 0 : i32
    %c0_i32_0 = arith.constant 0 : i32
    return %arg0, %c0_i32 : i32, i32
  }
  func.func @transform_1(%arg0: i32, %arg1: i32) -> (i32, i32) {
    %c0_i32 = arith.constant 0 : i32
    %c0_i32_0 = arith.constant 0 : i32
    %c0_i32_1 = arith.constant 0 : i32
    return %c0_i32, %c0_i32_0 : i32, i32
  }
  func.func @transform_2(%arg0: i32, %arg1: i32) -> (i32, i32) {
    %c0_i32 = arith.constant 0 : i32
    %c0_i32_0 = arith.constant 0 : i32
    return %c0_i32, %arg1 : i32, i32
  }
  func.func @transform_3(%arg0: i32, %arg1: i32) -> (i32, i32) {
    %c0_i32 = arith.constant 0 : i32
    %c0_i32_0 = arith.constant 0 : i32
    return %c0_i32, %arg1 : i32, i32
  }
  func.func @transform_4(%arg0: i32, %arg1: i32) -> (i32, i32) {
    %c0_i32 = arith.constant 0 : i32
    return %arg0, %arg1 : i32, i32
  }
}

module attributes {stable_mosaic.version = 11 : i64} {
  func.func @_attn_kernel(%arg0: i32, %arg1: i32, %arg2: i32, %arg3: memref<16x128xbf16, #tpu.memory_space<vmem>>, %arg4: memref<16x128xbf16, #tpu.memory_space<vmem>>, %arg5: memref<16x128xbf16, #tpu.memory_space<vmem>>, %arg6: memref<16x128xbf16, #tpu.memory_space<vmem>>) attributes {dimension_semantics = [#tpu.dimension_semantics<parallel>, #tpu.dimension_semantics<parallel>, #tpu.dimension_semantics<parallel>], iteration_bounds = array<i64: 2, 2, 1>, scalar_prefetch = 0 : i64, scratch_operands = 0 : i64, tpu.core_type = #tpu.core_type<tc>, window_params = [{transform_indices = @transform_0, window_bounds = array<i64: 16, 128>}, {transform_indices = @transform_1, window_bounds = array<i64: 16, 128>}, {transform_indices = @transform_2, window_bounds = array<i64: 16, 128>}, {transform_indices = @transform_3, window_bounds = array<i64: 16, 128>}]} {
    %c16_i32 = arith.constant 16 : i32
    %0 = arith.muli %arg2, %c16_i32 : i32
    %c0 = arith.constant 0 : index
    %c0_0 = arith.constant 0 : index
    %1 = vector.load %arg3[%c0, %c0_0] : memref<16x128xbf16, #tpu.memory_space<vmem>>, vector<16x128xbf16>
    %2 = arith.extf %1 : vector<16x128xbf16> to vector<16x128xf32>
    %cst = arith.constant 0.0883883461 : f32
    %3 = vector.broadcast %cst : f32 to vector<16x128xf32>
    %4 = arith.mulf %2, %3 : vector<16x128xf32>
    %5 = arith.truncf %4 : vector<16x128xf32> to vector<16x128xbf16>
    %cst_1 = arith.constant -1.000000e+30 : f32
    %6 = vector.broadcast %cst_1 : f32 to vector<16x1xf32>
    %cst_2 = arith.constant 0.000000e+00 : f32
    %7 = vector.broadcast %cst_2 : f32 to vector<16x1xf32>
    %cst_3 = arith.constant 0.000000e+00 : f32
    %8 = vector.broadcast %cst_3 : f32 to vector<16x128xf32>
    %c1_i32 = arith.constant 1 : i32
    %9 = arith.muli %arg2, %c1_i32 : i32
    %c0_i32 = arith.constant 0 : i32
    %10 = arith.subi %9, %c0_i32 : i32
    %11 = arith.addi %c0_i32, %10 : i32
    %c1_i32_4 = arith.constant 1 : i32
    %12:3 = scf.for %arg7 = %c0_i32 to %11 step %c1_i32_4 iter_args(%arg8 = %6, %arg9 = %7, %arg10 = %8) -> (vector<16x1xf32>, vector<16x1xf32>, vector<16x128xf32>)  : i32 {
      %c16_i32_17 = arith.constant 16 : i32
      %53 = arith.muli %arg7, %c16_i32_17 : i32
      %54 = tpu.assume_multiple %53, 16 : i32
      %55 = arith.index_cast %54 : i32 to index
      %c0_18 = arith.constant 0 : index
      %56 = vector.load %arg4[%55, %c0_18] : memref<16x128xbf16, #tpu.memory_space<vmem>>, vector<16x128xbf16>
      %57 = arith.index_cast %54 : i32 to index
      %c0_19 = arith.constant 0 : index
      %58 = vector.load %arg5[%57, %c0_19] : memref<16x128xbf16, #tpu.memory_space<vmem>>, vector<16x128xbf16>
      %cst_20 = arith.constant dense<0.000000e+00> : vector<16x16xf32>
      %59 = tpu.matmul %5, %56, %cst_20 {dimension_numbers = #tpu.dot_dimension_numbers<[1], [1], [0], [0], [0, 0, 1, 0], [], []>} : vector<16x128xbf16>, vector<16x128xbf16>, vector<16x16xf32> -> vector<16x16xf32>
      %cst_21 = arith.constant dense<0xFF800000> : vector<16xf32>
      %60 = vector.multi_reduction <maximumf>, %59, %cst_21 [1] : vector<16x16xf32> to vector<16xf32>
      %61 = vector.shape_cast %60 : vector<16xf32> to vector<16x1xf32>
      %62 = arith.maximumf %arg8, %61 : vector<16x1xf32>
      %63 = arith.subf %arg8, %62 : vector<16x1xf32>
      %64 = math.exp %63 : vector<16x1xf32>
      %65 = vector.broadcast %62 : vector<16x1xf32> to vector<16x16xf32>
      %66 = arith.subf %59, %65 : vector<16x16xf32>
      %67 = math.exp %66 : vector<16x16xf32>
      %68 = arith.mulf %64, %arg9 : vector<16x1xf32>
      %cst_22 = arith.constant dense<0.000000e+00> : vector<16xf32>
      %69 = vector.multi_reduction <add>, %67, %cst_22 [1] : vector<16x16xf32> to vector<16xf32>
      %70 = vector.shape_cast %69 : vector<16xf32> to vector<16x1xf32>
      %71 = arith.addf %68, %70 : vector<16x1xf32>
      %72 = vector.broadcast %64 : vector<16x1xf32> to vector<16x128xf32>
      %73 = arith.mulf %72, %arg10 : vector<16x128xf32>
      %74 = arith.truncf %67 : vector<16x16xf32> to vector<16x16xbf16>
      %cst_23 = arith.constant dense<0.000000e+00> : vector<16x128xf32>
      %75 = tpu.matmul %74, %58, %cst_23 {dimension_numbers = #tpu.dot_dimension_numbers<[1], [0], [0], [1], [0, 0, 1, 1], [], []>} : vector<16x16xbf16>, vector<16x128xbf16>, vector<16x128xf32> -> vector<16x128xf32>
      %76 = arith.addf %73, %75 : vector<16x128xf32>
      scf.yield %62, %71, %76 : vector<16x1xf32>, vector<16x1xf32>, vector<16x128xf32>
    }
    %c0_i32_5 = arith.constant 0 : i32
    %13 = arith.addi %9, %c0_i32_5 : i32
    %c16_i32_6 = arith.constant 16 : i32
    %14 = arith.muli %13, %c16_i32_6 : i32
    %15 = tpu.assume_multiple %14, 16 : i32
    %16 = arith.index_cast %15 : i32 to index
    %c0_7 = arith.constant 0 : index
    %17 = vector.load %arg4[%16, %c0_7] : memref<16x128xbf16, #tpu.memory_space<vmem>>, vector<16x128xbf16>
    %18 = arith.index_cast %15 : i32 to index
    %c0_8 = arith.constant 0 : index
    %19 = vector.load %arg5[%18, %c0_8] : memref<16x128xbf16, #tpu.memory_space<vmem>>, vector<16x128xbf16>
    %cst_9 = arith.constant dense<0.000000e+00> : vector<16x16xf32>
    %20 = tpu.matmul %5, %17, %cst_9 {dimension_numbers = #tpu.dot_dimension_numbers<[1], [1], [0], [0], [0, 0, 1, 0], [], []>} : vector<16x128xbf16>, vector<16x128xbf16>, vector<16x16xf32> -> vector<16x16xf32>
    %21 = tpu.iota {dimensions = array<i32: 0>} : vector<16x16xi32>
    %22 = vector.broadcast %0 : i32 to vector<16x16xi32>
    %23 = arith.addi %22, %21 : vector<16x16xi32>
    %24 = tpu.iota {dimensions = array<i32: 1>} : vector<16x16xi32>
    %25 = vector.broadcast %15 : i32 to vector<16x16xi32>
    %26 = arith.addi %25, %24 : vector<16x16xi32>
    %27 = arith.cmpi sle, %26, %23 : vector<16x16xi32>
    %cst_10 = arith.constant -1.000000e+30 : f32
    %28 = vector.broadcast %cst_10 : f32 to vector<16x16xf32>
    %29 = arith.select %27, %20, %28 : vector<16x16xi1>, vector<16x16xf32>
    %cst_11 = arith.constant dense<0xFF800000> : vector<16xf32>
    %30 = vector.multi_reduction <maximumf>, %29, %cst_11 [1] : vector<16x16xf32> to vector<16xf32>
    %31 = vector.shape_cast %30 : vector<16xf32> to vector<16x1xf32>
    %32 = arith.maximumf %12#0, %31 : vector<16x1xf32>
    %33 = arith.subf %12#0, %32 : vector<16x1xf32>
    %34 = math.exp %33 : vector<16x1xf32>
    %35 = vector.broadcast %32 : vector<16x1xf32> to vector<16x16xf32>
    %36 = arith.subf %29, %35 : vector<16x16xf32>
    %37 = math.exp %36 : vector<16x16xf32>
    %38 = arith.mulf %34, %12#1 : vector<16x1xf32>
    %cst_12 = arith.constant dense<0.000000e+00> : vector<16xf32>
    %39 = vector.multi_reduction <add>, %37, %cst_12 [1] : vector<16x16xf32> to vector<16xf32>
    %40 = vector.shape_cast %39 : vector<16xf32> to vector<16x1xf32>
    %41 = arith.addf %38, %40 : vector<16x1xf32>
    %42 = vector.broadcast %34 : vector<16x1xf32> to vector<16x128xf32>
    %43 = arith.mulf %42, %12#2 : vector<16x128xf32>
    %44 = arith.truncf %37 : vector<16x16xf32> to vector<16x16xbf16>
    %cst_13 = arith.constant dense<0.000000e+00> : vector<16x128xf32>
    %45 = tpu.matmul %44, %19, %cst_13 {dimension_numbers = #tpu.dot_dimension_numbers<[1], [0], [0], [1], [0, 0, 1, 1], [], []>} : vector<16x16xbf16>, vector<16x128xbf16>, vector<16x128xf32> -> vector<16x128xf32>
    %46 = arith.addf %43, %45 : vector<16x128xf32>
    %cst_14 = arith.constant 1.000000e+00 : f32
    %47 = vector.broadcast %cst_14 : f32 to vector<16x1xf32>
    %48 = arith.divf %47, %41 : vector<16x1xf32>
    %49 = vector.broadcast %48 : vector<16x1xf32> to vector<16x128xf32>
    %50 = arith.mulf %46, %49 : vector<16x128xf32>
    %51 = arith.truncf %50 : vector<16x128xf32> to vector<16x128xbf16>
    %c0_15 = arith.constant 0 : index
    %c0_16 = arith.constant 0 : index
    %52 = vector.load %arg6[%c0_15, %c0_16] : memref<16x128xbf16, #tpu.memory_space<vmem>>, vector<16x128xbf16>
    tpu.vector_store %arg6[%c0_15, %c0_16], %51 {strides = array<i32>} : memref<16x128xbf16, #tpu.memory_space<vmem>>, vector<16x128xbf16>,
    return
  }
  func.func @transform_0(%arg0: i32, %arg1: i32, %arg2: i32) -> (i32, i32) {
    %c1_i32 = arith.constant 1 : i32
    %0 = arith.muli %arg0, %c1_i32 : i32
    %1 = arith.addi %0, %arg2 : i32
    %c0_i32 = arith.constant 0 : i32
    return %1, %arg1 : i32, i32
  }
  func.func @transform_1(%arg0: i32, %arg1: i32, %arg2: i32) -> (i32, i32) {
    %c2_i32 = arith.constant 2 : i32
    %0 = arith.addi %c2_i32, %arg1 : i32
    %c0_i32 = arith.constant 0 : i32
    return %arg0, %0 : i32, i32
  }
  func.func @transform_2(%arg0: i32, %arg1: i32, %arg2: i32) -> (i32, i32) {
    %c4_i32 = arith.constant 4 : i32
    %0 = arith.addi %c4_i32, %arg1 : i32
    %c0_i32 = arith.constant 0 : i32
    return %arg0, %0 : i32, i32
  }
  func.func @transform_3(%arg0: i32, %arg1: i32, %arg2: i32) -> (i32, i32) {
    %c1_i32 = arith.constant 1 : i32
    %0 = arith.muli %arg0, %c1_i32 : i32
    %1 = arith.addi %0, %arg2 : i32
    %c0_i32 = arith.constant 0 : i32
    return %1, %arg1 : i32, i32
  }
}

module attributes {stable_mosaic.version = 11 : i64} {
  func.func @_matmul_kernel(%arg0: i32, %arg1: i32, %arg2: i32, %arg3: memref<32x256xbf16, #tpu.memory_space<vmem>>, %arg4: memref<256x256xbf16, #tpu.memory_space<vmem>>, %arg5: memref<1x256xf32, #tpu.memory_space<vmem>>, %arg6: memref<32x256xbf16, #tpu.memory_space<vmem>>, %arg7: memref<32x256xbf16, #tpu.memory_space<vmem>>, %arg8: memref<32x256xf32, #tpu.memory_space<vmem>>) attributes {dimension_semantics = [#tpu.dimension_semantics<parallel>, #tpu.dimension_semantics<parallel>, #tpu.dimension_semantics<arbitrary>], iteration_bounds = array<i64: 1, 1, 1>, scalar_prefetch = 0 : i64, scratch_operands = 1 : i64, tpu.core_type = #tpu.core_type<tc>, window_params = [{transform_indices = @transform_0, window_bounds = array<i64: 32, 256>}, {transform_indices = @transform_1, window_bounds = array<i64: 256, 256>}, {transform_indices = @transform_2, window_bounds = array<i64: 1, 256>}, {transform_indices = @transform_3, window_bounds = array<i64: 32, 256>}, {transform_indices = @transform_4, window_bounds = array<i64: 32, 256>}]} {
    %c0_i32 = arith.constant 0 : i32
    %0 = arith.cmpi eq, %arg2, %c0_i32 : i32
    %1 = arith.extui %0 : i1 to i32
    %c0_i32_0 = arith.constant 0 : i32
    %2 = arith.cmpi ne, %1, %c0_i32_0 : i32
    scf.if %2 {
      %cst_10 = arith.constant 0.000000e+00 : f32
      %12 = vector.broadcast %cst_10 : f32 to vector<32x256xf32>
      %c0_11 = arith.constant 0 : index
      %c0_12 = arith.constant 0 : index
      %13 = vector.load %arg8[%c0_11, %c0_12] : memref<32x256xf32, #tpu.memory_space<vmem>>, vector<32x256xf32>
      tpu.vector_store %arg8[%c0_11, %c0_12], %12 {strides = array<i32>} : memref<32x256xf32, #tpu.memory_space<vmem>>, vector<32x256xf32>,
    } else {
    }
    %c0 = arith.constant 0 : index
    %c0_1 = arith.constant 0 : index
    %3 = vector.load %arg8[%c0, %c0_1] : memref<32x256xf32, #tpu.memory_space<vmem>>, vector<32x256xf32>
    %c0_2 = arith.constant 0 : index
    %c0_3 = arith.constant 0 : index
    %4 = vector.load %arg3[%c0_2, %c0_3] : memref<32x256xbf16, #tpu.memory_space<vmem>>, vector<32x256xbf16>
    %c0_4 = arith.constant 0 : index
    %c0_5 = arith.constant 0 : index
    %5 = vector.load %arg4[%c0_4, %c0_5] : memref<256x256xbf16, #tpu.memory_space<vmem>>, vector<256x256xbf16>
    %cst = arith.constant dense<0.000000e+00> : vector<32x256xf32>
    %6 = tpu.matmul %4, %5, %cst {dimension_numbers = #tpu.dot_dimension_numbers<[1], [0], [0], [1], [0, 0, 1, 1], [], []>} : vector<32x256xbf16>, vector<256x256xbf16>, vector<32x256xf32> -> vector<32x256xf32>
    %7 = arith.addf %3, %6 : vector<32x256xf32>
    %c0_6 = arith.constant 0 : index
    %c0_7 = arith.constant 0 : index
    %8 = vector.load %arg8[%c0_6, %c0_7] : memref<32x256xf32, #tpu.memory_space<vmem>>, vector<32x256xf32>
    tpu.vector_store %arg8[%c0_6, %c0_7], %7 {strides = array<i32>} : memref<32x256xf32, #tpu.memory_space<vmem>>, vector<32x256xf32>,
    %c0_i32_8 = arith.constant 0 : i32
    %9 = arith.cmpi eq, %arg2, %c0_i32_8 : i32
    %10 = arith.extui %9 : i1 to i32
    %c0_i32_9 = arith.constant 0 : i32
    %11 = arith.cmpi ne, %10, %c0_i32_9 : i32
    scf.if %11 {
      %c0_10 = arith.constant 0 : index
      %c0_11 = arith.constant 0 : index
      %12 = vector.load %arg8[%c0_10, %c0_11] : memref<32x256xf32, #tpu.memory_space<vmem>>, vector<32x256xf32>
      %c0_12 = arith.constant 0 : index
      %c0_13 = arith.constant 0 : index
      %13 = vector.load %arg5[%c0_12, %c0_13] : memref<1x256xf32, #tpu.memory_space<vmem>>, vector<1x256xf32>
      %14 = vector.broadcast %13 : vector<1x256xf32> to vector<32x256xf32>
      %15 = arith.addf %12, %14 : vector<32x256xf32>
      %c0_14 = arith.constant 0 : index
      %c0_15 = arith.constant 0 : index
      %16 = vector.load %arg6[%c0_14, %c0_15] : memref<32x256xbf16, #tpu.memory_space<vmem>>, vector<32x256xbf16>
      %17 = arith.extf %16 : vector<32x256xbf16> to vector<32x256xf32>
      %18 = arith.addf %15, %17 : vector<32x256xf32>
      %19 = arith.truncf %18 : vector<32x256xf32> to vector<32x256xbf16>
      %c0_16 = arith.constant 0 : index
      %c0_17 = arith.constant 0 : index
      %20 = vector.load %arg7[%c0_16, %c0_17] : memref<32x256xbf16, #tpu.memory_space<vmem>>, vector<32x256xbf16>
      tpu.vector_store %arg7[%c0_16, %c0_17], %19 {strides = array<i32>} : memref<32x256xbf16, #tpu.memory_space<vmem>>, vector<32x256xbf16>,
    } else {
    }
    return
  }
  func.func @transform_0(%arg0: i32, %arg1: i32, %arg2: i32) -> (i32, i32) {
    %c0_i32 = arith.constant 0 : i32
    return %arg0, %arg2 : i32, i32
  }
  func.func @transform_1(%arg0: i32, %arg1: i32, %arg2: i32) -> (i32, i32) {
    %c0_i32 = arith.constant 0 : i32
    return %arg2, %arg1 : i32, i32
  }
  func.func @transform_2(%arg0: i32, %arg1: i32, %arg2: i32) -> (i32, i32) {
    %c0_i32 = arith.constant 0 : i32
    %c0_i32_0 = arith.constant 0 : i32
    return %c0_i32, %arg1 : i32, i32
  }
  func.func @transform_3(%arg0: i32, %arg1: i32, %arg2: i32) -> (i32, i32) {
    %c0_i32 = arith.constant 0 : i32
    return %arg0, %arg1 : i32, i32
  }
  func.func @transform_4(%arg0: i32, %arg1: i32, %arg2: i32) -> (i32, i32) {
    %c0_i32 = arith.constant 0 : i32
    return %arg0, %arg1 : i32, i32
  }
}

module attributes {stable_mosaic.version = 11 : i64} {
  func.func @_mlp_kernel(%arg0: i32, %arg1: i32, %arg2: memref<32x256xbf16, #tpu.memory_space<vmem>>, %arg3: memref<1x256xf32, #tpu.memory_space<vmem>>, %arg4: memref<256x512xbf16, #tpu.memory_space<vmem>>, %arg5: memref<1x512xf32, #tpu.memory_space<vmem>>, %arg6: memref<512x256xbf16, #tpu.memory_space<vmem>>, %arg7: memref<1x256xf32, #tpu.memory_space<vmem>>, %arg8: memref<32x256xbf16, #tpu.memory_space<vmem>>, %arg9: memref<32x256xbf16, #tpu.memory_space<vmem>>, %arg10: memref<32x256xf32, #tpu.memory_space<vmem>>) attributes {dimension_semantics = [#tpu.dimension_semantics<parallel>, #tpu.dimension_semantics<arbitrary>], iteration_bounds = array<i64: 1, 1>, scalar_prefetch = 0 : i64, scratch_operands = 2 : i64, tpu.core_type = #tpu.core_type<tc>, window_params = [{transform_indices = @transform_0, window_bounds = array<i64: 32, 256>}, {pipeline_mode = #tpu.pipeline_mode<synchronous>, transform_indices = @transform_1, window_bounds = array<i64: 1, 256>}, {transform_indices = @transform_2, window_bounds = array<i64: 256, 512>}, {transform_indices = @transform_3, window_bounds = array<i64: 1, 512>}, {transform_indices = @transform_4, window_bounds = array<i64: 512, 256>}, {pipeline_mode = #tpu.pipeline_mode<synchronous>, transform_indices = @transform_5, window_bounds = array<i64: 1, 256>}, {transform_indices = @transform_6, window_bounds = array<i64: 32, 256>}]} {
    %c0_i32 = arith.constant 0 : i32
    %0 = arith.cmpi eq, %arg1, %c0_i32 : i32
    %1 = arith.extui %0 : i1 to i32
    %c0_i32_0 = arith.constant 0 : i32
    %2 = arith.cmpi ne, %1, %c0_i32_0 : i32
    scf.if %2 {
      %c0_18 = arith.constant 0 : index
      %c0_19 = arith.constant 0 : index
      %26 = vector.load %arg2[%c0_18, %c0_19] : memref<32x256xbf16, #tpu.memory_space<vmem>>, vector<32x256xbf16>
      %27 = arith.extf %26 : vector<32x256xbf16> to vector<32x256xf32>
      %c0_20 = arith.constant 0 : index
      %c0_21 = arith.constant 0 : index
      %28 = vector.load %arg3[%c0_20, %c0_21] : memref<1x256xf32, #tpu.memory_space<vmem>>, vector<1x256xf32>
      %29 = arith.mulf %27, %27 : vector<32x256xf32>
      %cst_22 = arith.constant dense<0.000000e+00> : vector<32xf32>
      %30 = vector.multi_reduction <add>, %29, %cst_22 [1] : vector<32x256xf32> to vector<32xf32>
      %31 = vector.shape_cast %30 : vector<32xf32> to vector<32x1xf32>
      %32 = math.sqrt %31 : vector<32x1xf32>
      %cst_23 = arith.constant 6.250000e-02 : f32
      %33 = vector.broadcast %cst_23 : f32 to vector<32x1xf32>
      %34 = arith.mulf %32, %33 : vector<32x1xf32>
      %cst_24 = arith.constant 9.99999993E-9 : f32
      %35 = vector.broadcast %cst_24 : f32 to vector<32x1xf32>
      %36 = arith.addf %34, %35 : vector<32x1xf32>
      %cst_25 = arith.constant 1.000000e+00 : f32
      %37 = vector.broadcast %cst_25 : f32 to vector<32x1xf32>
      %38 = arith.divf %37, %36 : vector<32x1xf32>
      %39 = vector.broadcast %38 : vector<32x1xf32> to vector<32x256xf32>
      %40 = arith.mulf %27, %39 : vector<32x256xf32>
      %41 = vector.broadcast %28 : vector<1x256xf32> to vector<32x256xf32>
      %42 = arith.mulf %41, %40 : vector<32x256xf32>
      %43 = arith.truncf %42 : vector<32x256xf32> to vector<32x256xbf16>
      %c0_26 = arith.constant 0 : index
      %c0_27 = arith.constant 0 : index
      %44 = vector.load %arg9[%c0_26, %c0_27] : memref<32x256xbf16, #tpu.memory_space<vmem>>, vector<32x256xbf16>
      tpu.vector_store %arg9[%c0_26, %c0_27], %43 {strides = array<i32>} : memref<32x256xbf16, #tpu.memory_space<vmem>>, vector<32x256xbf16>,
      %cst_28 = arith.constant 0.000000e+00 : f32
      %45 = vector.broadcast %cst_28 : f32 to vector<32x256xf32>
      %c0_29 = arith.constant 0 : index
      %c0_30 = arith.constant 0 : index
      %46 = vector.load %arg10[%c0_29, %c0_30] : memref<32x256xf32, #tpu.memory_space<vmem>>, vector<32x256xf32>
      tpu.vector_store %arg10[%c0_29, %c0_30], %45 {strides = array<i32>} : memref<32x256xf32, #tpu.memory_space<vmem>>, vector<32x256xf32>,
    } else {
    }
    %c0 = arith.constant 0 : index
    %c0_1 = arith.constant 0 : index
    %3 = vector.load %arg9[%c0, %c0_1] : memref<32x256xbf16, #tpu.memory_space<vmem>>, vector<32x256xbf16>
    %c0_2 = arith.constant 0 : index
    %c0_3 = arith.constant 0 : index
    %4 = vector.load %arg4[%c0_2, %c0_3] : memref<256x512xbf16, #tpu.memory_space<vmem>>, vector<256x512xbf16>
    %cst = arith.constant dense<0.000000e+00> : vector<32x512xf32>
    %5 = tpu.matmul %3, %4, %cst {dimension_numbers = #tpu.dot_dimension_numbers<[1], [0], [0], [1], [0, 0, 1, 1], [], []>} : vector<32x256xbf16>, vector<256x512xbf16>, vector<32x512xf32> -> vector<32x512xf32>
    %c0_4 = arith.constant 0 : index
    %c0_5 = arith.constant 0 : index
    %6 = vector.load %arg5[%c0_4, %c0_5] : memref<1x512xf32, #tpu.memory_space<vmem>>, vector<1x512xf32>
    %7 = vector.broadcast %6 : vector<1x512xf32> to vector<32x512xf32>
    %8 = arith.addf %5, %7 : vector<32x512xf32>
    %cst_6 = arith.constant 5.000000e-01 : f32
    %9 = vector.broadcast %cst_6 : f32 to vector<32x512xf32>
    %10 = arith.mulf %9, %8 : vector<32x512xf32>
    %cst_7 = arith.constant 0.707106769 : f32
    %11 = vector.broadcast %cst_7 : f32 to vector<32x512xf32>
    %12 = arith.mulf %8, %11 : vector<32x512xf32>
    %13 = math.erf %12 : vector<32x512xf32>
    %cst_8 = arith.constant 1.000000e+00 : f32
    %14 = vector.broadcast %cst_8 : f32 to vector<32x512xf32>
    %15 = arith.addf %14, %13 : vector<32x512xf32>
    %16 = arith.mulf %10, %15 : vector<32x512xf32>
    %c0_9 = arith.constant 0 : index
    %c0_10 = arith.constant 0 : index
    %17 = vector.load %arg10[%c0_9, %c0_10] : memref<32x256xf32, #tpu.memory_space<vmem>>, vector<32x256xf32>
    %18 = arith.truncf %16 : vector<32x512xf32> to vector<32x512xbf16>
    %c0_11 = arith.constant 0 : index
    %c0_12 = arith.constant 0 : index
    %19 = vector.load %arg6[%c0_11, %c0_12] : memref<512x256xbf16, #tpu.memory_space<vmem>>, vector<512x256xbf16>
    %cst_13 = arith.constant dense<0.000000e+00> : vector<32x256xf32>
    %20 = tpu.matmul %18, %19, %cst_13 {dimension_numbers = #tpu.dot_dimension_numbers<[1], [0], [0], [1], [0, 0, 1, 1], [], []>} : vector<32x512xbf16>, vector<512x256xbf16>, vector<32x256xf32> -> vector<32x256xf32>
    %21 = arith.addf %17, %20 : vector<32x256xf32>
    %c0_14 = arith.constant 0 : index
    %c0_15 = arith.constant 0 : index
    %22 = vector.load %arg10[%c0_14, %c0_15] : memref<32x256xf32, #tpu.memory_space<vmem>>, vector<32x256xf32>
    tpu.vector_store %arg10[%c0_14, %c0_15], %21 {strides = array<i32>} : memref<32x256xf32, #tpu.memory_space<vmem>>, vector<32x256xf32>,
    %c0_i32_16 = arith.constant 0 : i32
    %23 = arith.cmpi eq, %arg1, %c0_i32_16 : i32
    %24 = arith.extui %23 : i1 to i32
    %c0_i32_17 = arith.constant 0 : i32
    %25 = arith.cmpi ne, %24, %c0_i32_17 : i32
    scf.if %25 {
      %c0_18 = arith.constant 0 : index
      %c0_19 = arith.constant 0 : index
      %26 = vector.load %arg2[%c0_18, %c0_19] : memref<32x256xbf16, #tpu.memory_space<vmem>>, vector<32x256xbf16>
      %27 = arith.extf %26 : vector<32x256xbf16> to vector<32x256xf32>
      %c0_20 = arith.constant 0 : index
      %c0_21 = arith.constant 0 : index
      %28 = vector.load %arg10[%c0_20, %c0_21] : memref<32x256xf32, #tpu.memory_space<vmem>>, vector<32x256xf32>
      %29 = arith.addf %27, %28 : vector<32x256xf32>
      %c0_22 = arith.constant 0 : index
      %c0_23 = arith.constant 0 : index
      %30 = vector.load %arg7[%c0_22, %c0_23] : memref<1x256xf32, #tpu.memory_space<vmem>>, vector<1x256xf32>
      %31 = vector.broadcast %30 : vector<1x256xf32> to vector<32x256xf32>
      %32 = arith.addf %29, %31 : vector<32x256xf32>
      %33 = arith.truncf %32 : vector<32x256xf32> to vector<32x256xbf16>
      %c0_24 = arith.constant 0 : index
      %c0_25 = arith.constant 0 : index
      %34 = vector.load %arg8[%c0_24, %c0_25] : memref<32x256xbf16, #tpu.memory_space<vmem>>, vector<32x256xbf16>
      tpu.vector_store %arg8[%c0_24, %c0_25], %33 {strides = array<i32>} : memref<32x256xbf16, #tpu.memory_space<vmem>>, vector<32x256xbf16>,
    } else {
    }
    return
  }
  func.func @transform_0(%arg0: i32, %arg1: i32) -> (i32, i32) {
    %c0_i32 = arith.constant 0 : i32
    %c0_i32_0 = arith.constant 0 : i32
    return %arg0, %c0_i32 : i32, i32
  }
  func.func @transform_1(%arg0: i32, %arg1: i32) -> (i32, i32) {
    %c0_i32 = arith.constant 0 : i32
    %c0_i32_0 = arith.constant 0 : i32
    %c0_i32_1 = arith.constant 0 : i32
    return %c0_i32, %c0_i32_0 : i32, i32
  }
  func.func @transform_2(%arg0: i32, %arg1: i32) -> (i32, i32) {
    %c0_i32 = arith.constant 0 : i32
    %c0_i32_0 = arith.constant 0 : i32
    return %c0_i32, %arg1 : i32, i32
  }
  func.func @transform_3(%arg0: i32, %arg1: i32) -> (i32, i32) {
    %c0_i32 = arith.constant 0 : i32
    %c0_i32_0 = arith.constant 0 : i32
    return %c0_i32, %arg1 : i32, i32
  }
  func.func @transform_4(%arg0: i32, %arg1: i32) -> (i32, i32) {
    %c0_i32 = arith.constant 0 : i32
    %c0_i32_0 = arith.constant 0 : i32
    return %arg1, %c0_i32 : i32, i32
  }
  func.func @transform_5(%arg0: i32, %arg1: i32) -> (i32, i32) {
    %c0_i32 = arith.constant 0 : i32
    %c0_i32_0 = arith.constant 0 : i32
    %c0_i32_1 = arith.constant 0 : i32
    return %c0_i32, %c0_i32_0 : i32, i32
  }
  func.func @transform_6(%arg0: i32, %arg1: i32) -> (i32, i32) {
    %c0_i32 = arith.constant 0 : i32
    %c0_i32_0 = arith.constant 0 : i32
    return %arg0, %c0_i32 : i32, i32
  }
}

module attributes {stable_mosaic.version = 11 : i64} {
  func.func @_rms_linear_kernel(%arg0: i32, %arg1: i32, %arg2: memref<32x256xbf16, #tpu.memory_space<vmem>>, %arg3: memref<1x256xf32, #tpu.memory_space<vmem>>, %arg4: memref<256x512xbf16, #tpu.memory_space<vmem>>, %arg5: memref<32x512xf32, #tpu.memory_space<vmem>>) attributes {dimension_semantics = [#tpu.dimension_semantics<parallel>, #tpu.dimension_semantics<parallel>], iteration_bounds = array<i64: 1, 1>, scalar_prefetch = 0 : i64, scratch_operands = 0 : i64, tpu.core_type = #tpu.core_type<tc>, window_params = [{transform_indices = @transform_0, window_bounds = array<i64: 32, 256>}, {pipeline_mode = #tpu.pipeline_mode<synchronous>, transform_indices = @transform_1, window_bounds = array<i64: 1, 256>}, {transform_indices = @transform_2, window_bounds = array<i64: 256, 512>}, {transform_indices = @transform_3, window_bounds = array<i64: 32, 512>}]} {
    %c0 = arith.constant 0 : index
    %c0_0 = arith.constant 0 : index
    %0 = vector.load %arg2[%c0, %c0_0] : memref<32x256xbf16, #tpu.memory_space<vmem>>, vector<32x256xbf16>
    %1 = arith.extf %0 : vector<32x256xbf16> to vector<32x256xf32>
    %c0_1 = arith.constant 0 : index
    %c0_2 = arith.constant 0 : index
    %2 = vector.load %arg3[%c0_1, %c0_2] : memref<1x256xf32, #tpu.memory_space<vmem>>, vector<1x256xf32>
    %3 = arith.mulf %1, %1 : vector<32x256xf32>
    %cst = arith.constant dense<0.000000e+00> : vector<32xf32>
    %4 = vector.multi_reduction <add>, %3, %cst [1] : vector<32x256xf32> to vector<32xf32>
    %5 = vector.shape_cast %4 : vector<32xf32> to vector<32x1xf32>
    %6 = math.sqrt %5 : vector<32x1xf32>
    %cst_3 = arith.constant 6.250000e-02 : f32
    %7 = vector.broadcast %cst_3 : f32 to vector<32x1xf32>
    %8 = arith.mulf %6, %7 : vector<32x1xf32>
    %cst_4 = arith.constant 9.99999993E-9 : f32
    %9 = vector.broadcast %cst_4 : f32 to vector<32x1xf32>
    %10 = arith.addf %8, %9 : vector<32x1xf32>
    %cst_5 = arith.constant 1.000000e+00 : f32
    %11 = vector.broadcast %cst_5 : f32 to vector<32x1xf32>
    %12 = arith.divf %11, %10 : vector<32x1xf32>
    %13 = vector.broadcast %12 : vector<32x1xf32> to vector<32x256xf32>
    %14 = arith.mulf %1, %13 : vector<32x256xf32>
    %15 = vector.broadcast %2 : vector<1x256xf32> to vector<32x256xf32>
    %16 = arith.mulf %15, %14 : vector<32x256xf32>
    %17 = arith.truncf %16 : vector<32x256xf32> to vector<32x256xbf16>
    %c0_6 = arith.constant 0 : index
    %c0_7 = arith.constant 0 : index
    %18 = vector.load %arg4[%c0_6, %c0_7] : memref<256x512xbf16, #tpu.memory_space<vmem>>, vector<256x512xbf16>
    %cst_8 = arith.constant dense<0.000000e+00> : vector<32x512xf32>
    %19 = tpu.matmul %17, %18, %cst_8 {dimension_numbers = #tpu.dot_dimension_numbers<[1], [0], [0], [1], [0, 0, 1, 1], [], []>} : vector<32x256xbf16>, vector<256x512xbf16>, vector<32x512xf32> -> vector<32x512xf32>
    %c0_9 = arith.constant 0 : index
    %c0_10 = arith.constant 0 : index
    %20 = vector.load %arg5[%c0_9, %c0_10] : memref<32x512xf32, #tpu.memory_space<vmem>>, vector<32x512xf32>
    tpu.vector_store %arg5[%c0_9, %c0_10], %19 {strides = array<i32>} : memref<32x512xf32, #tpu.memory_space<vmem>>, vector<32x512xf32>,
    return
  }
  func.func @transform_0(%arg0: i32, %arg1: i32) -> (i32, i32) {
    %c0_i32 = arith.constant 0 : i32
    %c0_i32_0 = arith.constant 0 : i32
    return %arg0, %c0_i32 : i32, i32
  }
  func.func @transform_1(%arg0: i32, %arg1: i32) -> (i32, i32) {
    %c0_i32 = arith.constant 0 : i32
    %c0_i32_0 = arith.constant 0 : i32
    %c0_i32_1 = arith.constant 0 : i32
    return %c0_i32, %c0_i32_0 : i32, i32
  }
  func.func @transform_2(%arg0: i32, %arg1: i32) -> (i32, i32) {
    %c0_i32 = arith.constant 0 : i32
    %c0_i32_0 = arith.constant 0 : i32
    return %c0_i32, %arg1 : i32, i32
  }
  func.func @transform_3(%arg0: i32, %arg1: i32) -> (i32, i32) {
    %c0_i32 = arith.constant 0 : i32
    return %arg0, %arg1 : i32, i32
  }
}

</mosaic_0001>

<bundles_post_ra>
// kernel: decoder_forward.10
= control target key start
LH: loop header
LB: loop body
LE: loop exit
PB: predicated region body
PF: predicated region fallthrough
CT: control target
= control target key end

     0   :  { %s1427_s0 = inlined_call_operand.vmem [shape: bf16[32,768], index: 0, kind: input, shape index: {}, may-alias: {0,1,2}]   ;;  %s1428_s1 = inlined_call_operand.vmem [shape: bf16[32,768], index: 1, kind: input, shape index: {}, may-alias: {0,1,2}]   ;;  %s1429_s2 = inlined_call_operand.vmem [shape: bf16[32,768], index: 2, kind: input, shape index: {}, may-alias: {0,1,2}]   ;;  %s1430_s3 = inlined_call_operand.vmem [shape: bf16[32,256], index: 3, kind: output, shape index: {}]  }
   0x1   :  { %1433 = sst [smem:[#allocation9_spill]] %s1430_s3 }
   0x2   :  { %s1228_s12 = smov 0   ;;  %s1230_s13 = smov 0  }
   0x3   :  { %s1232_s14 = smov 0   ;;  %s1234_s15 = smov 0  }
   0x4   :  { %s1236_s16 = smov 0   ;;  %s1238_s17 = smov 0  }
   0x5   :  { %s1240_s18 = smov 0   ;;  %s1242_s19 = smov 0  }
   0x6   :  { %s1244_s20 = smov 0   ;;  %s1246_s21 = smov 0  }
   0x7   :  { %s1248_s22 = smov 0  }
   0x8 LB: > { %s28_s24 = sadd.s32 1, %s1196_s20  ;;  %s32_s25 = sadd.s32 1, %s1200_s21  ;;  %s1204_s22 = sphi %s1248_s22, %s13_s22   ;;  %s1200_s21 = sphi %s1246_s21, %s1455_s21   ;;  %s1196_s20 = sphi %s1244_s20, %s1454_s20   ;;  %s1192_s19 = sphi %s1242_s19, %s1453_s19   ;;  %s1188_s18 = sphi %s1240_s18, %s1452_s18   ;;  %s1184_s17 = sphi %s1238_s17, %s1451_s17   ;;  %s1180_s16 = sphi %s1236_s16, %s1450_s16   ;;  %s1176_s15 = sphi %s1234_s15, %s1449_s15   ;;  %s1172_s14 = sphi %s1232_s14, %s1448_s14   ;;  %s1168_s13 = sphi %s1230_s13, %s1447_s13   ;;  %s1164_s12 = sphi %s1228_s12, %s1446_s12  }
   0x9   : > { %p30_p0 = scmp.ge.s32.totalorder %s28_s24, 2  ;;  %s43_s26 = sadd.s32 1, %s1184_s17 }
   0xa   : > { %p50_p1 = scmp.ne.s32.totalorder %s1184_s17, %s1180_s16  ;;  %p51_p2 = scmp.eq.s32.totalorder %s1204_s22, 0 }
   0xb   : > { %s1457_s24 = smov (%p30_p0, %s28_s24), 0  ;;  %s1459_s25 = smov (!%p30_p0, %s32_s25), %s1200_s21 }
   0xc   : > { %1434 = sst [smem:[#allocation6_spill]] %s1457_s24  ;;  %s39_s27 = ssub.s32 %s1196_s20, %s1457_s24 }
   0xd   : > { %p34_p3 = scmp.ge.s32.totalorder %s1459_s25, 2  ;;  %s66_s28 = sadd.s32 2, %s1196_s20 }
   0xe   : > { %p1301_p4 = por %p51_p2, %p50_p1  ;;  %s67_s30 = sadd.s32 2, %s1457_s24 }
   0xf   : > { %s1461_s25 = smov (%p34_p3, %s1459_s25), 0  ;;  %s69_s4 = ssub.s32 %s66_s28, %s67_s30 }
  0x10   : > { %1436 = sst [smem:[#allocation7_spill]] %s1461_s25  ;;  %s73_s5 = sadd.s32 1, %s1176_s15 }
  0x11   : > { %s38_s6 = ssub.s32 %s1200_s21, %s1461_s25  ;;  %p80_p5 = scmp.ne.s32.totalorder %s1176_s15, %s1172_s14 }
  0x12   : > { %s40_s7 = sor.u32 %s39_s27, %s38_s6  ;;  %s70_s8 = sor.u32 %s69_s4, %s38_s6 }
  0x13   : > { %p41_p6 = scmp.eq.s32.totalorder %s40_s7, 0  ;;  %p71_p7 = scmp.eq.s32.totalorder %s70_s8, 0 }
  0x14   : > { %p1315_p8 = por %p80_p5, %p51_p2  ;;  %s96_s10 = sadd.s32 4, %s1196_s20 }
  0x15   : > { %s1321_s11 = scalar_select %p41_p6, %s1184_s17, %s43_s26  }
  0x16   : > { %s1324_s28 = scalar_select %p71_p7, %s1176_s15, %s73_s5  }
  0x17   : > { %1438 = sst [smem:[#allocation8_spill]] %s1321_s11  ;;  %s97_s30 = sadd.s32 4, %s1457_s24 }
  0x18   : > { %s103_s23 = sadd.s32 1, %s1168_s13  ;;  %s99_s25 = ssub.s32 %s96_s10, %s97_s30 }
  0x19   : > { %p110_p9 = scmp.ne.s32.totalorder %s1168_s13, %s1164_s12  ;;  %s100_s27 = sor.u32 %s99_s25, %s38_s6 }
  0x1a   : > { %s1439_s3 = sadd.s32 4294967295, %s1204_s22   ;;  %p101_p11 = scmp.eq.s32.totalorder %s100_s27, 0 }
  0x1b   : > { %p144_p10 = scmp.eq.s32.totalorder %s1439_s3, 3  ;;  %p1334_p12 = por %p110_p9, %p51_p2 }
  0x1c   : > { %s1346_s26 = scalar_select %p101_p11, %s1168_s13, %s103_s23  }
  0x1d   : > { %p1341_p13 = por %p144_p10, %p50_p1  ;;  %p950_p0 = scmp.ge.s32.totalorder %s1204_s22, 4 }
  0x1f   : > { %166 = sbr.rel (%p950_p0) target bundleno = 60 (0x3c), region = 16 }
  0x24   : > { %169 = sbr.rel (!%p1301_p4) target bundleno = 44 (0x2c), region = 20  ;;  %s171_s3 = sand.u32 (%p1301_p4), 1, %s1184_s17  }
  0x25   : > { %s1013_s25 = smul.u32 (%p1301_p4), 12, %s1200_s21  ;;  %s951_s5 = sshll.u32 (%p1301_p4), %s171_s3, 3 }
  0x26   : > { %s173_s23 = scalar_lea.vmem (%p1301_p4), [#allocation2], %s951_s5 }
  0x27   : > { %s177_s6 = sadd.s32 (%p1301_p4), %s1196_s20, %s1013_s25 }
  0x28   : > { %s954_s8 = sshll.u32 (%p1301_p4), %s177_s6, 2 }
  0x29   : > { %s179_s27 = scalar_lea.vmem %s1427_s0, %s954_s8 }
  0x2a   : > { %v196_v0 = vld [vmem:[%s179_s27] sm:$0xf]  ;;  %v198_v1 = vld [vmem:[%s179_s27 + $0x18] sm:$0xf] }
  0x2b   : > { %197 = vst [vmem:[%s173_s23] sm:$0xf] %v196_v0  ;;  %199 = vst [vmem:[%s173_s23 + $0x4] sm:$0xf] %v198_v1 }
  0x2c PF: > { %227 = sbr.rel (!%p1315_p8) target bundleno = 52 (0x34), region = 61  ;;  %s229_s29 = sand.u32 (%p1315_p8), 1, %s1176_s15  }
  0x2d   : > { %s818_s3 = smul.u32 (%p1315_p8), 12, %s1200_s21  ;;  %s955_s25 = sshll.u32 (%p1315_p8), %s229_s29, 3 }
  0x2e   : > { %s231_s5 = scalar_lea.vmem (%p1315_p8), [#allocation3], %s955_s25 }
  0x2f   : > { %s819_s6 = sadd.s32 (%p1315_p8), %s1196_s20, %s818_s3 }
  0x30   : > { %s956_s24 = sshll.u32 (%p1315_p8), %s819_s6, 2 }
  0x31   : > { %s821_s8 = scalar_lea.vmem %s1428_s1, %s956_s24 }
  0x32   : > { %v957_v2 = vld [vmem:[%s821_s8 + $0x8] sm:$0xf]  ;;  %v958_v3 = vld [vmem:[%s821_s8 + $0x20] sm:$0xf] }
  0x33   : > { %255 = vst [vmem:[%s231_s5] sm:$0xf] %v957_v2  ;;  %257 = vst [vmem:[%s231_s5 + $0x4] sm:$0xf] %v958_v3 }
  0x34 PF: > { %285 = sbr.rel (!%p1334_p12) target bundleno = 60 (0x3c), region = 102  ;;  %s287_s9 = sand.u32 (%p1334_p12), 1, %s1168_s13  }
  0x35   : > { %s825_s30 = smul.u32 (%p1334_p12), 12, %s1200_s21  ;;  %s959_s27 = sshll.u32 (%p1334_p12), %s287_s9, 3 }
  0x36   : > { %s289_s25 = scalar_lea.vmem (%p1334_p12), [#allocation4], %s959_s27 }
  0x37   : > { %s826_s23 = sadd.s32 (%p1334_p12), %s1196_s20, %s825_s30 }
  0x38   : > { %s960_s29 = sshll.u32 (%p1334_p12), %s826_s23, 2 }
  0x39   : > { %s828_s24 = scalar_lea.vmem %s1429_s2, %s960_s29 }
  0x3a   : > { %v961_v4 = vld [vmem:[%s828_s24 + $0x10] sm:$0xf]  ;;  %v962_v5 = vld [vmem:[%s828_s24 + $0x28] sm:$0xf] }
  0x3b   : > { %313 = vst [vmem:[%s289_s25] sm:$0xf] %v961_v4  ;;  %315 = vst [vmem:[%s289_s25 + $0x4] sm:$0xf] %v962_v5 }
  0x3c PF: > { %p963_p1 = scmp.ge.s32.totalorder %s1204_s22, 1  ;;  %p342_p2 = scmp.lt.s32.totalorder %s1204_s22, 5 }
  0x3e   : > { %p343_p3 = pnand %p963_p1, %p342_p2 }
  0x3f   : > { %s356_s4 = sand.u32 (!%p343_p3), 1, %s1172_s14   ;;  %s349_s6 = sand.u32 (!%p343_p3), 1, %s1180_s16  }
  0x40   : > { %346 = sbr.rel (%p343_p3) target bundleno = 650 (0x28a), region = 143  ;;  %s965_s10 = sshll.u32 (!%p343_p3), %s356_s4, 3 }
  0x41   : > { %s1377_s8 = sshll.u32 (!%p343_p3), %s349_s6, 3  ;;  %s358_s5 = scalar_lea.vmem (!%p343_p3), [#allocation3], %s965_s10 }
  0x42   : > { %s351_s9 = scalar_lea.vmem (!%p343_p3), [#allocation2], %s1377_s8  ;;  %s363_s14 = sand.u32 (!%p343_p3), 1, %s1164_s12  }
  0x43   : > { %s966_s16 = sshll.u32 (!%p343_p3), %s363_s14, 3  ;;  %s392_s12 = scalar_lea.vmem (!%p343_p3), [#allocation5], %s1377_s8 }
  0x44   : > { %s365_s30 = scalar_lea.vmem (!%p343_p3), [#allocation4], %s966_s16 }
  0x45   : > { %v1206_v6 = vmov 0.0   ;;  %vm1207_vm0 = vmmov 0   ;;  %v1104_v7 = vld [vmem:[%s358_s5] sm:$0xff]   ;;  %v989_v8 = vld [vmem:[%s351_s9] sm:$0xff]   ;;  %v623_v14 = vlaneseq  ;;  %vm637_vm2 = vcmask 130048   ;;  %s987_s27 = sshll.u32 (%p1341_p13), %s1192_s19, 2 }
  0x46   : > { %1001 = vmatprep.subr.bf16.mxu0 %v1206_v6  ;;  %1003 = vmatprep.mubr.msk.bf16.mxu0 %vm1207_vm0, %v1206_v6  ;;  %v990_v9 = vunpack.c.l.bf16 %v989_v8  ;;  %v991_v10 = vunpack.c.h.bf16 %v989_v8  ;;  %v1105_v26 = vld [vmem:[%s365_s30] sm:$0xff]   ;;  %s749_s23 = sadd.s32 (%p1341_p13), %s1188_s18, %s987_s27  ;;  %s1442_s24 = sld [smem:[#allocation9_spill]] (%p1341_p13) }
  0x47   : > { %1007 = vmatprep.subr.bf16.mxu1 %v1206_v6  ;;  %1009 = vmatprep.mubr.msk.bf16.mxu1 %vm1207_vm0, %v1206_v6  ;;  %v624_v15 = vshrl.u32 %v623_v14, 7  ;;  %v630_v16 = vand.u32 127, %v623_v14  ;;  %s982_s29 = sshll.u32 (%p1341_p13), %s749_s23, 2 }
  0x48   : > { %1002 = vmatpush3.bf16.xpose.msra.mxu0 %v1104_v7  ;;  %v407_v11 = vmul.f32 0.088388346, %v990_v9  ;;  %v408_v12 = vmul.f32 0.088388346, %v991_v10  ;;  %1008 = vmatpush3.bf16.msra.mxu1 %v1105_v26 }
  0x49   : > { %vm633_vm1 = vcmp.le.s32.totalorder %v630_v16, %v624_v15  ;;  %v625_v17 = vadd.s32 8, %v624_v15 }
  0x4a   : > { %v409_v13 = vpack.c.bf16 %v408_v12, %v407_v11 }
  0x4b   : > { %vm634_vm3 = vcmp.le.s32.totalorder %v630_v16, %v625_v17 }
  0x4c   : > { %s751_s25 = scalar_lea.vmem (%p1341_p13), %s1442_s24, %s982_s29 }
  0x4f   : > { %1004 = vmatmul.mubr.bf16.vlgmr.msra.gmra.mxu0 %v409_v13 }
 0x10f   : > { %v616_v18 = vpop.f32.mrf.mxu0 }
 0x110   : > { %v635_v19 = vsel %vm633_vm1, %v616_v18, -1e+30 }
 0x111   : > { %v1005_v20 = vpop.f32.mrf.mxu0  ;;  %v638_v21 = vsel %vm637_vm2, %v635_v19, -inf }
 0x112   : > { %639 = vmax.xlane.f32.xlu0 %v638_v21 }
 0x113   : > { %v619_v22 = vpop.f32.mrf.mxu0 }
 0x114   : > { %v636_v23 = vsel %vm634_vm3, %v619_v22, -1e+30 }
 0x115   : > { %v1006_v24 = vpop.f32.mrf.mxu0  ;;  %v641_v25 = vsel %vm637_vm2, %v636_v23, -inf }
 0x116   : > { %642 = vmax.xlane.f32.xlu0 %v641_v25 }
 0x19b   : > { %v640_v27 = vpop.xlane.xlu0 %639 }
 0x19c   : > { %v644_v28 = vmax.f32 %v640_v27, -1e+30 }
 0x19e   : > { %v652_v29 = vsub.f32 %v635_v19, %v644_v28  ;;  %v646_v40 = vsub.f32 -1e+30, %v644_v28 }
 0x19f   : > { %v643_v30 = vpop.xlane.xlu0 %642 }
 0x1a0   : > { %v654_v31 = vmul.f32 1.442695, %v652_v29  ;;  %v645_v32 = vmax.f32 %v643_v30, -1e+30  ;;  %v648_v42 = vmul.f32 1.442695, %v646_v40 }
 0x1a2   : > { %v653_v33 = vsub.f32 %v636_v23, %v645_v32  ;;  %1106 = vpow2.f32 %v654_v31  ;;  %v647_v41 = vsub.f32 -1e+30, %v645_v32 }
 0x1a4   : > { %v656_v34 = vmul.f32 1.442695, %v653_v33  ;;  %v650_v43 = vmul.f32 1.442695, %v647_v41 }
 0x1a6   : > { %1108 = vpow2.f32 %v656_v34 }
 0x1a7   : > { %1110 = vpow2.f32 %v648_v42 }
 0x1a8   : > { %1112 = vpow2.f32 %v650_v43 }
 0x1af   : > { %v1107_v35 = vpop.eup %1106 }
 0x1b0   : > { %v660_v36 = vsel %vm637_vm2, %v1107_v35, 0.0 }
 0x1b1   : > { %661 = vadd.xlane.f32.xlu1 %v660_v36 }
 0x1b3   : > { %v1109_v37 = vpop.eup %1108 }
 0x1b4   : > { %v663_v38 = vsel %vm637_vm2, %v1109_v37, 0.0  ;;  %v670_v39 = vpack.c.bf16 %v1109_v37, %v1107_v35  ;;  %v1111_v45 = vpop.eup %1110 }
 0x1b5   : > { %664 = vadd.xlane.f32.xlu1 %v663_v38  ;;  %v1113_v46 = vpop.eup %1112  ;;  %v658_v47 = vmul.f32 0.0, %v1111_v45 }
 0x1b6   : > { %1010 = vmatmul.mubr.msk.bf16.vlgmr.msra.gmra.mxu1 %vm637_vm2, %v670_v39  ;;  %v659_v49 = vmul.f32 0.0, %v1113_v46 }
 0x23a   : > { %v662_v44 = vpop.xlane.xlu1 %661 }
 0x23b   : > { %v666_v50 = vadd.f32 %v662_v44, %v658_v47 }
 0x23d   : > { %1114 = vrcp.f32 %v666_v50 }
 0x23e   : > { %v665_v48 = vpop.xlane.xlu1 %664 }
 0x23f   : > { %v667_v51 = vadd.f32 %v665_v48, %v659_v49 }
 0x241   : > { %1116 = vrcp.f32 %v667_v51 }
 0x24a   : > { %v1115_v56 = vpop.eup %1114 }
 0x24e   : > { %v1117_v58 = vpop.eup %1116 }
 0x276   : > { %v714_v52 = vpop.f32.mrf.mxu1 }
 0x277   : > { %v721_v54 = vadd.f32 %v714_v52, %v658_v47 }
 0x278   : > { %v1011_v53 = vpop.f32.mrf.mxu1 }
 0x279   : > { %v727_v60 = vmul.f32 %v1115_v56, %v721_v54 }
 0x27a   : > { %v717_v55 = vpop.f32.mrf.mxu1 }
 0x27b   : > { %v722_v57 = vadd.f32 %v717_v55, %v659_v49 }
 0x27c   : > { %v1012_v59 = vpop.f32.mrf.mxu1 }
 0x27d   : > { %v728_v61 = vmul.f32 %v1117_v58, %v722_v57  ;;  %745 = sbr.rel (!%p1341_p13) target bundleno = 650 (0x28a), region = 166 }
 0x27f   : > { %v995_v62 = vpack.c.bf16 %v728_v61, %v727_v60 }
 0x281   : > { %996 = vst [vmem:[%s392_s12] sm:$0xff] %v995_v62  }
 0x288   : > { %v768_v63 = vld [vmem:[%s392_s12] sm:$0xf]  ;;  %v770_v0 = vld [vmem:[%s392_s12 + $0x4] sm:$0xf] }
 0x289   : > { %769 = vst [vmem:[%s751_s25] sm:$0xf] %v768_v63  ;;  %771 = vst [vmem:[%s751_s25 + $0x8] sm:$0xf] %v770_v0 }
 0x28a PF: > { %s13_s22 = sadd.s32 1, %s1204_s22   ;;  %s1443_s18 = sld [smem:[#allocation8_spill]] }
 0x28b   : > { %p10_p4 = scmp.ge.s32.totalorder %s13_s22, 6   ;;  %s1444_s7 = sld [smem:[#allocation6_spill]] }
 0x28c   : > { %s1445_s4 = sld [smem:[#allocation7_spill]]  ;;  %s1446_s12 = smov %s1168_s13 }
 0x28d   : > { %s1447_s13 = smov %s1346_s26  ;;  %s1448_s14 = smov %s1176_s15 }
 0x28e   : > { %s1449_s15 = smov %s1324_s28  ;;  %s1450_s16 = smov %s1184_s17 }
 0x28f   : > { %s1453_s19 = smov %s1200_s21  ;;  %12 = sbr.rel (!%p10_p4) target bundleno = 8 (0x8), region = 269 }
 0x290   : > { %s1451_s17 = smov %s1443_s18  ;;  %s1452_s18 = smov %s1196_s20 }
 0x291   : > { %s1454_s20 = smov %s1444_s7 }
 0x292   : > { %s1455_s21 = smov %s1445_s4 }

// kernel: decoder_forward.9
= control target key start
LH: loop header
LB: loop body
LE: loop exit
PB: predicated region body
PF: predicated region fallthrough
CT: control target
= control target key end

     0   :  { %s1523_s15 = smov 0   ;;  %s1525_s16 = smov 0   ;;  %s1858_s0 = inlined_call_operand.vmem [shape: bf16[32,256], index: 0, kind: input, shape index: {}]   ;;  %s1859_s1 = inlined_call_operand.vmem [shape: f32[1,256], index: 1, kind: input, shape index: {}]   ;;  %s1860_s2 = inlined_call_operand.vmem [shape: bf16[256,768], index: 2, kind: input, shape index: {}]   ;;  %s1861_s3 = inlined_call_operand.vmem [shape: f32[1,768], index: 3, kind: input, shape index: {}]   ;;  %s1862_s4 = inlined_call_operand.vmem [shape: bf16[32,768], index: 4, kind: output, shape index: {}]  }
   0x1   :  { %s1527_s17 = smov 0   ;;  %s1529_s18 = smov 0  }
   0x2   :  { %s1531_s19 = smov 0  }
   0x3 LB: > { %s23_s20 = sadd.s32 1, %s1492_s18  ;;  %s1159_s21 = sadd.s32 4294967295, %s1496_s19   ;;  %s1496_s19 = sphi %s1531_s19, %s14_s19   ;;  %s1492_s18 = sphi %s1529_s18, %s1867_s18   ;;  %s1488_s17 = sphi %s1527_s17, %s1866_s17   ;;  %s1484_s16 = sphi %s1525_s16, %s1865_s16   ;;  %s1480_s15 = sphi %s1523_s15, %s1864_s15  }
   0x4   : > { %p24_p0 = scmp.ge.s32.totalorder %s23_s20, 2  ;;  %p87_p1 = scmp.ne.s32.totalorder %s1484_s16, %s1480_s15 }
   0x5   : > { %p88_p2 = scmp.eq.s32.totalorder %s1496_s19, 0  ;;  %p145_p4 = scmp.eq.s32.totalorder %s1159_s21, 1 }
   0x6   : > { %s1869_s20 = smov (%p24_p0, %s23_s20), 0  ;;  %s80_s23 = sadd.s32 1, %s1484_s16 }
   0x7   : > { %p89_p3 = por %p88_p2, %p87_p1  ;;  %s77_s22 = ssub.s32 %s1492_s18, %s1869_s20 }
   0x8   : > { %p78_p5 = scmp.eq.s32.totalorder %s77_s22, 0  ;;  %p1558_p6 = por %p145_p4, %p87_p1 }
   0x9   : > { %p1163_p7 = scmp.ge.s32.totalorder %s1496_s19, 2 }
   0xa   : > { %s1563_s25 = scalar_select %p78_p5, %s1484_s16, %s80_s23  }
   0xb   : > { %180 = sbr.rel (%p1163_p7) target bundleno = 58 (0x3a), region = 24 }
  0x10   : > { %183 = sbr.rel (!%p89_p3) target bundleno = 58 (0x3a), region = 28  ;;  %s185_s26 = sand.u32 (%p89_p3), 1, %s1484_s16  }
  0x11   : > { %s1297_s27 = smul.u32 (%p89_p3), 12, %s1492_s18 }
  0x12   : > { %s1335_s28 = smul.u32 (%p89_p3), 384, %s185_s26 }
  0x13   : > { %s1571_s5 = scalar_lea.vmem (%p89_p3), %s1860_s2, %s1297_s27 }
  0x14   : > { %v205_v0 = vld [vmem:[%s1571_s5] sm:$0xff] (%p89_p3)  ;;  %v207_v1 = vld [vmem:[%s1571_s5 + $0x18] sm:$0xff] (%p89_p3)  ;;  %v209_v2 = vld [vmem:[%s1571_s5 + $0x30] sm:$0xff] (%p89_p3)  ;;  %s1576_s6 = scalar_lea.vmem (%p89_p3), [#allocation2], %s1335_s28 }
  0x15   : > { %206 = vst [vmem:[%s1576_s6] sm:$0xff] %v205_v0  ;;  %208 = vst [vmem:[%s1576_s6 + $0xc] sm:$0xff] %v207_v1  ;;  %v211_v3 = vld [vmem:[%s1571_s5 + $0x48] sm:$0xff]  ;;  %v213_v4 = vld [vmem:[%s1571_s5 + $0x60] sm:$0xff] }
  0x16   : > { %210 = vst [vmem:[%s1576_s6 + $0x18] sm:$0xff] %v209_v2  ;;  %v215_v5 = vld [vmem:[%s1571_s5 + $0x78] sm:$0xff]  ;;  %212 = vst [vmem:[%s1576_s6 + $0x24] sm:$0xff] %v211_v3  ;;  %v217_v6 = vld [vmem:[%s1571_s5 + $0x90] sm:$0xff] }
  0x17   : > { %214 = vst [vmem:[%s1576_s6 + $0x30] sm:$0xff] %v213_v4  ;;  %216 = vst [vmem:[%s1576_s6 + $0x3c] sm:$0xff] %v215_v5  ;;  %v219_v7 = vld [vmem:[%s1571_s5 + $0xa8] sm:$0xff]  ;;  %v221_v8 = vld [vmem:[%s1571_s5 + $0xc0] sm:$0xff] }
  0x18   : > { %218 = vst [vmem:[%s1576_s6 + $0x48] sm:$0xff] %v217_v6  ;;  %220 = vst [vmem:[%s1576_s6 + $0x54] sm:$0xff] %v219_v7  ;;  %v223_v9 = vld [vmem:[%s1571_s5 + $0xd8] sm:$0xff]  ;;  %v225_v10 = vld [vmem:[%s1571_s5 + $0xf0] sm:$0xff] }
  0x19   : > { %222 = vst [vmem:[%s1576_s6 + $0x60] sm:$0xff] %v221_v8  ;;  %v227_v11 = vld [vmem:[%s1571_s5 + $0x108] sm:$0xff]  ;;  %224 = vst [vmem:[%s1576_s6 + $0x6c] sm:$0xff] %v223_v9  ;;  %v229_v12 = vld [vmem:[%s1571_s5 + $0x120] sm:$0xff] }
  0x1a   : > { %226 = vst [vmem:[%s1576_s6 + $0x78] sm:$0xff] %v225_v10  ;;  %228 = vst [vmem:[%s1576_s6 + $0x84] sm:$0xff] %v227_v11  ;;  %v231_v13 = vld [vmem:[%s1571_s5 + $0x138] sm:$0xff]  ;;  %v233_v14 = vld [vmem:[%s1571_s5 + $0x150] sm:$0xff] }
  0x1b   : > { %230 = vst [vmem:[%s1576_s6 + $0x90] sm:$0xff] %v229_v12  ;;  %232 = vst [vmem:[%s1576_s6 + $0x9c] sm:$0xff] %v231_v13  ;;  %v235_v15 = vld [vmem:[%s1571_s5 + $0x168] sm:$0xff]  ;;  %v237_v16 = vld [vmem:[%s1571_s5 + $0x180] sm:$0xff] }
  0x1c   : > { %234 = vst [vmem:[%s1576_s6 + $0xa8] sm:$0xff] %v233_v14  ;;  %v239_v17 = vld [vmem:[%s1571_s5 + $0x198] sm:$0xff]  ;;  %236 = vst [vmem:[%s1576_s6 + $0xb4] sm:$0xff] %v235_v15  ;;  %v241_v18 = vld [vmem:[%s1571_s5 + $0x1b0] sm:$0xff] }
  0x1d   : > { %238 = vst [vmem:[%s1576_s6 + $0xc0] sm:$0xff] %v237_v16  ;;  %240 = vst [vmem:[%s1576_s6 + $0xcc] sm:$0xff] %v239_v17  ;;  %v243_v19 = vld [vmem:[%s1571_s5 + $0x1c8] sm:$0xff]  ;;  %v245_v20 = vld [vmem:[%s1571_s5 + $0x1e0] sm:$0xff] }
  0x1e   : > { %242 = vst [vmem:[%s1576_s6 + $0xd8] sm:$0xff] %v241_v18  ;;  %244 = vst [vmem:[%s1576_s6 + $0xe4] sm:$0xff] %v243_v19  ;;  %v247_v21 = vld [vmem:[%s1571_s5 + $0x1f8] sm:$0xff]  ;;  %v249_v22 = vld [vmem:[%s1571_s5 + $0x210] sm:$0xff] }
  0x1f   : > { %246 = vst [vmem:[%s1576_s6 + $0xf0] sm:$0xff] %v245_v20  ;;  %v251_v23 = vld [vmem:[%s1571_s5 + $0x228] sm:$0xff]  ;;  %248 = vst [vmem:[%s1576_s6 + $0xfc] sm:$0xff] %v247_v21  ;;  %v253_v24 = vld [vmem:[%s1571_s5 + $0x240] sm:$0xff] }
  0x20   : > { %250 = vst [vmem:[%s1576_s6 + $0x108] sm:$0xff] %v249_v22  ;;  %252 = vst [vmem:[%s1576_s6 + $0x114] sm:$0xff] %v251_v23  ;;  %v255_v25 = vld [vmem:[%s1571_s5 + $0x258] sm:$0xff]  ;;  %v257_v26 = vld [vmem:[%s1571_s5 + $0x270] sm:$0xff] }
  0x21   : > { %254 = vst [vmem:[%s1576_s6 + $0x120] sm:$0xff] %v253_v24  ;;  %256 = vst [vmem:[%s1576_s6 + $0x12c] sm:$0xff] %v255_v25  ;;  %v259_v27 = vld [vmem:[%s1571_s5 + $0x288] sm:$0xff]  ;;  %v261_v28 = vld [vmem:[%s1571_s5 + $0x2a0] sm:$0xff] }
  0x22   : > { %258 = vst [vmem:[%s1576_s6 + $0x138] sm:$0xff] %v257_v26  ;;  %v263_v29 = vld [vmem:[%s1571_s5 + $0x2b8] sm:$0xff]  ;;  %260 = vst [vmem:[%s1576_s6 + $0x144] sm:$0xff] %v259_v27  ;;  %v265_v30 = vld [vmem:[%s1571_s5 + $0x2d0] sm:$0xff] }
  0x23   : > { %262 = vst [vmem:[%s1576_s6 + $0x150] sm:$0xff] %v261_v28  ;;  %264 = vst [vmem:[%s1576_s6 + $0x15c] sm:$0xff] %v263_v29  ;;  %v267_v31 = vld [vmem:[%s1571_s5 + $0x2e8] sm:$0xff]  ;;  %v1167_v33 = vld [vmem:[%s1571_s5 + $0x20] sm:$0xf] }
  0x24   : > { %v1165_v32 = vld [vmem:[%s1571_s5 + $0x8] sm:$0xf]  ;;  %266 = vst [vmem:[%s1576_s6 + $0x168] sm:$0xff] %v265_v30  ;;  %268 = vst [vmem:[%s1576_s6 + $0x174] sm:$0xff] %v267_v31  ;;  %v1169_v34 = vld [vmem:[%s1571_s5 + $0x38] sm:$0xf] }
  0x25   : > { %1166 = vst [vmem:[%s1576_s6 + $0x8] sm:$0xf] %v1165_v32  ;;  %v1171_v35 = vld [vmem:[%s1571_s5 + $0x50] sm:$0xf]  ;;  %1168 = vst [vmem:[%s1576_s6 + $0x14] sm:$0xf] %v1167_v33 }
  0x26   : > { %1170 = vst [vmem:[%s1576_s6 + $0x20] sm:$0xf] %v1169_v34  ;;  %1172 = vst [vmem:[%s1576_s6 + $0x2c] sm:$0xf] %v1171_v35  ;;  %v1173_v36 = vld [vmem:[%s1571_s5 + $0x68] sm:$0xf] }
  0x27   : > { %v1175_v37 = vld [vmem:[%s1571_s5 + $0x80] sm:$0xf]  ;;  %v1177_v38 = vld [vmem:[%s1571_s5 + $0x98] sm:$0xf]  ;;  %1174 = vst [vmem:[%s1576_s6 + $0x38] sm:$0xf] %v1173_v36 }
  0x28   : > { %1176 = vst [vmem:[%s1576_s6 + $0x44] sm:$0xf] %v1175_v37  ;;  %1178 = vst [vmem:[%s1576_s6 + $0x50] sm:$0xf] %v1177_v38  ;;  %v1179_v39 = vld [vmem:[%s1571_s5 + $0xb0] sm:$0xf] }
  0x29   : > { %v1181_v40 = vld [vmem:[%s1571_s5 + $0xc8] sm:$0xf]  ;;  %v1183_v41 = vld [vmem:[%s1571_s5 + $0xe0] sm:$0xf]  ;;  %1180 = vst [vmem:[%s1576_s6 + $0x5c] sm:$0xf] %v1179_v39 }
  0x2a   : > { %1182 = vst [vmem:[%s1576_s6 + $0x68] sm:$0xf] %v1181_v40  ;;  %1184 = vst [vmem:[%s1576_s6 + $0x74] sm:$0xf] %v1183_v41  ;;  %v1185_v42 = vld [vmem:[%s1571_s5 + $0xf8] sm:$0xf] }
  0x2b   : > { %v1187_v43 = vld [vmem:[%s1571_s5 + $0x110] sm:$0xf]  ;;  %v1189_v44 = vld [vmem:[%s1571_s5 + $0x128] sm:$0xf]  ;;  %1186 = vst [vmem:[%s1576_s6 + $0x80] sm:$0xf] %v1185_v42 }
  0x2c   : > { %1188 = vst [vmem:[%s1576_s6 + $0x8c] sm:$0xf] %v1187_v43  ;;  %1190 = vst [vmem:[%s1576_s6 + $0x98] sm:$0xf] %v1189_v44  ;;  %v1191_v45 = vld [vmem:[%s1571_s5 + $0x140] sm:$0xf] }
  0x2d   : > { %v1193_v46 = vld [vmem:[%s1571_s5 + $0x158] sm:$0xf]  ;;  %v1195_v47 = vld [vmem:[%s1571_s5 + $0x170] sm:$0xf]  ;;  %1192 = vst [vmem:[%s1576_s6 + $0xa4] sm:$0xf] %v1191_v45 }
  0x2e   : > { %1194 = vst [vmem:[%s1576_s6 + $0xb0] sm:$0xf] %v1193_v46  ;;  %1196 = vst [vmem:[%s1576_s6 + $0xbc] sm:$0xf] %v1195_v47  ;;  %v1197_v48 = vld [vmem:[%s1571_s5 + $0x188] sm:$0xf] }
  0x2f   : > { %v1199_v49 = vld [vmem:[%s1571_s5 + $0x1a0] sm:$0xf]  ;;  %v1201_v50 = vld [vmem:[%s1571_s5 + $0x1b8] sm:$0xf]  ;;  %1198 = vst [vmem:[%s1576_s6 + $0xc8] sm:$0xf] %v1197_v48 }
  0x30   : > { %1200 = vst [vmem:[%s1576_s6 + $0xd4] sm:$0xf] %v1199_v49  ;;  %1202 = vst [vmem:[%s1576_s6 + $0xe0] sm:$0xf] %v1201_v50  ;;  %v1203_v51 = vld [vmem:[%s1571_s5 + $0x1d0] sm:$0xf] }
  0x31   : > { %v1205_v52 = vld [vmem:[%s1571_s5 + $0x1e8] sm:$0xf]  ;;  %v1207_v53 = vld [vmem:[%s1571_s5 + $0x200] sm:$0xf]  ;;  %1204 = vst [vmem:[%s1576_s6 + $0xec] sm:$0xf] %v1203_v51 }
  0x32   : > { %1206 = vst [vmem:[%s1576_s6 + $0xf8] sm:$0xf] %v1205_v52  ;;  %1208 = vst [vmem:[%s1576_s6 + $0x104] sm:$0xf] %v1207_v53  ;;  %v1209_v54 = vld [vmem:[%s1571_s5 + $0x218] sm:$0xf] }
  0x33   : > { %v1211_v55 = vld [vmem:[%s1571_s5 + $0x230] sm:$0xf]  ;;  %v1213_v56 = vld [vmem:[%s1571_s5 + $0x248] sm:$0xf]  ;;  %1210 = vst [vmem:[%s1576_s6 + $0x110] sm:$0xf] %v1209_v54 }
  0x34   : > { %1212 = vst [vmem:[%s1576_s6 + $0x11c] sm:$0xf] %v1211_v55  ;;  %1214 = vst [vmem:[%s1576_s6 + $0x128] sm:$0xf] %v1213_v56  ;;  %v1215_v57 = vld [vmem:[%s1571_s5 + $0x260] sm:$0xf] }
  0x35   : > { %v1217_v58 = vld [vmem:[%s1571_s5 + $0x278] sm:$0xf]  ;;  %v1219_v59 = vld [vmem:[%s1571_s5 + $0x290] sm:$0xf]  ;;  %1216 = vst [vmem:[%s1576_s6 + $0x134] sm:$0xf] %v1215_v57 }
  0x36   : > { %1218 = vst [vmem:[%s1576_s6 + $0x140] sm:$0xf] %v1217_v58  ;;  %1220 = vst [vmem:[%s1576_s6 + $0x14c] sm:$0xf] %v1219_v59  ;;  %v1221_v60 = vld [vmem:[%s1571_s5 + $0x2a8] sm:$0xf] }
  0x37   : > { %v1223_v61 = vld [vmem:[%s1571_s5 + $0x2c0] sm:$0xf]  ;;  %v1225_v62 = vld [vmem:[%s1571_s5 + $0x2d8] sm:$0xf]  ;;  %1222 = vst [vmem:[%s1576_s6 + $0x158] sm:$0xf] %v1221_v60 }
  0x38   : > { %1224 = vst [vmem:[%s1576_s6 + $0x164] sm:$0xf] %v1223_v61  ;;  %1226 = vst [vmem:[%s1576_s6 + $0x170] sm:$0xf] %v1225_v62  ;;  %v1227_v63 = vld [vmem:[%s1571_s5 + $0x2f0] sm:$0xf] }
  0x39   : > { %1228 = vst [vmem:[%s1576_s6 + $0x17c] sm:$0xf] %v1227_v63 }
  0x3a PF: > { %p1229_p8 = scmp.ge.s32.totalorder %s1496_s19, 1  ;;  %p353_p9 = scmp.lt.s32.totalorder %s1496_s19, 3 }
  0x3c   : > { %p354_p10 = pnand %p1229_p8, %p353_p9 }
  0x3d   : > { %s360_s13 = sand.u32 (!%p354_p10), 1, %s1480_s15   ;;  %s402_s28 = smul.u32 (!%p354_p10), 3, %s1488_s17 }
  0x3e   : > { %357 = sbr.rel (%p354_p10) target bundleno = 482 (0x1e2), region = 58 }
  0x3f   : > { %s1336_s22 = smul.u32 (!%p354_p10), 384, %s360_s13  ;;  %p403_p11 = scmp.lt.s32.totalorder (!%p354_p10), %s402_s28, 5 }
  0x40   : > { %s1337_s6 = smul.u32 (!%p354_p10), 48, %s360_s13 }
  0x41   : > { %s1752_s23 = scalar_lea.vmem (!%p354_p10), [#allocation2], %s1336_s22 }
  0x42   : > { %s1819_s7 = scalar_lea.vmem (!%p354_p10), [#allocation3], %s1337_s6 }
  0x43   : > { %v412_v0 = vld [vmem:[%s1858_s0 + $0x10] sm:$0xff]  ;;  %v410_v1 = vld [vmem:[%s1858_s0] sm:$0xff]  ;;  %v413_v2 = vld [vmem:[%s1858_s0 + $0x18] sm:$0xff]  ;;  %s1871_s28 = smov (!%p403_p11, %s402_s28), 5  ;;  %s1306_s15 = smul.u32 (%p1558_p6), 12, %s1488_s17 }
  0x44   : > { %v1715_v3 = vunpack.c.l.bf16 %v412_v0  ;;  %v1717_v4 = vunpack.c.h.bf16 %v412_v0  ;;  %v1719_v5 = vunpack.c.l.bf16 %v410_v1  ;;  %v1721_v6 = vunpack.c.h.bf16 %v410_v1  ;;  %v411_v7 = vld [vmem:[%s1858_s0 + $0x8] sm:$0xff]  ;;  %v1381_v24 = vld [vmem:[%s1752_s23 + $0x94] ss:$12 sps:$4 sm:$0xff]   ;;  %v1383_v27 = vld [vmem:[%s1752_s23 + $0x90] ss:$12 sps:$4 sm:$0xff]   ;;  %s405_s5 = scalar_lea.vmem %s1861_s3, %s1871_s28 }
  0x45   : > { %v1728_v8 = vunpack.c.l.bf16 %v413_v2  ;;  %v1730_v9 = vunpack.c.h.bf16 %v413_v2  ;;  %v1732_v10 = vunpack.c.l.bf16 %v411_v7  ;;  %v1734_v11 = vunpack.c.h.bf16 %v411_v7  ;;  %v1378_v20 = vld [vmem:[%s1752_s23 + $0xac] ss:$12 sps:$4 sm:$0xff]   ;;  %v1380_v23 = vld [vmem:[%s1752_s23 + $0xa8] ss:$12 sps:$4 sm:$0xff]   ;;  %v1387_v30 = vld [vmem:[%s1752_s23 + $0x64] ss:$12 sps:$4 sm:$0xff]   ;;  %s1017_s24 = scalar_lea.vmem (%p1558_p6), %s1862_s4, %s1306_s15 }
  0x46   : > { %v427_v12 = vmul.f32 %v1715_v3, %v1715_v3  ;;  %v428_v13 = vmul.f32 %v1717_v4, %v1717_v4  ;;  %v423_v14 = vmul.f32 %v1719_v5, %v1719_v5  ;;  %v424_v15 = vmul.f32 %v1721_v6, %v1721_v6  ;;  %855 = vmatprep.subr.bf16.mxu0 %v1378_v20  ;;  %v1384_v28 = vld [vmem:[%s1752_s23 + $0x7c] ss:$12 sps:$4 sm:$0xff]   ;;  %v1386_v29 = vld [vmem:[%s1752_s23 + $0x78] ss:$12 sps:$4 sm:$0xff]   ;;  %v1389_v31 = vld [vmem:[%s1752_s23 + $0x60] ss:$12 sps:$4 sm:$0xff]  }
  0x47   : > { %v429_v16 = vmul.f32 %v1728_v8, %v1728_v8  ;;  %v430_v17 = vmul.f32 %v1730_v9, %v1730_v9  ;;  %v425_v18 = vmul.f32 %v1732_v10, %v1732_v10  ;;  %v426_v19 = vmul.f32 %v1734_v11, %v1734_v11  ;;  %856 = vmatpush1.bf16.msra.mxu0 %v1380_v23  ;;  %v1390_v32 = vld [vmem:[%s1752_s23 + $0x4c] ss:$12 sps:$4 sm:$0xff]   ;;  %v1392_v33 = vld [vmem:[%s1752_s23 + $0x48] ss:$12 sps:$4 sm:$0xff]   ;;  %v1395_v35 = vld [vmem:[%s1752_s23 + $0x30] ss:$12 sps:$4 sm:$0xff]  }
  0x48   : > { %v437_v21 = vadd.f32 %v428_v13, %v427_v12  ;;  %v431_v22 = vadd.f32 %v424_v15, %v423_v14  ;;  %857 = vmatprep.subr.bf16.mxu0 %v1381_v24  ;;  %v1393_v34 = vld [vmem:[%s1752_s23 + $0x34] ss:$12 sps:$4 sm:$0xff]   ;;  %v1396_v36 = vld [vmem:[%s1752_s23 + $0x1c] ss:$12 sps:$4 sm:$0xff]   ;;  %v1398_v37 = vld [vmem:[%s1752_s23 + $0x18] ss:$12 sps:$4 sm:$0xff]  }
  0x49   : > { %v440_v25 = vadd.f32 %v430_v17, %v429_v16  ;;  %v434_v26 = vadd.f32 %v426_v19, %v425_v18  ;;  %v1399_v38 = vld [vmem:[%s1752_s23 + $0x4] ss:$12 sps:$4 sm:$0xff]   ;;  %v1401_v40 = vld [vmem:[%s1752_s23] ss:$12 sps:$4 sm:$0xff]   ;;  %v1405_v44 = vld [vmem:[%s1752_s23 + $0x168] ss:$12 sps:$4 sm:$0xff]  }
  0x4a   : > { %438 = vadd.xlane.f32.xlu1 %v437_v21  ;;  %432 = vadd.xlane.f32.xlu0 %v431_v22  ;;  %v1404_v39 = vld [vmem:[%s1752_s23 + $0x170] ss:$12 sps:$4 sm:$0xff]   ;;  %v1402_v42 = vld [vmem:[%s1752_s23 + $0x16c] ss:$12 sps:$4 sm:$0xff]   ;;  %v1407_v46 = vld [vmem:[%s1752_s23 + $0x154] ss:$12 sps:$4 sm:$0xff]  }
  0x4b   : > { %858 = vmatpush1.bf16.msra.mxu0 %v1383_v27  ;;  %v1406_v41 = vld [vmem:[%s1752_s23 + $0xb0] ss:$12 sps:$4 sm:$0xff]   ;;  %1307 = vmatprep.subr.bf16.mxu1 %v1404_v39  ;;  %v1409_v43 = vld [vmem:[%s1752_s23 + $0x158] ss:$12 sps:$4 sm:$0xff]   ;;  %v1414_v47 = vld [vmem:[%s1752_s23 + $0x140] ss:$12 sps:$4 sm:$0xff]  }
  0x4c   : > { %859 = vmatprep.subr.bf16.mxu0 %v1384_v28  ;;  %1308 = vmatpush3.bf16.msra.mxu1 %v1406_v41  ;;  %v1411_v45 = vld [vmem:[%s1752_s23 + $0x98] ss:$12 sps:$4 sm:$0xff]   ;;  %v1410_v48 = vld [vmem:[%s1752_s23 + $0x150] ss:$12 sps:$4 sm:$0xff]   ;;  %v1416_v49 = vld [vmem:[%s1752_s23 + $0x80] ss:$12 sps:$4 sm:$0xff]  }
  0x4d   : > { %1309 = vmatprep.subr.bf16.mxu1 %v1409_v43  ;;  %v1412_v50 = vld [vmem:[%s1752_s23 + $0x13c] ss:$12 sps:$4 sm:$0xff]   ;;  %v1415_v52 = vld [vmem:[%s1752_s23 + $0x138] ss:$12 sps:$4 sm:$0xff]   ;;  %v1420_v58 = vld [vmem:[%s1752_s23 + $0x120] ss:$12 sps:$4 sm:$0xff]  }
  0x4e   : > { %441 = vadd.xlane.f32.xlu1 %v440_v25  ;;  %435 = vadd.xlane.f32.xlu0 %v434_v26  ;;  %v1419_v51 = vld [vmem:[%s1752_s23 + $0x128] ss:$12 sps:$4 sm:$0xff]   ;;  %v1417_v54 = vld [vmem:[%s1752_s23 + $0x124] ss:$12 sps:$4 sm:$0xff]   ;;  %v1422_v59 = vld [vmem:[%s1752_s23 + $0x10c] ss:$12 sps:$4 sm:$0xff]  }
  0x4f   : > { %860 = vmatpush1.bf16.msra.mxu0 %v1386_v29  ;;  %v1421_v53 = vld [vmem:[%s1752_s23 + $0x68] ss:$12 sps:$4 sm:$0xff]   ;;  %v1424_v55 = vld [vmem:[%s1752_s23 + $0x110] ss:$12 sps:$4 sm:$0xff]   ;;  %v1429_v57 = vld [vmem:[%s1752_s23 + $0xf8] ss:$12 sps:$4 sm:$0xff]  }
  0x50   : > { %861 = vmatprep.subr.bf16.mxu0 %v1387_v30  ;;  %1310 = vmatpush3.bf16.msra.mxu1 %v1411_v45  ;;  %v1426_v56 = vld [vmem:[%s1752_s23 + $0x50] ss:$12 sps:$4 sm:$0xff]   ;;  %v1431_v60 = vld [vmem:[%s1752_s23 + $0x38] ss:$12 sps:$4 sm:$0xff]   ;;  %v1434_v61 = vld [vmem:[%s1752_s23 + $0xe0] ss:$12 sps:$4 sm:$0xff]  }
  0x51   : > { %1311 = vmatprep.subr.bf16.mxu1 %v1414_v47  ;;  %v1425_v62 = vld [vmem:[%s1752_s23 + $0x108] ss:$12 sps:$4 sm:$0xff]   ;;  %v1436_v0 = vld [vmem:[%s1752_s23 + $0x20] ss:$12 sps:$4 sm:$0xff]   ;;  %v1430_v2 = vld [vmem:[%s1752_s23 + $0xf0] ss:$12 sps:$4 sm:$0xff]  }
  0x52   : > { %v1427_v63 = vld [vmem:[%s1752_s23 + $0xf4] ss:$12 sps:$4 sm:$0xff]   ;;  %v1432_v7 = vld [vmem:[%s1752_s23 + $0xdc] ss:$12 sps:$4 sm:$0xff]   ;;  %v1435_v13 = vld [vmem:[%s1752_s23 + $0xd8] ss:$12 sps:$4 sm:$0xff]  }
  0x53   : > { %862 = vmatpush1.bf16.msra.mxu0 %v1389_v31  ;;  %v1439_v1 = vld [vmem:[%s1752_s23 + $0xc8] ss:$12 sps:$4 sm:$0xff]   ;;  %v1437_v14 = vld [vmem:[%s1752_s23 + $0xc4] ss:$12 sps:$4 sm:$0xff]   ;;  %v1440_v15 = vld [vmem:[%s1752_s23 + $0xc0] ss:$12 sps:$4 sm:$0xff]  }
  0x54   : > { %863 = vmatprep.subr.bf16.mxu0 %v1390_v32  ;;  %1312 = vmatpush3.bf16.msra.mxu1 %v1416_v49  ;;  %v1441_v12 = vld [vmem:[%s1752_s23 + $0x8] ss:$12 sps:$4 sm:$0xff]  }
  0x55   : > { %1313 = vmatprep.subr.bf16.mxu1 %v1419_v51  ;;  %v422_v51 = vld [vmem:[%s1859_s1] sm:$0x3] }
  0x57   : > { %864 = vmatpush1.bf16.msra.mxu0 %v1392_v33 }
  0x58   : > { %865 = vmatprep.subr.bf16.mxu0 %v1393_v34  ;;  %1314 = vmatpush3.bf16.msra.mxu1 %v1421_v53 }
  0x59   : > { %1315 = vmatprep.subr.bf16.mxu1 %v1424_v55 }
  0x5b   : > { %866 = vmatpush1.bf16.msra.mxu0 %v1395_v35 }
  0x5c   : > { %867 = vmatprep.subr.bf16.mxu0 %v1396_v36  ;;  %1316 = vmatpush3.bf16.msra.mxu1 %v1426_v56 }
  0x5d   : > { %1317 = vmatprep.subr.bf16.mxu1 %v1429_v57 }
  0x5f   : > { %868 = vmatpush1.bf16.msra.mxu0 %v1398_v37 }
  0x60   : > { %869 = vmatprep.subr.bf16.mxu0 %v1399_v38  ;;  %1318 = vmatpush3.bf16.msra.mxu1 %v1431_v60 }
  0x61   : > { %1319 = vmatprep.subr.bf16.mxu1 %v1434_v61 }
  0x63   : > { %870 = vmatpush1.bf16.msra.mxu0 %v1401_v40 }
  0x64   : > { %871 = vmatprep.subr.bf16.mxu0 %v1402_v42  ;;  %1320 = vmatpush3.bf16.msra.mxu1 %v1436_v0 }
  0x65   : > { %1321 = vmatprep.subr.bf16.mxu1 %v1439_v1 }
  0x67   : > { %872 = vmatpush2.bf16.msra.mxu0 %v1405_v44 }
  0x68   : > { %873 = vmatprep.subr.bf16.mxu0 %v1407_v46  ;;  %1322 = vmatpush3.bf16.msra.mxu1 %v1441_v12 }
  0x6b   : > { %874 = vmatpush2.bf16.msra.mxu0 %v1410_v48  ;;  %v496_v48 = vlaneseq }
  0x6c   : > { %875 = vmatprep.subr.bf16.mxu0 %v1412_v50 }
  0x6d   : > { %v497_v49 = vshrl.u32 %v496_v48, 7 }
  0x6f   : > { %876 = vmatpush2.bf16.msra.mxu0 %v1415_v52  ;;  %v502_v50 = vsub.s32 1, %v497_v49  ;;  %v498_v52 = vsub.s32 0, %v497_v49 }
  0x70   : > { %877 = vmatprep.subr.bf16.mxu0 %v1417_v54 }
  0x71   : > { %v503_v56 = vrot.slane %v422_v51, %v502_v50 }
  0x73   : > { %878 = vmatpush2.bf16.msra.mxu0 %v1420_v58  ;;  %v499_v58 = vrot.slane %v422_v51, %v498_v52 }
  0x74   : > { %879 = vmatprep.subr.bf16.mxu0 %v1422_v59 }
  0x77   : > { %880 = vmatpush2.bf16.msra.mxu0 %v1425_v62 }
  0x78   : > { %881 = vmatprep.subr.bf16.mxu0 %v1427_v63 }
  0x7b   : > { %882 = vmatpush2.bf16.msra.mxu0 %v1430_v2 }
  0x7c   : > { %883 = vmatprep.subr.bf16.mxu0 %v1432_v7 }
  0x7f   : > { %884 = vmatpush2.bf16.msra.mxu0 %v1435_v13 }
  0x80   : > { %885 = vmatprep.subr.bf16.mxu0 %v1437_v14 }
  0x83   : > { %886 = vmatpush2.bf16.msra.mxu0 %v1440_v15 }
  0xd3   : > { %v439_v16 = vpop.xlane.xlu1 %438  ;;  %v433_v17 = vpop.xlane.xlu0 %432 }
  0xd4   : > { %1442 = vrsqrt.f32 %v439_v16  ;;  %vm459_vm0 = vcmp.eq.f32.partialorder %v439_v16, inf  ;;  %v462_v23 = vand.u32 2147483648, %v439_v16  ;;  %vm461_vm1 = vcmp.eq.f32.partialorder %v439_v16, 0.0 }
  0xd5   : > { %1444 = vrsqrt.f32 %v433_v17  ;;  %vm445_vm2 = vcmp.eq.f32.partialorder %v433_v17, inf  ;;  %v448_v26 = vand.u32 2147483648, %v433_v17  ;;  %vm447_vm3 = vcmp.eq.f32.partialorder %v433_v17, 0.0 }
  0xd7   : > { %v442_v18 = vpop.xlane.xlu1 %441  ;;  %v436_v19 = vpop.xlane.xlu0 %435 }
  0xd8   : > { %1446 = vrsqrt.f32 %v442_v18  ;;  %vm466_vm4 = vcmp.eq.f32.partialorder %v442_v18, inf  ;;  %vm468_vm5 = vcmp.eq.f32.partialorder %v442_v18, 0.0  ;;  %v469_v35 = vand.u32 2147483648, %v442_v18 }
  0xd9   : > { %1448 = vrsqrt.f32 %v436_v19  ;;  %vm452_vm6 = vcmp.eq.f32.partialorder %v436_v19, inf  ;;  %vm454_vm7 = vcmp.eq.f32.partialorder %v436_v19, 0.0  ;;  %v455_v38 = vand.u32 2147483648, %v436_v19 }
  0xe1   : > { %v1443_v20 = vpop.eup %1442 }
  0xe2   : > { %v1445_v21 = vpop.eup %1444  ;;  %v458_v22 = vmul.f32 %v1443_v20, %v439_v16 }
  0xe3   : > { %v444_v24 = vmul.f32 %v1445_v21, %v433_v17 }
  0xe4   : > { %v460_v25 = vsel %vm459_vm0, %v439_v16, %v458_v22 }
  0xe5   : > { %v1447_v27 = vpop.eup %1446  ;;  %v463_v28 = vsel %vm461_vm1, %v462_v23, %v460_v25  ;;  %v446_v29 = vsel %vm445_vm2, %v433_v17, %v444_v24  ;;  %v594_v17 = vsub.s32 2, %v497_v49 }
  0xe6   : > { %v1449_v30 = vpop.eup %1448  ;;  %v473_v31 = vmul.f32 0.0625, %v463_v28  ;;  %v449_v32 = vsel %vm447_vm3, %v448_v26, %v446_v29  ;;  %v465_v33 = vmul.f32 %v1447_v27, %v442_v18 }
  0xe7   : > { %v471_v34 = vmul.f32 0.0625, %v449_v32  ;;  %v451_v36 = vmul.f32 %v1449_v30, %v436_v19 }
  0xe8   : > { %v467_v37 = vsel %vm466_vm4, %v442_v18, %v465_v33  ;;  %v477_v39 = vadd.f32 1e-08, %v473_v31 }
  0xe9   : > { %v475_v40 = vadd.f32 1e-08, %v471_v34  ;;  %v470_v41 = vsel %vm468_vm5, %v469_v35, %v467_v37  ;;  %v453_v42 = vsel %vm452_vm6, %v436_v19, %v451_v36 }
  0xea   : > { %v474_v43 = vmul.f32 0.0625, %v470_v41  ;;  %v456_v44 = vsel %vm454_vm7, %v455_v38, %v453_v42 }
  0xeb   : > { %1450 = vrcp.f32 %v475_v40  ;;  %v472_v45 = vmul.f32 0.0625, %v456_v44 }
  0xec   : > { %v478_v46 = vadd.f32 1e-08, %v474_v43  ;;  %1452 = vrcp.f32 %v477_v39 }
  0xed   : > { %v476_v47 = vadd.f32 1e-08, %v472_v45 }
  0xee   : > { %1454 = vrcp.f32 %v478_v46 }
  0xef   : > { %1456 = vrcp.f32 %v476_v47 }
  0xf8   : > { %v1451_v53 = vpop.eup %1450 }
  0xf9   : > { %v1453_v54 = vpop.eup %1452  ;;  %v488_v55 = vmul.f32 %v1451_v53, %v1721_v6  ;;  %v487_v59 = vmul.f32 %v1451_v53, %v1719_v5 }
  0xfa   : > { %v492_v0 = vmul.f32 %v1453_v54, %v1717_v4 }
  0xfb   : > { %v1455_v57 = vpop.eup %1454  ;;  %v507_v1 = vmul.f32 %v503_v56, %v488_v55  ;;  %v506_v7 = vmul.f32 %v499_v58, %v487_v59 }
  0xfc   : > { %v1457_v60 = vpop.eup %1456  ;;  %v494_v61 = vmul.f32 %v1455_v57, %v1730_v9  ;;  %v511_v15 = vmul.f32 %v503_v56, %v492_v0  ;;  %v493_v5 = vmul.f32 %v1455_v57, %v1728_v8  ;;  %v582_v8 = vld [vmem:[%s405_s5] sm:$0x7] }
  0xfd   : > { %v490_v62 = vmul.f32 %v1457_v60, %v1734_v11  ;;  %v489_v63 = vmul.f32 %v1457_v60, %v1732_v10  ;;  %v491_v10 = vmul.f32 %v1453_v54, %v1715_v3  ;;  %v587_v18 = vrot.slane %v582_v8, %v498_v52 }
  0xfe   : > { %v513_v13 = vmul.f32 %v503_v56, %v494_v61  ;;  %v512_v4 = vmul.f32 %v499_v58, %v493_v5  ;;  %v591_v19 = vrot.slane %v582_v8, %v502_v50  ;;  %v595_v21 = vrot.slane %v582_v8, %v594_v17 }
  0xff   : > { %v509_v2 = vmul.f32 %v503_v56, %v490_v62  ;;  %v508_v12 = vmul.f32 %v499_v58, %v489_v63  ;;  %v510_v11 = vmul.f32 %v499_v58, %v491_v10 }
 0x100   : > { %v517_v9 = vpack.c.bf16 %v513_v13, %v511_v15 }
 0x101   : > { %v515_v6 = vpack.c.bf16 %v509_v2, %v507_v1  ;;  %v514_v14 = vpack.c.bf16 %v508_v12, %v506_v7  ;;  %v516_v16 = vpack.c.bf16 %v512_v4, %v510_v11 }
 0x103   : > { %887 = vmatprep.mubr.bf16.mxu0 %v515_v6  ;;  %940 = vmatprep.mubr.bf16.mxu1 %v515_v6 }
 0x104   : > { %888 = vmatmul.mubr.bf16.vlgmr.msra.gmra.mxu0 %v514_v14  ;;  %941 = vmatmul.mubr.bf16.vlgmr.msra.gmra.mxu1 %v514_v14 }
 0x105   : > { %897 = vmatprep.mubr.bf16.mxu0 %v517_v9  ;;  %948 = vmatprep.mubr.bf16.mxu1 %v517_v9 }
 0x10c   : > { %898 = vmatmul.mubr.bf16.gmra.mxu0 %v516_v16  ;;  %949 = vmatmul.mubr.bf16.gmra.mxu1 %v516_v16 }
 0x1c4   : > { %v889_v3 = vpop.f32.mrf.mxu0  ;;  %v1323_v20 = vpop.f32.mrf.mxu1 }
 0x1c5   : > { %v890_v24 = vadd.f32 %v889_v3, %v587_v18 }
 0x1c6   : > { %v891_v22 = vpop.f32.mrf.mxu0  ;;  %v1324_v23 = vpop.f32.mrf.mxu1 }
 0x1c7   : > { %v892_v25 = vadd.f32 %v891_v22, %v591_v19  ;;  %v1325_v26 = vadd.f32 %v1324_v23, %v1323_v20 }
 0x1c8   : > { %v893_v27 = vpop.f32.mrf.mxu0  ;;  %v1326_v28 = vpop.f32.mrf.mxu1 }
 0x1c9   : > { %v1298_v29 = vpack.c.bf16 %v892_v25, %v890_v24  ;;  %v943_v30 = vadd.f32 %v1325_v26, %v595_v21  ;;  %v894_v34 = vadd.f32 %v893_v27, %v587_v18 }
 0x1ca   : > { %v895_v31 = vpop.f32.mrf.mxu0  ;;  %v1327_v32 = vpop.f32.mrf.mxu1 }
 0x1cb   : > { %997 = vst [vmem:[%s1819_s7] sm:$0xff] %v1298_v29  ;;  %v1299_v33 = vpack.c.bf16 %v943_v30, %v943_v30  ;;  %v896_v35 = vadd.f32 %v895_v31, %v591_v19  ;;  %v1328_v36 = vadd.f32 %v1327_v32, %v1326_v28 }
 0x1cc   : > { %v899_v37 = vpop.f32.mrf.mxu0  ;;  %v1329_v38 = vpop.f32.mrf.mxu1 }
 0x1cd   : > { %998 = vst [vmem:[%s1819_s7 + $0x8] sm:$0xf] %v1299_v33  ;;  %v1300_v39 = vpack.c.bf16 %v896_v35, %v894_v34  ;;  %v946_v40 = vadd.f32 %v1328_v36, %v595_v21  ;;  %v900_v44 = vadd.f32 %v899_v37, %v587_v18 }
 0x1ce   : > { %v901_v41 = vpop.f32.mrf.mxu0  ;;  %v1330_v42 = vpop.f32.mrf.mxu1 }
 0x1cf   : > { %999 = vst [vmem:[%s1819_s7 + $0xc] sm:$0xff] %v1300_v39  ;;  %v1301_v43 = vpack.c.bf16 %v946_v40, %v946_v40  ;;  %v902_v45 = vadd.f32 %v901_v41, %v591_v19  ;;  %v1331_v46 = vadd.f32 %v1330_v42, %v1329_v38 }
 0x1d0   : > { %v903_v47 = vpop.f32.mrf.mxu0  ;;  %v1332_v48 = vpop.f32.mrf.mxu1 }
 0x1d1   : > { %1000 = vst [vmem:[%s1819_s7 + $0x14] sm:$0xf] %v1301_v43  ;;  %v1302_v49 = vpack.c.bf16 %v902_v45, %v900_v44  ;;  %v951_v50 = vadd.f32 %v1331_v46, %v595_v21  ;;  %v904_v54 = vadd.f32 %v903_v47, %v587_v18 }
 0x1d2   : > { %v905_v51 = vpop.f32.mrf.mxu0  ;;  %v1333_v52 = vpop.f32.mrf.mxu1  ;;  %v1032_v60 = vld [vmem:[%s1819_s7] sm:$0xff] (%p1558_p6) }
 0x1d3   : > { %1001 = vst [vmem:[%s1819_s7 + $0x18] sm:$0xff] %v1302_v49  ;;  %v1303_v53 = vpack.c.bf16 %v951_v50, %v951_v50  ;;  %v906_v55 = vadd.f32 %v905_v51, %v591_v19  ;;  %v1334_v56 = vadd.f32 %v1333_v52, %v1332_v48  ;;  %1033 = vst [vmem:[%s1017_s24] sm:$0xff] (%p1558_p6), %v1032_v60 }
 0x1d4   : > { %v1287_v0 = vld [vmem:[%s1819_s7 + $0x8] sm:$0xf] (%p1558_p6) }
 0x1d5   : > { %1002 = vst [vmem:[%s1819_s7 + $0x20] sm:$0xf] %v1303_v53  ;;  %v1304_v57 = vpack.c.bf16 %v906_v55, %v904_v54  ;;  %v954_v58 = vadd.f32 %v1334_v56, %v595_v21  ;;  %1011 = sbr.rel (!%p1558_p6) target bundleno = 482 (0x1e2), region = 66  ;;  %1288 = vst [vmem:[%s1017_s24 + $0x8] sm:$0xf] (%p1558_p6), %v1287_v0 }
 0x1d6   : > { %v1034_v61 = vld [vmem:[%s1819_s7 + $0xc] sm:$0xff] (%p1558_p6) }
 0x1d7   : > { %1003 = vst [vmem:[%s1819_s7 + $0x24] sm:$0xff] %v1304_v57  ;;  %v1305_v59 = vpack.c.bf16 %v954_v58, %v954_v58  ;;  %1035 = vst [vmem:[%s1017_s24 + $0x18] sm:$0xff] (%p1558_p6), %v1034_v61 }
 0x1d8   : > { %v1289_v1 = vld [vmem:[%s1819_s7 + $0x14] sm:$0xf] (%p1558_p6) }
 0x1d9   : > { %1004 = vst [vmem:[%s1819_s7 + $0x2c] sm:$0xf] %v1305_v59  ;;  %1290 = vst [vmem:[%s1017_s24 + $0x20] sm:$0xf] (%p1558_p6), %v1289_v1 }
 0x1da   : > { %v1036_v62 = vld [vmem:[%s1819_s7 + $0x18] sm:$0xff] }
 0x1db   : > { %1037 = vst [vmem:[%s1017_s24 + $0x30] sm:$0xff] %v1036_v62 }
 0x1dc   : > { %v1291_v2 = vld [vmem:[%s1819_s7 + $0x20] sm:$0xf] }
 0x1dd   : > { %1292 = vst [vmem:[%s1017_s24 + $0x38] sm:$0xf] %v1291_v2 }
 0x1de   : > { %v1038_v63 = vld [vmem:[%s1819_s7 + $0x24] sm:$0xff] }
 0x1df   : > { %1039 = vst [vmem:[%s1017_s24 + $0x48] sm:$0xff] %v1038_v63 }
 0x1e0   : > { %v1293_v7 = vld [vmem:[%s1819_s7 + $0x2c] sm:$0xf] }
 0x1e1   : > { %1294 = vst [vmem:[%s1017_s24 + $0x50] sm:$0xf] %v1293_v7 }
 0x1e2 PF: > { %s14_s19 = sadd.s32 1, %s1496_s19   ;;  %s1864_s15 = smov %s1484_s16 }
 0x1e3   : > { %p11_p12 = scmp.ge.s32.totalorder %s14_s19, 4   ;;  %s1865_s16 = smov %s1563_s25 }
 0x1e4   : > { %s1866_s17 = smov %s1492_s18  ;;  %s1867_s18 = smov %s1869_s20 }
 0x1e5   :  { %13 = sbr.rel (!%p11_p12) target bundleno = 3 (0x3), region = 141 }

// kernel: decoder_forward.11
= control target key start
LH: loop header
LB: loop body
LE: loop exit
PB: predicated region body
PF: predicated region fallthrough
CT: control target
= control target key end

     0   :  { %v335_v36 = vlaneseq  ;;  %s695_s1 = inlined_call_operand.vmem [shape: bf16[256,256], index: 1, kind: input, shape index: {}]   ;;  %s696_s0 = inlined_call_operand.vmem [shape: bf16[32,256], index: 0, kind: input, shape index: {}]   ;;  %s697_s2 = inlined_call_operand.vmem [shape: f32[1,256], index: 2, kind: input, shape index: {}]   ;;  %s698_s3 = inlined_call_operand.vmem [shape: bf16[32,256], index: 3, kind: input, shape index: {}]   ;;  %s699_s4 = inlined_call_operand.vmem [shape: bf16[32,256], index: 4, kind: output, shape index: {}]  }
   0x1   :  { %v481_v0 = vld [vmem:[%s695_s1 + $0x74] ss:$8 sps:$4 sm:$0xff]   ;;  %v483_v1 = vld [vmem:[%s695_s1 + $0x70] ss:$8 sps:$4 sm:$0xff]   ;;  %v484_v2 = vld [vmem:[%s695_s1 + $0x64] ss:$8 sps:$4 sm:$0xff]  }
   0x2   :  { %253 = vmatprep.subr.bf16.mxu0 %v481_v0  ;;  %449 = vmatprep.subr.bf16.mxu1 %v481_v0  ;;  %v486_v3 = vld [vmem:[%s695_s1 + $0x60] ss:$8 sps:$4 sm:$0xff]   ;;  %v487_v4 = vld [vmem:[%s695_s1 + $0x54] ss:$8 sps:$4 sm:$0xff]   ;;  %v489_v5 = vld [vmem:[%s695_s1 + $0x50] ss:$8 sps:$4 sm:$0xff]  }
   0x3   :  { %254 = vmatpush1.bf16.msra.mxu0 %v483_v1  ;;  %465 = vmatpush1.bf16.msra.mxu1 %v483_v1  ;;  %v490_v6 = vld [vmem:[%s695_s1 + $0x44] ss:$8 sps:$4 sm:$0xff]   ;;  %v492_v7 = vld [vmem:[%s695_s1 + $0x40] ss:$8 sps:$4 sm:$0xff]   ;;  %v493_v8 = vld [vmem:[%s695_s1 + $0x34] ss:$8 sps:$4 sm:$0xff]  }
   0x4   :  { %255 = vmatprep.subr.bf16.mxu0 %v484_v2  ;;  %450 = vmatprep.subr.bf16.mxu1 %v484_v2  ;;  %v495_v9 = vld [vmem:[%s695_s1 + $0x30] ss:$8 sps:$4 sm:$0xff]   ;;  %v496_v10 = vld [vmem:[%s695_s1 + $0x24] ss:$8 sps:$4 sm:$0xff]   ;;  %v498_v11 = vld [vmem:[%s695_s1 + $0x20] ss:$8 sps:$4 sm:$0xff]  }
   0x5   :  { %v499_v12 = vld [vmem:[%s695_s1 + $0x14] ss:$8 sps:$4 sm:$0xff]   ;;  %v531_v13 = vld [vmem:[%s696_s0 + $0x4] ss:$8 sps:$4 sm:$0xff]   ;;  %v501_v14 = vld [vmem:[%s695_s1 + $0x10] ss:$8 sps:$4 sm:$0xff]  }
   0x6   :  { %v534_v15 = vld [vmem:[%s696_s0 + $0x14] ss:$8 sps:$4 sm:$0xff]   ;;  %v502_v16 = vld [vmem:[%s695_s1 + $0x4] ss:$8 sps:$4 sm:$0xff]   ;;  %285 = vmatprep.mubr.bf16.mxu0 %v531_v13  ;;  %v504_v17 = vld [vmem:[%s695_s1] ss:$8 sps:$4 sm:$0xff]  }
   0x7   :  { %256 = vmatpush1.bf16.msra.mxu0 %v486_v3  ;;  %466 = vmatpush1.bf16.msra.mxu1 %v486_v3  ;;  %v505_v18 = vld [vmem:[%s695_s1 + $0xf4] ss:$8 sps:$4 sm:$0xff]   ;;  %v507_v19 = vld [vmem:[%s695_s1 + $0xf0] ss:$8 sps:$4 sm:$0xff]   ;;  %v508_v20 = vld [vmem:[%s695_s1 + $0xe4] ss:$8 sps:$4 sm:$0xff]  }
   0x8   :  { %257 = vmatprep.subr.bf16.mxu0 %v487_v4  ;;  %451 = vmatprep.subr.bf16.mxu1 %v487_v4  ;;  %v510_v21 = vld [vmem:[%s695_s1 + $0xe0] ss:$8 sps:$4 sm:$0xff]   ;;  %v511_v22 = vld [vmem:[%s695_s1 + $0xd4] ss:$8 sps:$4 sm:$0xff]   ;;  %v513_v23 = vld [vmem:[%s695_s1 + $0xd0] ss:$8 sps:$4 sm:$0xff]  }
   0x9   :  { %295 = vmatprep.mubr.bf16.mxu1 %v534_v15  ;;  %v514_v24 = vld [vmem:[%s695_s1 + $0xc4] ss:$8 sps:$4 sm:$0xff]   ;;  %v516_v25 = vld [vmem:[%s695_s1 + $0xc0] ss:$8 sps:$4 sm:$0xff]   ;;  %v517_v26 = vld [vmem:[%s695_s1 + $0xb4] ss:$8 sps:$4 sm:$0xff]  }
   0xa   :  { %v519_v27 = vld [vmem:[%s695_s1 + $0xb0] ss:$8 sps:$4 sm:$0xff]   ;;  %v520_v28 = vld [vmem:[%s695_s1 + $0xa4] ss:$8 sps:$4 sm:$0xff]   ;;  %v522_v29 = vld [vmem:[%s695_s1 + $0xa0] ss:$8 sps:$4 sm:$0xff]  }
   0xb   :  { %258 = vmatpush1.bf16.msra.mxu0 %v489_v5  ;;  %467 = vmatpush1.bf16.msra.mxu1 %v489_v5  ;;  %v523_v30 = vld [vmem:[%s695_s1 + $0x94] ss:$8 sps:$4 sm:$0xff]   ;;  %v525_v31 = vld [vmem:[%s695_s1 + $0x90] ss:$8 sps:$4 sm:$0xff]   ;;  %v526_v32 = vld [vmem:[%s695_s1 + $0x84] ss:$8 sps:$4 sm:$0xff]  }
   0xc   :  { %259 = vmatprep.subr.bf16.mxu0 %v490_v6  ;;  %452 = vmatprep.subr.bf16.mxu1 %v490_v6  ;;  %v528_v33 = vld [vmem:[%s695_s1 + $0x80] ss:$8 sps:$4 sm:$0xff]   ;;  %v532_v35 = vld [vmem:[%s696_s0 + $0x10] ss:$8 sps:$4 sm:$0xff]   ;;  %v336_v37 = vshrl.u32 %v335_v36, 7 }
   0xd   :  { %v529_v34 = vld [vmem:[%s696_s0] ss:$8 sps:$4 sm:$0xff]   ;;  %v355_v43 = vld [vmem:[%s698_s3 + $0x10] sm:$0xff]  ;;  %v356_v54 = vld [vmem:[%s698_s3 + $0x18] sm:$0xff] }
   0xe   :  { %v337_v38 = vsub.s32 0, %v336_v37  ;;  %v333_v39 = vld [vmem:[%s697_s2] sm:$0x3]  ;;  %v341_v40 = vsub.s32 1, %v336_v37  ;;  %v361_v48 = vunpack.c.l.bf16 %v355_v43  ;;  %v362_v52 = vunpack.c.h.bf16 %v355_v43  ;;  %v354_v53 = vld [vmem:[%s698_s3 + $0x8] sm:$0xff] }
   0xf   :  { %260 = vmatpush1.bf16.msra.mxu0 %v492_v7  ;;  %468 = vmatpush1.bf16.msra.mxu1 %v492_v7  ;;  %v353_v42 = vld [vmem:[%s698_s3] sm:$0xff]  ;;  %v359_v60 = vunpack.c.l.bf16 %v354_v53  ;;  %v363_v62 = vunpack.c.l.bf16 %v356_v54  ;;  %v360_v6 = vunpack.c.h.bf16 %v354_v53 }
  0x10   :  { %261 = vmatprep.subr.bf16.mxu0 %v493_v8  ;;  %453 = vmatprep.subr.bf16.mxu1 %v493_v8  ;;  %v338_v41 = vrot.slane %v333_v39, %v337_v38  ;;  %v342_v44 = vrot.slane %v333_v39, %v341_v40  ;;  %v357_v46 = vunpack.c.l.bf16 %v353_v42  ;;  %v358_v51 = vunpack.c.h.bf16 %v353_v42 }
  0x11   :  { %v364_v8 = vunpack.c.h.bf16 %v356_v54 }
  0x13   :  { %262 = vmatpush1.bf16.msra.mxu0 %v495_v9  ;;  %469 = vmatpush1.bf16.msra.mxu1 %v495_v9 }
  0x14   :  { %263 = vmatprep.subr.bf16.mxu0 %v496_v10  ;;  %454 = vmatprep.subr.bf16.mxu1 %v496_v10 }
  0x17   :  { %264 = vmatpush1.bf16.msra.mxu0 %v498_v11  ;;  %470 = vmatpush1.bf16.msra.mxu1 %v498_v11 }
  0x18   :  { %265 = vmatprep.subr.bf16.mxu0 %v499_v12  ;;  %455 = vmatprep.subr.bf16.mxu1 %v499_v12 }
  0x1b   :  { %266 = vmatpush1.bf16.msra.mxu0 %v501_v14  ;;  %471 = vmatpush1.bf16.msra.mxu1 %v501_v14 }
  0x1c   :  { %267 = vmatprep.subr.bf16.mxu0 %v502_v16  ;;  %456 = vmatprep.subr.bf16.mxu1 %v502_v16 }
  0x1f   :  { %268 = vmatpush1.bf16.msra.mxu0 %v504_v17  ;;  %472 = vmatpush1.bf16.msra.mxu1 %v504_v17 }
  0x20   :  { %269 = vmatprep.subr.bf16.mxu0 %v505_v18  ;;  %457 = vmatprep.subr.bf16.mxu1 %v505_v18 }
  0x23   :  { %270 = vmatpush2.bf16.msra.mxu0 %v507_v19  ;;  %473 = vmatpush2.bf16.msra.mxu1 %v507_v19 }
  0x24   :  { %271 = vmatprep.subr.bf16.mxu0 %v508_v20  ;;  %458 = vmatprep.subr.bf16.mxu1 %v508_v20 }
  0x27   :  { %272 = vmatpush2.bf16.msra.mxu0 %v510_v21  ;;  %474 = vmatpush2.bf16.msra.mxu1 %v510_v21 }
  0x28   :  { %273 = vmatprep.subr.bf16.mxu0 %v511_v22  ;;  %459 = vmatprep.subr.bf16.mxu1 %v511_v22 }
  0x2b   :  { %274 = vmatpush2.bf16.msra.mxu0 %v513_v23  ;;  %475 = vmatpush2.bf16.msra.mxu1 %v513_v23 }
  0x2c   :  { %275 = vmatprep.subr.bf16.mxu0 %v514_v24  ;;  %460 = vmatprep.subr.bf16.mxu1 %v514_v24 }
  0x2f   :  { %276 = vmatpush2.bf16.msra.mxu0 %v516_v25  ;;  %476 = vmatpush2.bf16.msra.mxu1 %v516_v25 }
  0x30   :  { %277 = vmatprep.subr.bf16.mxu0 %v517_v26  ;;  %461 = vmatprep.subr.bf16.mxu1 %v517_v26 }
  0x33   :  { %278 = vmatpush2.bf16.msra.mxu0 %v519_v27  ;;  %477 = vmatpush2.bf16.msra.mxu1 %v519_v27 }
  0x34   :  { %279 = vmatprep.subr.bf16.mxu0 %v520_v28  ;;  %462 = vmatprep.subr.bf16.mxu1 %v520_v28 }
  0x37   :  { %280 = vmatpush2.bf16.msra.mxu0 %v522_v29  ;;  %478 = vmatpush2.bf16.msra.mxu1 %v522_v29 }
  0x38   :  { %281 = vmatprep.subr.bf16.mxu0 %v523_v30  ;;  %463 = vmatprep.subr.bf16.mxu1 %v523_v30 }
  0x3b   :  { %282 = vmatpush2.bf16.msra.mxu0 %v525_v31  ;;  %479 = vmatpush2.bf16.msra.mxu1 %v525_v31 }
  0x3c   :  { %283 = vmatprep.subr.bf16.mxu0 %v526_v32  ;;  %464 = vmatprep.subr.bf16.mxu1 %v526_v32 }
  0x3f   :  { %284 = vmatpush2.bf16.msra.mxu0 %v528_v33  ;;  %480 = vmatpush2.bf16.msra.mxu1 %v528_v33 }
  0x42   :  { %286 = vmatmul.mubr.bf16.vlgmr.msra.gmra.mxu0 %v529_v34  ;;  %296 = vmatmul.mubr.bf16.vlgmr.msra.gmra.mxu1 %v532_v35 }
 0x102   :  { %v287_v45 = vpop.f32.mrf.mxu0  ;;  %v297_v47 = vpop.f32.mrf.mxu1 }
 0x103   :  { %v345_v49 = vadd.f32 %v338_v41, %v287_v45  ;;  %v349_v50 = vadd.f32 %v338_v41, %v297_v47 }
 0x104   :  { %v289_v55 = vpop.f32.mrf.mxu0  ;;  %v299_v56 = vpop.f32.mrf.mxu1 }
 0x105   :  { %v346_v57 = vadd.f32 %v342_v44, %v289_v55  ;;  %v350_v58 = vadd.f32 %v342_v44, %v299_v56  ;;  %v365_v63 = vadd.f32 %v357_v46, %v345_v49  ;;  %v369_v0 = vadd.f32 %v361_v48, %v349_v50 }
 0x106   :  { %v291_v59 = vpop.f32.mrf.mxu0  ;;  %v301_v61 = vpop.f32.mrf.mxu1 }
 0x107   :  { %v366_v1 = vadd.f32 %v358_v51, %v346_v57  ;;  %v370_v2 = vadd.f32 %v362_v52, %v350_v58  ;;  %v347_v3 = vadd.f32 %v338_v41, %v291_v59  ;;  %v351_v4 = vadd.f32 %v338_v41, %v301_v61 }
 0x108   :  { %v293_v5 = vpop.f32.mrf.mxu0  ;;  %v303_v7 = vpop.f32.mrf.mxu1 }
 0x109   :  { %v445_v9 = vpack.c.bf16 %v366_v1, %v365_v63  ;;  %v447_v10 = vpack.c.bf16 %v370_v2, %v369_v0  ;;  %v348_v11 = vadd.f32 %v342_v44, %v293_v5  ;;  %v352_v12 = vadd.f32 %v342_v44, %v303_v7 }
 0x10a   :  { %v367_v13 = vadd.f32 %v359_v60, %v347_v3  ;;  %v371_v14 = vadd.f32 %v363_v62, %v351_v4 }
 0x10b   :  { %397 = vst [vmem:[%s699_s4] sm:$0xff] %v445_v9  ;;  %399 = vst [vmem:[%s699_s4 + $0x10] sm:$0xff] %v447_v10  ;;  %v368_v15 = vadd.f32 %v360_v6, %v348_v11  ;;  %v372_v16 = vadd.f32 %v364_v8, %v352_v12 }
 0x10d   :  { %v446_v17 = vpack.c.bf16 %v368_v15, %v367_v13  ;;  %v448_v18 = vpack.c.bf16 %v372_v16, %v371_v14 }
 0x10f   :  { %398 = vst [vmem:[%s699_s4 + $0x8] sm:$0xff] %v446_v17  ;;  %400 = vst [vmem:[%s699_s4 + $0x18] sm:$0xff] %v448_v18 }

// kernel: decoder_forward.17
= control target key start
LH: loop header
LB: loop body
LE: loop exit
PB: predicated region body
PF: predicated region fallthrough
CT: control target
= control target key end

     0   :  { %s1119_s0 = inlined_call_operand.vmem [shape: bf16[32,256], index: 0, kind: input, shape index: {}]   ;;  %s1120_s1 = inlined_call_operand.vmem [shape: f32[1,256], index: 1, kind: input, shape index: {}]   ;;  %s1121_s2 = inlined_call_operand.vmem [shape: bf16[256,512], index: 2, kind: input, shape index: {}]   ;;  %s1122_s3 = inlined_call_operand.hbm [shape: f32[32,512], index: 3, kind: output, shape index: {}]  }
   0x1   :  { %v17_v0 = vld [vmem:[%s1119_s0 + $0x10] sm:$0xff]  ;;  %v15_v1 = vld [vmem:[%s1119_s0] sm:$0xff]  ;;  %v18_v2 = vld [vmem:[%s1119_s0 + $0x18] sm:$0xff] }
   0x2   :  { %v878_v3 = vunpack.c.l.bf16 %v17_v0  ;;  %v880_v4 = vunpack.c.h.bf16 %v17_v0  ;;  %v882_v5 = vunpack.c.l.bf16 %v15_v1  ;;  %v884_v6 = vunpack.c.h.bf16 %v15_v1  ;;  %v16_v7 = vld [vmem:[%s1119_s0 + $0x8] sm:$0xff]  ;;  %v712_v12 = vld [vmem:[%s1121_s2 + $0xe4] ss:$16 sps:$4 sm:$0xff]   ;;  %v716_v18 = vld [vmem:[%s1121_s2 + $0xe0] ss:$16 sps:$4 sm:$0xff]  }
   0x3   :  { %v889_v8 = vunpack.c.l.bf16 %v18_v2  ;;  %v891_v9 = vunpack.c.h.bf16 %v18_v2  ;;  %v893_v10 = vunpack.c.l.bf16 %v16_v7  ;;  %v895_v11 = vunpack.c.h.bf16 %v16_v7  ;;  %v714_v17 = vld [vmem:[%s1121_s2 + $0xec] ss:$16 sps:$4 sm:$0xff]   ;;  %v717_v19 = vld [vmem:[%s1121_s2 + $0xe8] ss:$16 sps:$4 sm:$0xff]   ;;  %507 = vmatprep.subr.bf16.mxu0 %v712_v12  ;;  %v718_v24 = vld [vmem:[%s1121_s2 + $0xc4] ss:$16 sps:$4 sm:$0xff]  }
   0x4   :  { %v32_v13 = vmul.f32 %v878_v3, %v878_v3  ;;  %v33_v14 = vmul.f32 %v880_v4, %v880_v4  ;;  %v28_v15 = vmul.f32 %v882_v5, %v882_v5  ;;  %v29_v16 = vmul.f32 %v884_v6, %v884_v6  ;;  %560 = vmatprep.subr.bf16.mxu1 %v714_v17  ;;  %v720_v27 = vld [vmem:[%s1121_s2 + $0xcc] ss:$16 sps:$4 sm:$0xff]   ;;  %v722_v28 = vld [vmem:[%s1121_s2 + $0xc0] ss:$16 sps:$4 sm:$0xff]   ;;  %v723_v29 = vld [vmem:[%s1121_s2 + $0xc8] ss:$16 sps:$4 sm:$0xff]  }
   0x5   :  { %v34_v20 = vmul.f32 %v889_v8, %v889_v8  ;;  %v35_v21 = vmul.f32 %v891_v9, %v891_v9  ;;  %v30_v22 = vmul.f32 %v893_v10, %v893_v10  ;;  %v31_v23 = vmul.f32 %v895_v11, %v895_v11  ;;  %508 = vmatpush1.bf16.msra.mxu0 %v716_v18  ;;  %v724_v32 = vld [vmem:[%s1121_s2 + $0xa4] ss:$16 sps:$4 sm:$0xff]   ;;  %v726_v33 = vld [vmem:[%s1121_s2 + $0xac] ss:$16 sps:$4 sm:$0xff]   ;;  %v728_v34 = vld [vmem:[%s1121_s2 + $0xa0] ss:$16 sps:$4 sm:$0xff]  }
   0x6   :  { %v42_v25 = vadd.f32 %v33_v14, %v32_v13  ;;  %v36_v26 = vadd.f32 %v29_v16, %v28_v15  ;;  %561 = vmatpush1.bf16.msra.mxu1 %v717_v19  ;;  %509 = vmatprep.subr.bf16.mxu0 %v718_v24  ;;  %v729_v35 = vld [vmem:[%s1121_s2 + $0xa8] ss:$16 sps:$4 sm:$0xff]   ;;  %v730_v36 = vld [vmem:[%s1121_s2 + $0x84] ss:$16 sps:$4 sm:$0xff]   ;;  %v732_v37 = vld [vmem:[%s1121_s2 + $0x8c] ss:$16 sps:$4 sm:$0xff]  }
   0x7   :  { %v45_v30 = vadd.f32 %v35_v21, %v34_v20  ;;  %v39_v31 = vadd.f32 %v31_v23, %v30_v22  ;;  %562 = vmatprep.subr.bf16.mxu1 %v720_v27  ;;  %v734_v38 = vld [vmem:[%s1121_s2 + $0x80] ss:$16 sps:$4 sm:$0xff]   ;;  %v735_v39 = vld [vmem:[%s1121_s2 + $0x88] ss:$16 sps:$4 sm:$0xff]   ;;  %v736_v40 = vld [vmem:[%s1121_s2 + $0x64] ss:$16 sps:$4 sm:$0xff]  }
   0x8   :  { %43 = vadd.xlane.f32.xlu1 %v42_v25  ;;  %37 = vadd.xlane.f32.xlu0 %v36_v26  ;;  %v738_v41 = vld [vmem:[%s1121_s2 + $0x6c] ss:$16 sps:$4 sm:$0xff]   ;;  %v740_v42 = vld [vmem:[%s1121_s2 + $0x60] ss:$16 sps:$4 sm:$0xff]   ;;  %v741_v43 = vld [vmem:[%s1121_s2 + $0x68] ss:$16 sps:$4 sm:$0xff]  }
   0x9   :  { %510 = vmatpush1.bf16.msra.mxu0 %v722_v28  ;;  %v742_v44 = vld [vmem:[%s1121_s2 + $0x44] ss:$16 sps:$4 sm:$0xff]   ;;  %v744_v45 = vld [vmem:[%s1121_s2 + $0x4c] ss:$16 sps:$4 sm:$0xff]   ;;  %v746_v46 = vld [vmem:[%s1121_s2 + $0x40] ss:$16 sps:$4 sm:$0xff]  }
   0xa   :  { %563 = vmatpush1.bf16.msra.mxu1 %v723_v29  ;;  %511 = vmatprep.subr.bf16.mxu0 %v724_v32  ;;  %v747_v47 = vld [vmem:[%s1121_s2 + $0x48] ss:$16 sps:$4 sm:$0xff]   ;;  %v748_v48 = vld [vmem:[%s1121_s2 + $0x24] ss:$16 sps:$4 sm:$0xff]   ;;  %v750_v49 = vld [vmem:[%s1121_s2 + $0x2c] ss:$16 sps:$4 sm:$0xff]  }
   0xb   :  { %564 = vmatprep.subr.bf16.mxu1 %v726_v33  ;;  %v752_v50 = vld [vmem:[%s1121_s2 + $0x20] ss:$16 sps:$4 sm:$0xff]   ;;  %v753_v51 = vld [vmem:[%s1121_s2 + $0x28] ss:$16 sps:$4 sm:$0xff]   ;;  %v754_v52 = vld [vmem:[%s1121_s2 + $0x4] ss:$16 sps:$4 sm:$0xff]  }
   0xc   :  { %46 = vadd.xlane.f32.xlu1 %v45_v30  ;;  %40 = vadd.xlane.f32.xlu0 %v39_v31  ;;  %v756_v53 = vld [vmem:[%s1121_s2 + $0xc] ss:$16 sps:$4 sm:$0xff]   ;;  %v758_v54 = vld [vmem:[%s1121_s2] ss:$16 sps:$4 sm:$0xff]   ;;  %v759_v55 = vld [vmem:[%s1121_s2 + $0x8] ss:$16 sps:$4 sm:$0xff]  }
   0xd   :  { %512 = vmatpush1.bf16.msra.mxu0 %v728_v34  ;;  %v760_v56 = vld [vmem:[%s1121_s2 + $0x1e4] ss:$16 sps:$4 sm:$0xff]   ;;  %v762_v57 = vld [vmem:[%s1121_s2 + $0x1ec] ss:$16 sps:$4 sm:$0xff]   ;;  %v764_v58 = vld [vmem:[%s1121_s2 + $0x1e0] ss:$16 sps:$4 sm:$0xff]  }
   0xe   :  { %565 = vmatpush1.bf16.msra.mxu1 %v729_v35  ;;  %513 = vmatprep.subr.bf16.mxu0 %v730_v36  ;;  %v765_v59 = vld [vmem:[%s1121_s2 + $0x1e8] ss:$16 sps:$4 sm:$0xff]  }
   0xf   :  { %566 = vmatprep.subr.bf16.mxu1 %v732_v37 }
  0x11   :  { %514 = vmatpush1.bf16.msra.mxu0 %v734_v38 }
  0x12   :  { %567 = vmatpush1.bf16.msra.mxu1 %v735_v39  ;;  %515 = vmatprep.subr.bf16.mxu0 %v736_v40 }
  0x13   :  { %568 = vmatprep.subr.bf16.mxu1 %v738_v41 }
  0x15   :  { %516 = vmatpush1.bf16.msra.mxu0 %v740_v42 }
  0x16   :  { %569 = vmatpush1.bf16.msra.mxu1 %v741_v43  ;;  %517 = vmatprep.subr.bf16.mxu0 %v742_v44 }
  0x17   :  { %570 = vmatprep.subr.bf16.mxu1 %v744_v45 }
  0x19   :  { %518 = vmatpush1.bf16.msra.mxu0 %v746_v46 }
  0x1a   :  { %571 = vmatpush1.bf16.msra.mxu1 %v747_v47  ;;  %519 = vmatprep.subr.bf16.mxu0 %v748_v48 }
  0x1b   :  { %572 = vmatprep.subr.bf16.mxu1 %v750_v49 }
  0x1d   :  { %520 = vmatpush1.bf16.msra.mxu0 %v752_v50 }
  0x1e   :  { %573 = vmatpush1.bf16.msra.mxu1 %v753_v51  ;;  %521 = vmatprep.subr.bf16.mxu0 %v754_v52 }
  0x1f   :  { %574 = vmatprep.subr.bf16.mxu1 %v756_v53 }
  0x21   :  { %522 = vmatpush1.bf16.msra.mxu0 %v758_v54 }
  0x22   :  { %575 = vmatpush1.bf16.msra.mxu1 %v759_v55  ;;  %523 = vmatprep.subr.bf16.mxu0 %v760_v56 }
  0x23   :  { %8 = vsyncpa [#allocation3], 0  ;;  %576 = vmatprep.subr.bf16.mxu1 %v762_v57  ;;  %v766_v60 = vld [vmem:[%s1121_s2 + $0x1c4] ss:$16 sps:$4 sm:$0xff]   ;;  %v768_v61 = vld [vmem:[%s1121_s2 + $0x1cc] ss:$16 sps:$4 sm:$0xff]  }
  0x24   :  { %v770_v62 = vld [vmem:[%s1121_s2 + $0x1c0] ss:$16 sps:$4 sm:$0xff]   ;;  %v771_v63 = vld [vmem:[%s1121_s2 + $0x1c8] ss:$16 sps:$4 sm:$0xff]   ;;  %v772_v0 = vld [vmem:[%s1121_s2 + $0x1a4] ss:$16 sps:$4 sm:$0xff]  }
  0x25   :  { %524 = vmatpush2.bf16.msra.mxu0 %v764_v58  ;;  %v774_v1 = vld [vmem:[%s1121_s2 + $0x1ac] ss:$16 sps:$4 sm:$0xff]   ;;  %v776_v2 = vld [vmem:[%s1121_s2 + $0x1a0] ss:$16 sps:$4 sm:$0xff]   ;;  %v777_v7 = vld [vmem:[%s1121_s2 + $0x1a8] ss:$16 sps:$4 sm:$0xff]  }
  0x26   :  { %577 = vmatpush2.bf16.msra.mxu1 %v765_v59  ;;  %525 = vmatprep.subr.bf16.mxu0 %v766_v60  ;;  %v778_v12 = vld [vmem:[%s1121_s2 + $0x184] ss:$16 sps:$4 sm:$0xff]   ;;  %v780_v13 = vld [vmem:[%s1121_s2 + $0x18c] ss:$16 sps:$4 sm:$0xff]   ;;  %v782_v14 = vld [vmem:[%s1121_s2 + $0x180] ss:$16 sps:$4 sm:$0xff]  }
  0x27   :  { %578 = vmatprep.subr.bf16.mxu1 %v768_v61  ;;  %v783_v15 = vld [vmem:[%s1121_s2 + $0x188] ss:$16 sps:$4 sm:$0xff]   ;;  %v784_v16 = vld [vmem:[%s1121_s2 + $0x164] ss:$16 sps:$4 sm:$0xff]   ;;  %v786_v17 = vld [vmem:[%s1121_s2 + $0x16c] ss:$16 sps:$4 sm:$0xff]  }
  0x28   :  { %v788_v18 = vld [vmem:[%s1121_s2 + $0x160] ss:$16 sps:$4 sm:$0xff]   ;;  %v789_v19 = vld [vmem:[%s1121_s2 + $0x168] ss:$16 sps:$4 sm:$0xff]   ;;  %v790_v20 = vld [vmem:[%s1121_s2 + $0x144] ss:$16 sps:$4 sm:$0xff]  }
  0x29   :  { %526 = vmatpush2.bf16.msra.mxu0 %v770_v62  ;;  %v792_v21 = vld [vmem:[%s1121_s2 + $0x14c] ss:$16 sps:$4 sm:$0xff]   ;;  %v794_v22 = vld [vmem:[%s1121_s2 + $0x140] ss:$16 sps:$4 sm:$0xff]   ;;  %v795_v23 = vld [vmem:[%s1121_s2 + $0x148] ss:$16 sps:$4 sm:$0xff]  }
  0x2a   :  { %579 = vmatpush2.bf16.msra.mxu1 %v771_v63  ;;  %527 = vmatprep.subr.bf16.mxu0 %v772_v0  ;;  %v796_v24 = vld [vmem:[%s1121_s2 + $0x124] ss:$16 sps:$4 sm:$0xff]   ;;  %v798_v25 = vld [vmem:[%s1121_s2 + $0x12c] ss:$16 sps:$4 sm:$0xff]   ;;  %v800_v26 = vld [vmem:[%s1121_s2 + $0x120] ss:$16 sps:$4 sm:$0xff]   ;;  %v101_v0 = vlaneseq }
  0x2b   :  { %580 = vmatprep.subr.bf16.mxu1 %v774_v1  ;;  %v801_v27 = vld [vmem:[%s1121_s2 + $0x128] ss:$16 sps:$4 sm:$0xff]   ;;  %v802_v28 = vld [vmem:[%s1121_s2 + $0x104] ss:$16 sps:$4 sm:$0xff]   ;;  %v804_v29 = vld [vmem:[%s1121_s2 + $0x10c] ss:$16 sps:$4 sm:$0xff]  }
  0x2c   :  { %v806_v30 = vld [vmem:[%s1121_s2 + $0x100] ss:$16 sps:$4 sm:$0xff]   ;;  %v807_v31 = vld [vmem:[%s1121_s2 + $0x108] ss:$16 sps:$4 sm:$0xff]   ;;  %v102_v1 = vshrl.u32 %v101_v0, 7 }
  0x2d   :  { %528 = vmatpush2.bf16.msra.mxu0 %v776_v2 }
  0x2e   :  { %581 = vmatpush2.bf16.msra.mxu1 %v777_v7  ;;  %529 = vmatprep.subr.bf16.mxu0 %v778_v12  ;;  %v107_v2 = vsub.s32 1, %v102_v1  ;;  %v27_v7 = vld [vmem:[%s1120_s1] sm:$0x3]  ;;  %v103_v12 = vsub.s32 0, %v102_v1  ;;  %s846_s1 = smov [#allocation2]  }
  0x2f   :  { %582 = vmatprep.subr.bf16.mxu1 %v780_v13  ;;  %s634_s9 = sshll.u32 %s846_s1, 4  ;;  %s635_s9 = int_to_ptr.vmem [resolvable:$true] %s634_s9 }
  0x30   :  { %s824_s10 = scalar_lea.vmem %s635_s9, 2048  ;;  %p829_p1 = scmp.lt.s32.totalorder %s635_s9, %s635_s9 }
  0x31   :  { %530 = vmatpush2.bf16.msra.mxu0 %v782_v14  ;;  %p825_p0 = scmp.ne.s32.totalorder %s635_s9, %s824_s10  ;;  %p830_p2 = scmp.lt.s32.totalorder %s824_s10, %s824_s10 }
  0x32   :  { %583 = vmatpush2.bf16.msra.mxu1 %v783_v15  ;;  %531 = vmatprep.subr.bf16.mxu0 %v784_v16  ;;  %v108_v16 = vrot.slane %v27_v7, %v107_v2 }
  0x33   :  { %584 = vmatprep.subr.bf16.mxu1 %v786_v17  ;;  %p831_p3 = por %p830_p2, %p829_p1 }
  0x35   :  { %532 = vmatpush2.bf16.msra.mxu0 %v788_v18  ;;  %v104_v18 = vrot.slane %v27_v7, %v103_v12  ;;  %p832_p4 = pnand %p831_p3, %p825_p0 }
  0x36   :  { %585 = vmatpush2.bf16.msra.mxu1 %v789_v19  ;;  %533 = vmatprep.subr.bf16.mxu0 %v790_v20 }
  0x37   :  { %586 = vmatprep.subr.bf16.mxu1 %v792_v21 }
  0x39   :  { %534 = vmatpush2.bf16.msra.mxu0 %v794_v22 }
  0x3a   :  { %587 = vmatpush2.bf16.msra.mxu1 %v795_v23  ;;  %535 = vmatprep.subr.bf16.mxu0 %v796_v24 }
  0x3b   :  { %588 = vmatprep.subr.bf16.mxu1 %v798_v25 }
  0x3d   :  { %536 = vmatpush2.bf16.msra.mxu0 %v800_v26 }
  0x3e   :  { %589 = vmatpush2.bf16.msra.mxu1 %v801_v27  ;;  %537 = vmatprep.subr.bf16.mxu0 %v802_v28 }
  0x3f   :  { %590 = vmatprep.subr.bf16.mxu1 %v804_v29 }
  0x41   :  { %538 = vmatpush2.bf16.msra.mxu0 %v806_v30 }
  0x42   :  { %591 = vmatpush2.bf16.msra.mxu1 %v807_v31 }
  0x91   :  { %v44_v32 = vpop.xlane.xlu1 %43  ;;  %v38_v33 = vpop.xlane.xlu0 %37 }
  0x92   :  { %808 = vrsqrt.f32 %v44_v32  ;;  %vm64_vm0 = vcmp.eq.f32.partialorder %v44_v32, inf  ;;  %v67_v39 = vand.u32 2147483648, %v44_v32  ;;  %vm66_vm1 = vcmp.eq.f32.partialorder %v44_v32, 0.0 }
  0x93   :  { %810 = vrsqrt.f32 %v38_v33  ;;  %vm50_vm2 = vcmp.eq.f32.partialorder %v38_v33, inf  ;;  %v53_v42 = vand.u32 2147483648, %v38_v33  ;;  %vm52_vm3 = vcmp.eq.f32.partialorder %v38_v33, 0.0 }
  0x95   :  { %v47_v34 = vpop.xlane.xlu1 %46  ;;  %v41_v35 = vpop.xlane.xlu0 %40 }
  0x96   :  { %812 = vrsqrt.f32 %v47_v34  ;;  %vm71_vm4 = vcmp.eq.f32.partialorder %v47_v34, inf  ;;  %vm73_vm5 = vcmp.eq.f32.partialorder %v47_v34, 0.0  ;;  %v74_v51 = vand.u32 2147483648, %v47_v34 }
  0x97   :  { %814 = vrsqrt.f32 %v41_v35  ;;  %vm57_vm6 = vcmp.eq.f32.partialorder %v41_v35, inf  ;;  %vm59_vm7 = vcmp.eq.f32.partialorder %v41_v35, 0.0  ;;  %v60_v54 = vand.u32 2147483648, %v41_v35 }
  0x9f   :  { %v809_v36 = vpop.eup %808 }
  0xa0   :  { %v811_v37 = vpop.eup %810  ;;  %v63_v38 = vmul.f32 %v809_v36, %v44_v32 }
  0xa1   :  { %v49_v40 = vmul.f32 %v811_v37, %v38_v33 }
  0xa2   :  { %v65_v41 = vsel %vm64_vm0, %v44_v32, %v63_v38 }
  0xa3   :  { %v813_v43 = vpop.eup %812  ;;  %v68_v44 = vsel %vm66_vm1, %v67_v39, %v65_v41  ;;  %v51_v45 = vsel %vm50_vm2, %v38_v33, %v49_v40 }
  0xa4   :  { %v815_v46 = vpop.eup %814  ;;  %v78_v47 = vmul.f32 0.0625, %v68_v44  ;;  %v54_v48 = vsel %vm52_vm3, %v53_v42, %v51_v45  ;;  %v70_v49 = vmul.f32 %v813_v43, %v47_v34 }
  0xa5   :  { %v76_v50 = vmul.f32 0.0625, %v54_v48  ;;  %v56_v52 = vmul.f32 %v815_v46, %v41_v35 }
  0xa6   :  { %v72_v53 = vsel %vm71_vm4, %v47_v34, %v70_v49  ;;  %v82_v55 = vadd.f32 1e-08, %v78_v47 }
  0xa7   :  { %v80_v56 = vadd.f32 1e-08, %v76_v50  ;;  %v75_v57 = vsel %vm73_vm5, %v74_v51, %v72_v53  ;;  %v58_v58 = vsel %vm57_vm6, %v41_v35, %v56_v52 }
  0xa8   :  { %v79_v59 = vmul.f32 0.0625, %v75_v57  ;;  %v61_v60 = vsel %vm59_vm7, %v60_v54, %v58_v58 }
  0xa9   :  { %816 = vrcp.f32 %v80_v56  ;;  %v77_v61 = vmul.f32 0.0625, %v61_v60 }
  0xaa   :  { %v83_v62 = vadd.f32 1e-08, %v79_v59  ;;  %818 = vrcp.f32 %v82_v55 }
  0xab   :  { %v81_v63 = vadd.f32 1e-08, %v77_v61 }
  0xac   :  { %820 = vrcp.f32 %v83_v62 }
  0xad   :  { %822 = vrcp.f32 %v81_v63 }
  0xb6   :  { %v817_v13 = vpop.eup %816 }
  0xb7   :  { %v819_v14 = vpop.eup %818  ;;  %v93_v15 = vmul.f32 %v817_v13, %v884_v6  ;;  %v92_v19 = vmul.f32 %v817_v13, %v882_v5 }
  0xb8   :  { %v97_v24 = vmul.f32 %v819_v14, %v880_v4 }
  0xb9   :  { %v821_v17 = vpop.eup %820  ;;  %v112_v25 = vmul.f32 %v108_v16, %v93_v15  ;;  %v111_v27 = vmul.f32 %v104_v18, %v92_v19 }
  0xba   :  { %v823_v20 = vpop.eup %822  ;;  %v99_v21 = vmul.f32 %v821_v17, %v891_v9  ;;  %v116_v31 = vmul.f32 %v108_v16, %v97_v24  ;;  %v98_v32 = vmul.f32 %v821_v17, %v889_v8  ;;  %v96_v9 = vmul.f32 %v819_v14, %v878_v3 }
  0xbb   :  { %v95_v22 = vmul.f32 %v823_v20, %v895_v11  ;;  %v94_v23 = vmul.f32 %v823_v20, %v893_v10 }
  0xbc   :  { %v118_v29 = vmul.f32 %v108_v16, %v99_v21  ;;  %v117_v4 = vmul.f32 %v104_v18, %v98_v32  ;;  %v115_v10 = vmul.f32 %v104_v18, %v96_v9 }
  0xbd   :  { %v114_v26 = vmul.f32 %v108_v16, %v95_v22  ;;  %v113_v28 = vmul.f32 %v104_v18, %v94_v23 }
  0xbe   :  { %v122_v5 = vpack.c.bf16 %v118_v29, %v116_v31  ;;  %v121_v11 = vpack.c.bf16 %v117_v4, %v115_v10 }
  0xbf   :  { %v120_v6 = vpack.c.bf16 %v114_v26, %v112_v25  ;;  %v119_v30 = vpack.c.bf16 %v113_v28, %v111_v27 }
  0xc1   :  { %539 = vmatprep.mubr.bf16.mxu0 %v120_v6  ;;  %592 = vmatprep.mubr.bf16.mxu1 %v120_v6 }
  0xc2   :  { %540 = vmatmul.mubr.bf16.vlgmr.msra.gmra.mxu0 %v119_v30  ;;  %593 = vmatmul.mubr.bf16.vlgmr.msra.gmra.mxu1 %v119_v30 }
  0xc3   :  { %549 = vmatprep.mubr.bf16.mxu0 %v122_v5  ;;  %602 = vmatprep.mubr.bf16.mxu1 %v122_v5 }
  0xca   :  { %550 = vmatmul.mubr.bf16.gmra.mxu0 %v121_v11  ;;  %603 = vmatmul.mubr.bf16.gmra.mxu1 %v121_v11 }
 0x182   :  { %v541_v33 = vpop.f32.mrf.mxu0  ;;  %v594_v34 = vpop.f32.mrf.mxu1 }
 0x183   :  { %613 = vst [vmem:[#allocation2] sm:$0xff] %v541_v33  ;;  %615 = vst [vmem:[#allocation2 + $0x10] sm:$0xff] %v594_v34 }
 0x184   :  { %v543_v35 = vpop.f32.mrf.mxu0  ;;  %v596_v8 = vpop.f32.mrf.mxu1 }
 0x185   :  { %614 = vst [vmem:[#allocation2 + $0x8] sm:$0xff] %v543_v35  ;;  %616 = vst [vmem:[#allocation2 + $0x18] sm:$0xff] %v596_v8 }
 0x186   :  { %v545_v36 = vpop.f32.mrf.mxu0  ;;  %v598_v37 = vpop.f32.mrf.mxu1 }
 0x187   :  { %617 = vst [vmem:[#allocation2 + $0x20] sm:$0xff] %v545_v36  ;;  %619 = vst [vmem:[#allocation2 + $0x30] sm:$0xff] %v598_v37 }
 0x188   :  { %v547_v3 = vpop.f32.mrf.mxu0  ;;  %v600_v38 = vpop.f32.mrf.mxu1 }
 0x189   :  { %618 = vst [vmem:[#allocation2 + $0x28] sm:$0xff] %v547_v3  ;;  %620 = vst [vmem:[#allocation2 + $0x38] sm:$0xff] %v600_v38 }
 0x18a   :  { %v551_v39 = vpop.f32.mrf.mxu0  ;;  %v604_v40 = vpop.f32.mrf.mxu1 }
 0x18b   :  { %621 = vst [vmem:[#allocation2 + $0x40] sm:$0xff] %v551_v39  ;;  %623 = vst [vmem:[#allocation2 + $0x50] sm:$0xff] %v604_v40 }
 0x18c   :  { %v553_v41 = vpop.f32.mrf.mxu0  ;;  %v606_v42 = vpop.f32.mrf.mxu1 }
 0x18d   :  { %622 = vst [vmem:[#allocation2 + $0x48] sm:$0xff] %v553_v41  ;;  %624 = vst [vmem:[#allocation2 + $0x58] sm:$0xff] %v606_v42 }
 0x18e   :  { %v555_v43 = vpop.f32.mrf.mxu0  ;;  %v608_v44 = vpop.f32.mrf.mxu1 }
 0x18f   :  { %625 = vst [vmem:[#allocation2 + $0x60] sm:$0xff] %v555_v43  ;;  %627 = vst [vmem:[#allocation2 + $0x70] sm:$0xff] %v608_v44 }
 0x190   :  { %v557_v45 = vpop.f32.mrf.mxu0  ;;  %v610_v46 = vpop.f32.mrf.mxu1 }
 0x191   :  { %626 = vst [vmem:[#allocation2 + $0x68] sm:$0xff] %v557_v45  ;;  %628 = vst [vmem:[#allocation2 + $0x78] sm:$0xff] %v610_v46 }
 0x192   :  { %835 = shalt.err (!%p832_p4)
}
 0x193   :  { %s847_s11 = smov 512   ;;  %s848_s12 = smov 32  }
 0x194   :  { %640 = dma.vmem_to_hbm [thread:$0]  %s635_s9, 2048, %s1122_s3, [#allocation3], %s847_s11, %s847_s11, %s848_s12  }
 0x195   :  { %844 = dma.done.wait [#allocation3], 2048  }
 0x196   :  { %845 = vsyncadd [#allocation3], 4294965248 }
 0x197   :  { %644 = vsyncpa [#allocation3], 1 }

// kernel: decoder_forward.12
= control target key start
LH: loop header
LB: loop body
LE: loop exit
PB: predicated region body
PF: predicated region fallthrough
CT: control target
= control target key end

     0   :  { %s2356_s0 = inlined_call_operand.vmem [shape: bf16[32,256], index: 0, kind: input, shape index: {}]   ;;  %s2357_s2 = inlined_call_operand.vmem [shape: bf16[256,512], index: 2, kind: input, shape index: {}]   ;;  %s2358_s4 = inlined_call_operand.vmem [shape: bf16[512,256], index: 4, kind: input, shape index: {}]   ;;  %s2359_s1 = inlined_call_operand.vmem [shape: f32[1,256], index: 1, kind: input, shape index: {}]   ;;  %s2360_s3 = inlined_call_operand.vmem [shape: f32[1,512], index: 3, kind: input, shape index: {}]   ;;  %s2361_s5 = inlined_call_operand.vmem [shape: f32[1,256], index: 5, kind: input, shape index: {}]   ;;  %s2362_s6 = inlined_call_operand.vmem [shape: bf16[32,256], index: 6, kind: output, shape index: {}]  }
   0x1   :  { %v29_v0 = vld [vmem:[%s2356_s0 + $0x10] sm:$0xff]  ;;  %v27_v1 = vld [vmem:[%s2356_s0] sm:$0xff]  ;;  %v30_v2 = vld [vmem:[%s2356_s0 + $0x18] sm:$0xff] }
   0x2   :  { %v1824_v3 = vunpack.c.l.bf16 %v29_v0  ;;  %v1826_v4 = vunpack.c.h.bf16 %v29_v0  ;;  %v1828_v5 = vunpack.c.l.bf16 %v27_v1  ;;  %v1830_v6 = vunpack.c.h.bf16 %v27_v1  ;;  %v28_v7 = vld [vmem:[%s2356_s0 + $0x8] sm:$0xff]  ;;  %v1540_v12 = vld [vmem:[%s2357_s2 + $0xe4] ss:$16 sps:$4 sm:$0xff]   ;;  %v1544_v18 = vld [vmem:[%s2357_s2 + $0xe0] ss:$16 sps:$4 sm:$0xff]  }
   0x3   :  { %v1835_v8 = vunpack.c.l.bf16 %v30_v2  ;;  %v1837_v9 = vunpack.c.h.bf16 %v30_v2  ;;  %v1839_v10 = vunpack.c.l.bf16 %v28_v7  ;;  %v1841_v11 = vunpack.c.h.bf16 %v28_v7  ;;  %v1542_v17 = vld [vmem:[%s2357_s2 + $0xec] ss:$16 sps:$4 sm:$0xff]   ;;  %v1545_v19 = vld [vmem:[%s2357_s2 + $0xe8] ss:$16 sps:$4 sm:$0xff]   ;;  %597 = vmatprep.subr.bf16.mxu0 %v1540_v12  ;;  %v1546_v24 = vld [vmem:[%s2357_s2 + $0xc4] ss:$16 sps:$4 sm:$0xff]  }
   0x4   :  { %v44_v13 = vmul.f32 %v1824_v3, %v1824_v3  ;;  %v45_v14 = vmul.f32 %v1826_v4, %v1826_v4  ;;  %v40_v15 = vmul.f32 %v1828_v5, %v1828_v5  ;;  %v41_v16 = vmul.f32 %v1830_v6, %v1830_v6  ;;  %650 = vmatprep.subr.bf16.mxu1 %v1542_v17  ;;  %v1548_v27 = vld [vmem:[%s2357_s2 + $0xcc] ss:$16 sps:$4 sm:$0xff]   ;;  %v1550_v28 = vld [vmem:[%s2357_s2 + $0xc0] ss:$16 sps:$4 sm:$0xff]   ;;  %v1551_v29 = vld [vmem:[%s2357_s2 + $0xc8] ss:$16 sps:$4 sm:$0xff]  }
   0x5   :  { %v46_v20 = vmul.f32 %v1835_v8, %v1835_v8  ;;  %v47_v21 = vmul.f32 %v1837_v9, %v1837_v9  ;;  %v42_v22 = vmul.f32 %v1839_v10, %v1839_v10  ;;  %v43_v23 = vmul.f32 %v1841_v11, %v1841_v11  ;;  %598 = vmatpush1.bf16.msra.mxu0 %v1544_v18  ;;  %v1552_v32 = vld [vmem:[%s2357_s2 + $0xa4] ss:$16 sps:$4 sm:$0xff]   ;;  %v1554_v33 = vld [vmem:[%s2357_s2 + $0xac] ss:$16 sps:$4 sm:$0xff]   ;;  %v1556_v34 = vld [vmem:[%s2357_s2 + $0xa0] ss:$16 sps:$4 sm:$0xff]  }
   0x6   :  { %v54_v25 = vadd.f32 %v45_v14, %v44_v13  ;;  %v48_v26 = vadd.f32 %v41_v16, %v40_v15  ;;  %651 = vmatpush1.bf16.msra.mxu1 %v1545_v19  ;;  %599 = vmatprep.subr.bf16.mxu0 %v1546_v24  ;;  %v1557_v35 = vld [vmem:[%s2357_s2 + $0xa8] ss:$16 sps:$4 sm:$0xff]   ;;  %v1558_v36 = vld [vmem:[%s2357_s2 + $0x84] ss:$16 sps:$4 sm:$0xff]   ;;  %v1560_v37 = vld [vmem:[%s2357_s2 + $0x8c] ss:$16 sps:$4 sm:$0xff]  }
   0x7   :  { %v57_v30 = vadd.f32 %v47_v21, %v46_v20  ;;  %v51_v31 = vadd.f32 %v43_v23, %v42_v22  ;;  %652 = vmatprep.subr.bf16.mxu1 %v1548_v27  ;;  %v1562_v38 = vld [vmem:[%s2357_s2 + $0x80] ss:$16 sps:$4 sm:$0xff]   ;;  %v1563_v39 = vld [vmem:[%s2357_s2 + $0x88] ss:$16 sps:$4 sm:$0xff]   ;;  %v1564_v40 = vld [vmem:[%s2357_s2 + $0x64] ss:$16 sps:$4 sm:$0xff]  }
   0x8   :  { %55 = vadd.xlane.f32.xlu1 %v54_v25  ;;  %49 = vadd.xlane.f32.xlu0 %v48_v26  ;;  %v1566_v41 = vld [vmem:[%s2357_s2 + $0x6c] ss:$16 sps:$4 sm:$0xff]   ;;  %v1568_v42 = vld [vmem:[%s2357_s2 + $0x60] ss:$16 sps:$4 sm:$0xff]   ;;  %v1569_v43 = vld [vmem:[%s2357_s2 + $0x68] ss:$16 sps:$4 sm:$0xff]  }
   0x9   :  { %600 = vmatpush1.bf16.msra.mxu0 %v1550_v28  ;;  %v1570_v44 = vld [vmem:[%s2357_s2 + $0x44] ss:$16 sps:$4 sm:$0xff]   ;;  %v1572_v45 = vld [vmem:[%s2357_s2 + $0x4c] ss:$16 sps:$4 sm:$0xff]   ;;  %v1574_v46 = vld [vmem:[%s2357_s2 + $0x40] ss:$16 sps:$4 sm:$0xff]  }
   0xa   :  { %653 = vmatpush1.bf16.msra.mxu1 %v1551_v29  ;;  %601 = vmatprep.subr.bf16.mxu0 %v1552_v32  ;;  %v1575_v47 = vld [vmem:[%s2357_s2 + $0x48] ss:$16 sps:$4 sm:$0xff]   ;;  %v1576_v48 = vld [vmem:[%s2357_s2 + $0x24] ss:$16 sps:$4 sm:$0xff]   ;;  %v1578_v49 = vld [vmem:[%s2357_s2 + $0x2c] ss:$16 sps:$4 sm:$0xff]  }
   0xb   :  { %654 = vmatprep.subr.bf16.mxu1 %v1554_v33  ;;  %v1580_v50 = vld [vmem:[%s2357_s2 + $0x20] ss:$16 sps:$4 sm:$0xff]   ;;  %v1581_v51 = vld [vmem:[%s2357_s2 + $0x28] ss:$16 sps:$4 sm:$0xff]   ;;  %v1582_v52 = vld [vmem:[%s2357_s2 + $0x4] ss:$16 sps:$4 sm:$0xff]  }
   0xc   :  { %58 = vadd.xlane.f32.xlu1 %v57_v30  ;;  %52 = vadd.xlane.f32.xlu0 %v51_v31  ;;  %v1584_v53 = vld [vmem:[%s2357_s2 + $0xc] ss:$16 sps:$4 sm:$0xff]   ;;  %v1586_v54 = vld [vmem:[%s2357_s2] ss:$16 sps:$4 sm:$0xff]   ;;  %v1587_v55 = vld [vmem:[%s2357_s2 + $0x8] ss:$16 sps:$4 sm:$0xff]  }
   0xd   :  { %602 = vmatpush1.bf16.msra.mxu0 %v1556_v34  ;;  %v1588_v56 = vld [vmem:[%s2357_s2 + $0x1e4] ss:$16 sps:$4 sm:$0xff]   ;;  %v1590_v57 = vld [vmem:[%s2357_s2 + $0x1ec] ss:$16 sps:$4 sm:$0xff]   ;;  %v1592_v58 = vld [vmem:[%s2357_s2 + $0x1e0] ss:$16 sps:$4 sm:$0xff]  }
   0xe   :  { %655 = vmatpush1.bf16.msra.mxu1 %v1557_v35  ;;  %603 = vmatprep.subr.bf16.mxu0 %v1558_v36  ;;  %v1593_v59 = vld [vmem:[%s2357_s2 + $0x1e8] ss:$16 sps:$4 sm:$0xff]   ;;  %v1594_v60 = vld [vmem:[%s2357_s2 + $0x1c4] ss:$16 sps:$4 sm:$0xff]   ;;  %v1596_v61 = vld [vmem:[%s2357_s2 + $0x1cc] ss:$16 sps:$4 sm:$0xff]  }
   0xf   :  { %656 = vmatprep.subr.bf16.mxu1 %v1560_v37  ;;  %v1598_v62 = vld [vmem:[%s2357_s2 + $0x1c0] ss:$16 sps:$4 sm:$0xff]   ;;  %v1599_v63 = vld [vmem:[%s2357_s2 + $0x1c8] ss:$16 sps:$4 sm:$0xff]   ;;  %v1600_v0 = vld [vmem:[%s2357_s2 + $0x1a4] ss:$16 sps:$4 sm:$0xff]  }
  0x10   :  { %v1602_v1 = vld [vmem:[%s2357_s2 + $0x1ac] ss:$16 sps:$4 sm:$0xff]   ;;  %v1604_v2 = vld [vmem:[%s2357_s2 + $0x1a0] ss:$16 sps:$4 sm:$0xff]   ;;  %v1605_v7 = vld [vmem:[%s2357_s2 + $0x1a8] ss:$16 sps:$4 sm:$0xff]  }
  0x11   :  { %604 = vmatpush1.bf16.msra.mxu0 %v1562_v38  ;;  %v1606_v12 = vld [vmem:[%s2357_s2 + $0x184] ss:$16 sps:$4 sm:$0xff]   ;;  %v1608_v13 = vld [vmem:[%s2357_s2 + $0x18c] ss:$16 sps:$4 sm:$0xff]   ;;  %v1610_v14 = vld [vmem:[%s2357_s2 + $0x180] ss:$16 sps:$4 sm:$0xff]  }
  0x12   :  { %657 = vmatpush1.bf16.msra.mxu1 %v1563_v39  ;;  %605 = vmatprep.subr.bf16.mxu0 %v1564_v40  ;;  %v1611_v15 = vld [vmem:[%s2357_s2 + $0x188] ss:$16 sps:$4 sm:$0xff]   ;;  %v1612_v16 = vld [vmem:[%s2357_s2 + $0x164] ss:$16 sps:$4 sm:$0xff]   ;;  %v1614_v17 = vld [vmem:[%s2357_s2 + $0x16c] ss:$16 sps:$4 sm:$0xff]  }
  0x13   :  { %658 = vmatprep.subr.bf16.mxu1 %v1566_v41  ;;  %v1616_v18 = vld [vmem:[%s2357_s2 + $0x160] ss:$16 sps:$4 sm:$0xff]   ;;  %v1617_v19 = vld [vmem:[%s2357_s2 + $0x168] ss:$16 sps:$4 sm:$0xff]   ;;  %v1618_v20 = vld [vmem:[%s2357_s2 + $0x144] ss:$16 sps:$4 sm:$0xff]  }
  0x14   :  { %v1620_v21 = vld [vmem:[%s2357_s2 + $0x14c] ss:$16 sps:$4 sm:$0xff]   ;;  %v1622_v22 = vld [vmem:[%s2357_s2 + $0x140] ss:$16 sps:$4 sm:$0xff]   ;;  %v1623_v23 = vld [vmem:[%s2357_s2 + $0x148] ss:$16 sps:$4 sm:$0xff]  }
  0x15   :  { %606 = vmatpush1.bf16.msra.mxu0 %v1568_v42  ;;  %v1624_v24 = vld [vmem:[%s2357_s2 + $0x124] ss:$16 sps:$4 sm:$0xff]   ;;  %v1626_v25 = vld [vmem:[%s2357_s2 + $0x12c] ss:$16 sps:$4 sm:$0xff]   ;;  %v1628_v26 = vld [vmem:[%s2357_s2 + $0x120] ss:$16 sps:$4 sm:$0xff]  }
  0x16   :  { %659 = vmatpush1.bf16.msra.mxu1 %v1569_v43  ;;  %607 = vmatprep.subr.bf16.mxu0 %v1570_v44  ;;  %v1629_v27 = vld [vmem:[%s2357_s2 + $0x128] ss:$16 sps:$4 sm:$0xff]   ;;  %v1630_v28 = vld [vmem:[%s2357_s2 + $0x104] ss:$16 sps:$4 sm:$0xff]   ;;  %v1632_v29 = vld [vmem:[%s2357_s2 + $0x10c] ss:$16 sps:$4 sm:$0xff]  }
  0x17   :  { %660 = vmatprep.subr.bf16.mxu1 %v1572_v45  ;;  %v1634_v30 = vld [vmem:[%s2357_s2 + $0x100] ss:$16 sps:$4 sm:$0xff]   ;;  %v1635_v31 = vld [vmem:[%s2357_s2 + $0x108] ss:$16 sps:$4 sm:$0xff]   ;;  %v1638_v32 = vld [vmem:[%s2358_s4 + $0x74] ss:$8 sps:$4 sm:$0xff]  }
  0x18   :  { %v1641_v33 = vld [vmem:[%s2358_s4 + $0x174] ss:$8 sps:$4 sm:$0xff]  }
  0x19   :  { %608 = vmatpush1.bf16.msra.mxu0 %v1574_v46 }
  0x1a   :  { %661 = vmatpush1.bf16.msra.mxu1 %v1575_v47  ;;  %609 = vmatprep.subr.bf16.mxu0 %v1576_v48 }
  0x1b   :  { %662 = vmatprep.subr.bf16.mxu1 %v1578_v49 }
  0x1d   :  { %610 = vmatpush1.bf16.msra.mxu0 %v1580_v50 }
  0x1e   :  { %663 = vmatpush1.bf16.msra.mxu1 %v1581_v51  ;;  %611 = vmatprep.subr.bf16.mxu0 %v1582_v52 }
  0x1f   :  { %664 = vmatprep.subr.bf16.mxu1 %v1584_v53 }
  0x21   :  { %612 = vmatpush1.bf16.msra.mxu0 %v1586_v54 }
  0x22   :  { %665 = vmatpush1.bf16.msra.mxu1 %v1587_v55  ;;  %613 = vmatprep.subr.bf16.mxu0 %v1588_v56 }
  0x23   :  { %666 = vmatprep.subr.bf16.mxu1 %v1590_v57 }
  0x25   :  { %614 = vmatpush2.bf16.msra.mxu0 %v1592_v58 }
  0x26   :  { %667 = vmatpush2.bf16.msra.mxu1 %v1593_v59  ;;  %615 = vmatprep.subr.bf16.mxu0 %v1594_v60 }
  0x27   :  { %668 = vmatprep.subr.bf16.mxu1 %v1596_v61 }
  0x29   :  { %616 = vmatpush2.bf16.msra.mxu0 %v1598_v62 }
  0x2a   :  { %669 = vmatpush2.bf16.msra.mxu1 %v1599_v63  ;;  %617 = vmatprep.subr.bf16.mxu0 %v1600_v0 }
  0x2b   :  { %670 = vmatprep.subr.bf16.mxu1 %v1602_v1 }
  0x2d   :  { %618 = vmatpush2.bf16.msra.mxu0 %v1604_v2  ;;  %v113_v2 = vlaneseq }
  0x2e   :  { %671 = vmatpush2.bf16.msra.mxu1 %v1605_v7  ;;  %619 = vmatprep.subr.bf16.mxu0 %v1606_v12 }
  0x2f   :  { %672 = vmatprep.subr.bf16.mxu1 %v1608_v13  ;;  %v2057_v7 = vshrl.u32 %v113_v2, 7  ;;  %v39_v13 = vld [vmem:[%s2359_s1] sm:$0x3]  ;;  %v1687_v2 = vld [vmem:[%s2358_s4 + $0x1f0] ss:$8 sps:$4 sm:$0xff]  }
  0x31   :  { %620 = vmatpush2.bf16.msra.mxu0 %v1610_v14  ;;  %v2060_v12 = vsub.s32 1, %v2057_v7  ;;  %v2066_v14 = vsub.s32 0, %v2057_v7 }
  0x32   :  { %673 = vmatpush2.bf16.msra.mxu1 %v1611_v15  ;;  %621 = vmatprep.subr.bf16.mxu0 %v1612_v16 }
  0x33   :  { %674 = vmatprep.subr.bf16.mxu1 %v1614_v17 }
  0x35   :  { %622 = vmatpush2.bf16.msra.mxu0 %v1616_v18  ;;  %v120_v18 = vrot.slane %v39_v13, %v2060_v12 }
  0x36   :  { %675 = vmatpush2.bf16.msra.mxu1 %v1617_v19  ;;  %623 = vmatprep.subr.bf16.mxu0 %v1618_v20  ;;  %v116_v20 = vrot.slane %v39_v13, %v2066_v14  ;;  %v1692_v13 = vld [vmem:[%s2358_s4 + $0xe4] ss:$8 sps:$4 sm:$0xff]  }
  0x37   :  { %676 = vmatprep.subr.bf16.mxu1 %v1620_v21 }
  0x39   :  { %624 = vmatpush2.bf16.msra.mxu0 %v1622_v22 }
  0x3a   :  { %677 = vmatpush2.bf16.msra.mxu1 %v1623_v23  ;;  %625 = vmatprep.subr.bf16.mxu0 %v1624_v24 }
  0x3b   :  { %678 = vmatprep.subr.bf16.mxu1 %v1626_v25 }
  0x3d   :  { %626 = vmatpush2.bf16.msra.mxu0 %v1628_v26 }
  0x3e   :  { %679 = vmatpush2.bf16.msra.mxu1 %v1629_v27  ;;  %627 = vmatprep.subr.bf16.mxu0 %v1630_v28 }
  0x3f   :  { %680 = vmatprep.subr.bf16.mxu1 %v1632_v29 }
  0x41   :  { %628 = vmatpush2.bf16.msra.mxu0 %v1634_v30 }
  0x42   :  { %681 = vmatpush2.bf16.msra.mxu1 %v1635_v31  ;;  %1183 = vmatprep.subr.bf16.mxu0 %v1638_v32 }
  0x43   :  { %1236 = vmatprep.subr.bf16.mxu1 %v1641_v33 }
  0x91   :  { %v56_v34 = vpop.xlane.xlu1 %55  ;;  %v50_v35 = vpop.xlane.xlu0 %49 }
  0x92   :  { %1732 = vrsqrt.f32 %v56_v34  ;;  %vm76_vm0 = vcmp.eq.f32.partialorder %v56_v34, inf  ;;  %v79_v41 = vand.u32 2147483648, %v56_v34  ;;  %vm78_vm1 = vcmp.eq.f32.partialorder %v56_v34, 0.0 }
  0x93   :  { %1734 = vrsqrt.f32 %v50_v35  ;;  %vm62_vm2 = vcmp.eq.f32.partialorder %v50_v35, inf  ;;  %v65_v44 = vand.u32 2147483648, %v50_v35  ;;  %vm64_vm3 = vcmp.eq.f32.partialorder %v50_v35, 0.0 }
  0x95   :  { %v59_v36 = vpop.xlane.xlu1 %58  ;;  %v53_v37 = vpop.xlane.xlu0 %52 }
  0x96   :  { %1736 = vrsqrt.f32 %v59_v36  ;;  %vm83_vm4 = vcmp.eq.f32.partialorder %v59_v36, inf  ;;  %vm85_vm5 = vcmp.eq.f32.partialorder %v59_v36, 0.0  ;;  %v86_v53 = vand.u32 2147483648, %v59_v36 }
  0x97   :  { %1738 = vrsqrt.f32 %v53_v37  ;;  %vm69_vm6 = vcmp.eq.f32.partialorder %v53_v37, inf  ;;  %vm71_vm7 = vcmp.eq.f32.partialorder %v53_v37, 0.0  ;;  %v72_v56 = vand.u32 2147483648, %v53_v37 }
  0x9f   :  { %v1733_v38 = vpop.eup %1732 }
  0xa0   :  { %v1735_v39 = vpop.eup %1734  ;;  %v75_v40 = vmul.f32 %v1733_v38, %v56_v34  ;;  %v1650_v38 = vld [vmem:[%s2358_s4 + $0x54] ss:$8 sps:$4 sm:$0xff]  }
  0xa1   :  { %v61_v42 = vmul.f32 %v1735_v39, %v50_v35 }
  0xa2   :  { %v77_v43 = vsel %vm76_vm0, %v56_v34, %v75_v40 }
  0xa3   :  { %v1737_v45 = vpop.eup %1736  ;;  %v80_v46 = vsel %vm78_vm1, %v79_v41, %v77_v43  ;;  %v63_v47 = vsel %vm62_vm2, %v50_v35, %v61_v42  ;;  %v1648_v41 = vld [vmem:[%s2358_s4 + $0x50] ss:$8 sps:$4 sm:$0xff]   ;;  %v1656_v43 = vld [vmem:[%s2358_s4 + $0x44] ss:$8 sps:$4 sm:$0xff]  }
  0xa4   :  { %v1739_v48 = vpop.eup %1738  ;;  %v90_v49 = vmul.f32 0.0625, %v80_v46  ;;  %v66_v50 = vsel %vm64_vm3, %v65_v44, %v63_v47  ;;  %v82_v51 = vmul.f32 %v1737_v45, %v59_v36  ;;  %v1651_v42 = vld [vmem:[%s2358_s4 + $0x150] ss:$8 sps:$4 sm:$0xff]   ;;  %v1659_v44 = vld [vmem:[%s2358_s4 + $0x144] ss:$8 sps:$4 sm:$0xff]  }
  0xa5   :  { %v88_v52 = vmul.f32 0.0625, %v66_v50  ;;  %v68_v54 = vmul.f32 %v1739_v48, %v53_v37  ;;  %v1654_v45 = vld [vmem:[%s2358_s4 + $0x40] ss:$8 sps:$4 sm:$0xff]   ;;  %v1662_v47 = vld [vmem:[%s2358_s4 + $0x34] ss:$8 sps:$4 sm:$0xff]  }
  0xa6   :  { %v84_v55 = vsel %vm83_vm4, %v59_v36, %v82_v51  ;;  %v94_v57 = vadd.f32 1e-08, %v90_v49  ;;  %v1642_v36 = vld [vmem:[%s2358_s4 + $0x60] ss:$8 sps:$4 sm:$0xff]   ;;  %v1665_v48 = vld [vmem:[%s2358_s4 + $0x134] ss:$8 sps:$4 sm:$0xff]  }
  0xa7   :  { %v92_v58 = vadd.f32 1e-08, %v88_v52  ;;  %v87_v59 = vsel %vm85_vm5, %v86_v53, %v84_v55  ;;  %v70_v60 = vsel %vm69_vm6, %v53_v37, %v68_v54  ;;  %v1645_v37 = vld [vmem:[%s2358_s4 + $0x160] ss:$8 sps:$4 sm:$0xff]   ;;  %v1660_v49 = vld [vmem:[%s2358_s4 + $0x30] ss:$8 sps:$4 sm:$0xff]  }
  0xa8   :  { %v91_v61 = vmul.f32 0.0625, %v87_v59  ;;  %v73_v62 = vsel %vm71_vm7, %v72_v56, %v70_v60  ;;  %v1657_v46 = vld [vmem:[%s2358_s4 + $0x140] ss:$8 sps:$4 sm:$0xff]   ;;  %v1663_v50 = vld [vmem:[%s2358_s4 + $0x130] ss:$8 sps:$4 sm:$0xff]  }
  0xa9   :  { %1740 = vrcp.f32 %v92_v58  ;;  %v89_v63 = vmul.f32 0.0625, %v73_v62  ;;  %v1668_v51 = vld [vmem:[%s2358_s4 + $0x24] ss:$8 sps:$4 sm:$0xff]   ;;  %v1666_v53 = vld [vmem:[%s2358_s4 + $0x20] ss:$8 sps:$4 sm:$0xff]  }
  0xaa   :  { %v95_v0 = vadd.f32 1e-08, %v91_v61  ;;  %1742 = vrcp.f32 %v94_v57  ;;  %v1671_v52 = vld [vmem:[%s2358_s4 + $0x124] ss:$8 sps:$4 sm:$0xff]   ;;  %v1669_v54 = vld [vmem:[%s2358_s4 + $0x120] ss:$8 sps:$4 sm:$0xff]  }
  0xab   :  { %v93_v1 = vadd.f32 1e-08, %v89_v63  ;;  %v1674_v55 = vld [vmem:[%s2358_s4 + $0x14] ss:$8 sps:$4 sm:$0xff]   ;;  %v1672_v57 = vld [vmem:[%s2358_s4 + $0x10] ss:$8 sps:$4 sm:$0xff]  }
  0xac   :  { %1744 = vrcp.f32 %v95_v0  ;;  %v1677_v56 = vld [vmem:[%s2358_s4 + $0x114] ss:$8 sps:$4 sm:$0xff]   ;;  %v1675_v58 = vld [vmem:[%s2358_s4 + $0x110] ss:$8 sps:$4 sm:$0xff]   ;;  %v1680_v59 = vld [vmem:[%s2358_s4 + $0x4] ss:$8 sps:$4 sm:$0xff]  }
  0xad   :  { %1746 = vrcp.f32 %v93_v1  ;;  %v1683_v60 = vld [vmem:[%s2358_s4 + $0x104] ss:$8 sps:$4 sm:$0xff]   ;;  %v1678_v61 = vld [vmem:[%s2358_s4] ss:$8 sps:$4 sm:$0xff]   ;;  %v1686_v63 = vld [vmem:[%s2358_s4 + $0xf4] ss:$8 sps:$4 sm:$0xff]  }
  0xae   :  { %v1681_v62 = vld [vmem:[%s2358_s4 + $0x100] ss:$8 sps:$4 sm:$0xff]   ;;  %v1689_v0 = vld [vmem:[%s2358_s4 + $0x1f4] ss:$8 sps:$4 sm:$0xff]   ;;  %v1684_v1 = vld [vmem:[%s2358_s4 + $0xf0] ss:$8 sps:$4 sm:$0xff]  }
  0xb6   :  { %v1741_v15 = vpop.eup %1740 }
  0xb7   :  { %v1743_v16 = vpop.eup %1742  ;;  %v105_v17 = vmul.f32 %v1741_v15, %v1830_v6  ;;  %v104_v21 = vmul.f32 %v1741_v15, %v1828_v5  ;;  %v1636_v5 = vld [vmem:[%s2358_s4 + $0x70] ss:$8 sps:$4 sm:$0xff]   ;;  %v1695_v15 = vld [vmem:[%s2358_s4 + $0x1e4] ss:$8 sps:$4 sm:$0xff]  }
  0xb8   :  { %v109_v26 = vmul.f32 %v1743_v16, %v1826_v4 }
  0xb9   :  { %v1745_v19 = vpop.eup %1744  ;;  %v124_v27 = vmul.f32 %v120_v18, %v105_v17  ;;  %v123_v29 = vmul.f32 %v116_v20, %v104_v21  ;;  %v1693_v17 = vld [vmem:[%s2358_s4 + $0x1e0] ss:$8 sps:$4 sm:$0xff]   ;;  %v1699_v21 = vld [vmem:[%s2358_s4 + $0x1d0] ss:$8 sps:$4 sm:$0xff]  }
  0xba   :  { %v1747_v22 = vpop.eup %1746  ;;  %v111_v23 = vmul.f32 %v1745_v19, %v1837_v9  ;;  %v128_v33 = vmul.f32 %v120_v18, %v109_v26  ;;  %v110_v34 = vmul.f32 %v1745_v19, %v1835_v8  ;;  %v1639_v9 = vld [vmem:[%s2358_s4 + $0x170] ss:$8 sps:$4 sm:$0xff]   ;;  %v108_v8 = vmul.f32 %v1743_v16, %v1824_v3  ;;  %v1653_v3 = vld [vmem:[%s2358_s4 + $0x154] ss:$8 sps:$4 sm:$0xff]   ;;  %v1690_v16 = vld [vmem:[%s2358_s4 + $0xe0] ss:$8 sps:$4 sm:$0xff]  }
  0xbb   :  { %v107_v24 = vmul.f32 %v1747_v22, %v1841_v11  ;;  %v106_v25 = vmul.f32 %v1747_v22, %v1839_v10  ;;  %v1644_v10 = vld [vmem:[%s2358_s4 + $0x64] ss:$8 sps:$4 sm:$0xff]   ;;  %v1701_v19 = vld [vmem:[%s2358_s4 + $0x1d4] ss:$8 sps:$4 sm:$0xff]  }
  0xbc   :  { %v130_v30 = vmul.f32 %v120_v18, %v111_v23  ;;  %v1647_v11 = vld [vmem:[%s2358_s4 + $0x164] ss:$8 sps:$4 sm:$0xff]   ;;  %v129_v35 = vmul.f32 %v116_v20, %v110_v34  ;;  %v127_v39 = vmul.f32 %v116_v20, %v108_v8  ;;  %v1710_v26 = vld [vmem:[%s2358_s4 + $0xb4] ss:$8 sps:$4 sm:$0xff]   ;;  %v1729_v8 = vld [vmem:[%s2358_s4 + $0x180] ss:$8 sps:$4 sm:$0xff]  }
  0xbd   :  { %v126_v28 = vmul.f32 %v120_v18, %v107_v24  ;;  %v125_v6 = vmul.f32 %v116_v20, %v106_v25  ;;  %v1698_v18 = vld [vmem:[%s2358_s4 + $0xd4] ss:$8 sps:$4 sm:$0xff]   ;;  %v1696_v20 = vld [vmem:[%s2358_s4 + $0xd0] ss:$8 sps:$4 sm:$0xff]   ;;  %v1704_v22 = vld [vmem:[%s2358_s4 + $0xc4] ss:$8 sps:$4 sm:$0xff]  }
  0xbe   :  { %v1539_v4 = vpack.c.bf16 %v130_v30, %v128_v33  ;;  %v1538_v40 = vpack.c.bf16 %v129_v35, %v127_v39  ;;  %v1707_v23 = vld [vmem:[%s2358_s4 + $0x1c4] ss:$8 sps:$4 sm:$0xff]   ;;  %v1702_v24 = vld [vmem:[%s2358_s4 + $0xc0] ss:$8 sps:$4 sm:$0xff]   ;;  %v1722_v33 = vld [vmem:[%s2358_s4 + $0x94] ss:$8 sps:$4 sm:$0xff]  }
  0xbf   :  { %v1537_v31 = vpack.c.bf16 %v126_v28, %v124_v27  ;;  %v1536_v32 = vpack.c.bf16 %v125_v6, %v123_v29  ;;  %v1705_v25 = vld [vmem:[%s2358_s4 + $0x1c0] ss:$8 sps:$4 sm:$0xff]   ;;  %v1713_v27 = vld [vmem:[%s2358_s4 + $0x1b4] ss:$8 sps:$4 sm:$0xff]   ;;  %v1708_v28 = vld [vmem:[%s2358_s4 + $0xb0] ss:$8 sps:$4 sm:$0xff]  }
  0xc0   :  { %v1711_v29 = vld [vmem:[%s2358_s4 + $0x1b0] ss:$8 sps:$4 sm:$0xff]   ;;  %v1716_v6 = vld [vmem:[%s2358_s4 + $0xa4] ss:$8 sps:$4 sm:$0xff]   ;;  %v1725_v34 = vld [vmem:[%s2358_s4 + $0x194] ss:$8 sps:$4 sm:$0xff]  }
  0xc1   :  { %629 = vmatprep.mubr.bf16.mxu0 %v1537_v31  ;;  %682 = vmatprep.mubr.bf16.mxu1 %v1537_v31  ;;  %v1719_v30 = vld [vmem:[%s2358_s4 + $0x1a4] ss:$8 sps:$4 sm:$0xff]   ;;  %v1714_v31 = vld [vmem:[%s2358_s4 + $0xa0] ss:$8 sps:$4 sm:$0xff]   ;;  %v247_v35 = vsub.s32 2, %v2057_v7 }
  0xc2   :  { %630 = vmatmul.mubr.bf16.vlgmr.msra.gmra.mxu0 %v1536_v32  ;;  %683 = vmatmul.mubr.bf16.vlgmr.msra.gmra.mxu1 %v1536_v32  ;;  %v1717_v32 = vld [vmem:[%s2358_s4 + $0x1a0] ss:$8 sps:$4 sm:$0xff]  }
  0xc3   :  { %639 = vmatprep.mubr.bf16.mxu0 %v1539_v4  ;;  %692 = vmatprep.mubr.bf16.mxu1 %v1539_v4  ;;  %v1728_v4 = vld [vmem:[%s2358_s4 + $0x84] ss:$8 sps:$4 sm:$0xff]  }
  0xc4   :  { %1184 = vmatpush1.bf16.msra.mxu0 %v1636_v5  ;;  %1237 = vmatpush1.bf16.msra.mxu1 %v1639_v9  ;;  %v1720_v5 = vld [vmem:[%s2358_s4 + $0x90] ss:$8 sps:$4 sm:$0xff]  }
  0xc5   :  { %1185 = vmatprep.subr.bf16.mxu0 %v1644_v10  ;;  %1238 = vmatprep.subr.bf16.mxu1 %v1647_v11  ;;  %v1723_v9 = vld [vmem:[%s2358_s4 + $0x190] ss:$8 sps:$4 sm:$0xff]   ;;  %v1731_v10 = vld [vmem:[%s2358_s4 + $0x184] ss:$8 sps:$4 sm:$0xff]   ;;  %v1726_v11 = vld [vmem:[%s2358_s4 + $0x80] ss:$8 sps:$4 sm:$0xff]  }
  0xc8   :  { %1186 = vmatpush1.bf16.msra.mxu0 %v1642_v36  ;;  %1239 = vmatpush1.bf16.msra.mxu1 %v1645_v37  ;;  %v235_v36 = vld [vmem:[%s2360_s3] sm:$0xf]  ;;  %v251_v37 = vsub.s32 3, %v2057_v7 }
  0xc9   :  { %1187 = vmatprep.subr.bf16.mxu0 %v1650_v38  ;;  %1240 = vmatprep.subr.bf16.mxu1 %v1653_v3  ;;  %v240_v38 = vrot.slane %v235_v36, %v2066_v14  ;;  %v248_v3 = vrot.slane %v235_v36, %v247_v35 }
  0xca   :  { %640 = vmatmul.mubr.bf16.gmra.mxu0 %v1538_v40  ;;  %693 = vmatmul.mubr.bf16.gmra.mxu1 %v1538_v40 }
  0xcc   :  { %1188 = vmatpush1.bf16.msra.mxu0 %v1648_v41  ;;  %1241 = vmatpush1.bf16.msra.mxu1 %v1651_v42  ;;  %v244_v41 = vrot.slane %v235_v36, %v2060_v12  ;;  %v252_v42 = vrot.slane %v235_v36, %v251_v37 }
  0xcd   :  { %1189 = vmatprep.subr.bf16.mxu0 %v1656_v43  ;;  %1242 = vmatprep.subr.bf16.mxu1 %v1659_v44 }
  0xd0   :  { %1190 = vmatpush1.bf16.msra.mxu0 %v1654_v45  ;;  %1243 = vmatpush1.bf16.msra.mxu1 %v1657_v46 }
  0xd1   :  { %1191 = vmatprep.subr.bf16.mxu0 %v1662_v47  ;;  %1244 = vmatprep.subr.bf16.mxu1 %v1665_v48 }
  0xd4   :  { %1192 = vmatpush1.bf16.msra.mxu0 %v1660_v49  ;;  %1245 = vmatpush1.bf16.msra.mxu1 %v1663_v50 }
  0xd5   :  { %1193 = vmatprep.subr.bf16.mxu0 %v1668_v51  ;;  %1246 = vmatprep.subr.bf16.mxu1 %v1671_v52 }
  0xd8   :  { %1194 = vmatpush1.bf16.msra.mxu0 %v1666_v53  ;;  %1247 = vmatpush1.bf16.msra.mxu1 %v1669_v54 }
  0xd9   :  { %1195 = vmatprep.subr.bf16.mxu0 %v1674_v55  ;;  %1248 = vmatprep.subr.bf16.mxu1 %v1677_v56 }
  0xdc   :  { %1196 = vmatpush1.bf16.msra.mxu0 %v1672_v57  ;;  %1249 = vmatpush1.bf16.msra.mxu1 %v1675_v58 }
  0xdd   :  { %1197 = vmatprep.subr.bf16.mxu0 %v1680_v59  ;;  %1250 = vmatprep.subr.bf16.mxu1 %v1683_v60 }
  0xe0   :  { %1198 = vmatpush1.bf16.msra.mxu0 %v1678_v61  ;;  %1251 = vmatpush1.bf16.msra.mxu1 %v1681_v62 }
  0xe1   :  { %1199 = vmatprep.subr.bf16.mxu0 %v1686_v63  ;;  %1252 = vmatprep.subr.bf16.mxu1 %v1689_v0 }
  0xe4   :  { %1200 = vmatpush2.bf16.msra.mxu0 %v1684_v1  ;;  %1253 = vmatpush2.bf16.msra.mxu1 %v1687_v2 }
  0xe5   :  { %1201 = vmatprep.subr.bf16.mxu0 %v1692_v13  ;;  %1254 = vmatprep.subr.bf16.mxu1 %v1695_v15 }
  0xe8   :  { %1202 = vmatpush2.bf16.msra.mxu0 %v1690_v16  ;;  %1255 = vmatpush2.bf16.msra.mxu1 %v1693_v17 }
  0xe9   :  { %1203 = vmatprep.subr.bf16.mxu0 %v1698_v18  ;;  %1256 = vmatprep.subr.bf16.mxu1 %v1701_v19 }
  0xec   :  { %1204 = vmatpush2.bf16.msra.mxu0 %v1696_v20  ;;  %1257 = vmatpush2.bf16.msra.mxu1 %v1699_v21 }
  0xed   :  { %1205 = vmatprep.subr.bf16.mxu0 %v1704_v22  ;;  %1258 = vmatprep.subr.bf16.mxu1 %v1707_v23 }
  0xf0   :  { %1206 = vmatpush2.bf16.msra.mxu0 %v1702_v24  ;;  %1259 = vmatpush2.bf16.msra.mxu1 %v1705_v25 }
  0xf1   :  { %1207 = vmatprep.subr.bf16.mxu0 %v1710_v26  ;;  %1260 = vmatprep.subr.bf16.mxu1 %v1713_v27 }
  0xf4   :  { %1208 = vmatpush2.bf16.msra.mxu0 %v1708_v28  ;;  %1261 = vmatpush2.bf16.msra.mxu1 %v1711_v29 }
  0xf5   :  { %1209 = vmatprep.subr.bf16.mxu0 %v1716_v6  ;;  %1262 = vmatprep.subr.bf16.mxu1 %v1719_v30 }
  0xf8   :  { %1210 = vmatpush2.bf16.msra.mxu0 %v1714_v31  ;;  %1263 = vmatpush2.bf16.msra.mxu1 %v1717_v32 }
  0xf9   :  { %1211 = vmatprep.subr.bf16.mxu0 %v1722_v33  ;;  %1264 = vmatprep.subr.bf16.mxu1 %v1725_v34 }
  0xfc   :  { %1212 = vmatpush2.bf16.msra.mxu0 %v1720_v5  ;;  %1265 = vmatpush2.bf16.msra.mxu1 %v1723_v9 }
  0xfd   :  { %1213 = vmatprep.subr.bf16.mxu0 %v1728_v4  ;;  %1266 = vmatprep.subr.bf16.mxu1 %v1731_v10 }
 0x100   :  { %1214 = vmatpush2.bf16.msra.mxu0 %v1726_v11  ;;  %1267 = vmatpush2.bf16.msra.mxu1 %v1729_v8 }
 0x182   :  { %v631_v39 = vpop.f32.mrf.mxu0  ;;  %v684_v40 = vpop.f32.mrf.mxu1 }
 0x183   :  { %v2271_v43 = vadd.f32 %v631_v39, %v240_v38  ;;  %v2273_v44 = vadd.f32 %v684_v40, %v248_v3 }
 0x184   :  { %v633_v45 = vpop.f32.mrf.mxu0  ;;  %v686_v46 = vpop.f32.mrf.mxu1 }
 0x185   :  { %v719_v47 = vmul.f32 0.70710677, %v2271_v43  ;;  %v721_v48 = vmul.f32 0.70710677, %v2273_v44  ;;  %v634_v49 = vadd.f32 %v633_v45, %v244_v41  ;;  %v2277_v7 = vadd.f32 %v686_v46, %v252_v42 }
 0x186   :  { %v635_v50 = vpop.f32.mrf.mxu0  ;;  %v688_v51 = vpop.f32.mrf.mxu1  ;;  %v703_v8 = vmul.f32 0.5, %v2271_v43 }
 0x187   :  { %v2279_v52 = vadd.f32 %v635_v50, %v240_v38  ;;  %v2281_v53 = vadd.f32 %v688_v51, %v248_v3  ;;  %1748 = verf.f32 %v719_v47  ;;  %v720_v54 = vmul.f32 0.70710677, %v634_v49 }
 0x188   :  { %v637_v55 = vpop.f32.mrf.mxu0  ;;  %v690_v56 = vpop.f32.mrf.mxu1  ;;  %1750 = verf.f32 %v721_v48  ;;  %v722_v57 = vmul.f32 0.70710677, %v2277_v7  ;;  %v704_v35 = vmul.f32 0.5, %v634_v49  ;;  %v706_v51 = vmul.f32 0.5, %v2277_v7 }
 0x189   :  { %v723_v58 = vmul.f32 0.70710677, %v2279_v52  ;;  %1752 = verf.f32 %v720_v54  ;;  %v725_v59 = vmul.f32 0.70710677, %v2281_v53  ;;  %v638_v60 = vadd.f32 %v637_v55, %v244_v41 }
 0x18a   :  { %v2286_v61 = vadd.f32 %v690_v56, %v252_v42  ;;  %v641_v62 = vpop.f32.mrf.mxu0  ;;  %v694_v63 = vpop.f32.mrf.mxu1  ;;  %1754 = verf.f32 %v722_v57  ;;  %v707_v40 = vmul.f32 0.5, %v2279_v52  ;;  %v709_v46 = vmul.f32 0.5, %v2281_v53 }
 0x18b   :  { %v2288_v0 = vadd.f32 %v641_v62, %v240_v38  ;;  %v2290_v1 = vadd.f32 %v694_v63, %v248_v3  ;;  %1756 = verf.f32 %v723_v58  ;;  %v724_v2 = vmul.f32 0.70710677, %v638_v60 }
 0x18c   :  { %v643_v13 = vpop.f32.mrf.mxu0  ;;  %v696_v15 = vpop.f32.mrf.mxu1  ;;  %1758 = verf.f32 %v725_v59  ;;  %v726_v16 = vmul.f32 0.70710677, %v2286_v61  ;;  %v708_v47 = vmul.f32 0.5, %v638_v60  ;;  %v710_v43 = vmul.f32 0.5, %v2286_v61 }
 0x18d   :  { %v727_v17 = vmul.f32 0.70710677, %v2288_v0  ;;  %1760 = verf.f32 %v724_v2  ;;  %v729_v18 = vmul.f32 0.70710677, %v2290_v1  ;;  %v2295_v19 = vadd.f32 %v643_v13, %v244_v41 }
 0x18e   :  { %v645_v20 = vpop.f32.mrf.mxu0  ;;  %v698_v21 = vpop.f32.mrf.mxu1  ;;  %1762 = verf.f32 %v726_v16  ;;  %v2297_v22 = vadd.f32 %v696_v15, %v252_v42  ;;  %v705_v56 = vmul.f32 0.5, %v2273_v44 }
 0x18f   :  { %v2299_v23 = vadd.f32 %v645_v20, %v240_v38  ;;  %v2301_v24 = vadd.f32 %v698_v21, %v248_v3  ;;  %1764 = verf.f32 %v727_v17  ;;  %v728_v25 = vmul.f32 0.70710677, %v2295_v19 }
 0x190   :  { %v647_v26 = vpop.f32.mrf.mxu0  ;;  %v700_v27 = vpop.f32.mrf.mxu1  ;;  %1766 = verf.f32 %v729_v18  ;;  %v730_v28 = vmul.f32 0.70710677, %v2297_v22  ;;  %v711_v20 = vmul.f32 0.5, %v2288_v0  ;;  %v714_v0 = vmul.f32 0.5, %v2297_v22  ;;  %v1308_v22 = vld [vmem:[%s2356_s0] sm:$0xff] }
 0x191   :  { %1768 = verf.f32 %v728_v25  ;;  %v731_v29 = vmul.f32 0.70710677, %v2299_v23  ;;  %v733_v6 = vmul.f32 0.70710677, %v2301_v24  ;;  %v2307_v30 = vadd.f32 %v647_v26, %v244_v41 }
 0x192   :  { %1770 = verf.f32 %v730_v28  ;;  %v2309_v31 = vadd.f32 %v700_v27, %v252_v42  ;;  %v712_v27 = vmul.f32 0.5, %v2295_v19 }
 0x193   :  { %1772 = verf.f32 %v731_v29  ;;  %v732_v33 = vmul.f32 0.70710677, %v2307_v30  ;;  %v715_v29 = vmul.f32 0.5, %v2299_v23 }
 0x194   :  { %v1749_v32 = vpop.eup %1748  ;;  %1774 = verf.f32 %v733_v6  ;;  %v734_v5 = vmul.f32 0.70710677, %v2309_v31 }
 0x195   :  { %v1751_v34 = vpop.eup %1750  ;;  %1776 = verf.f32 %v732_v33  ;;  %v751_v3 = vadd.f32 1.0, %v1749_v32  ;;  %v717_v33 = vmul.f32 0.5, %v2301_v24 }
 0x196   :  { %v1753_v9 = vpop.eup %1752  ;;  %1778 = verf.f32 %v734_v5  ;;  %v753_v45 = vadd.f32 1.0, %v1751_v34  ;;  %v716_v34 = vmul.f32 0.5, %v2307_v30 }
 0x197   :  { %v1755_v4 = vpop.eup %1754  ;;  %v752_v36 = vadd.f32 1.0, %v1753_v9  ;;  %v767_v62 = vmul.f32 %v751_v3, %v703_v8 }
 0x198   :  { %v1757_v10 = vpop.eup %1756  ;;  %v754_v39 = vadd.f32 1.0, %v1755_v4  ;;  %v769_v60 = vmul.f32 %v753_v45, %v705_v56  ;;  %v718_v4 = vmul.f32 0.5, %v2309_v31  ;;  %v1312_v31 = vunpack.c.l.bf16 %v1308_v22 }
 0x199   :  { %v1759_v11 = vpop.eup %1758  ;;  %v755_v37 = vadd.f32 1.0, %v1757_v10  ;;  %v768_v57 = vmul.f32 %v752_v36, %v704_v35 }
 0x19a   :  { %v1761_v38 = vpop.eup %1760  ;;  %v757_v41 = vadd.f32 1.0, %v1759_v11  ;;  %v770_v63 = vmul.f32 %v754_v39, %v706_v51  ;;  %v713_v11 = vmul.f32 0.5, %v2290_v1 }
 0x19b   :  { %v1763_v42 = vpop.eup %1762  ;;  %v756_v48 = vadd.f32 1.0, %v1761_v38  ;;  %v771_v54 = vmul.f32 %v755_v37, %v707_v40  ;;  %v1336_v40 = vld [vmem:[%s2361_s5] sm:$0x3] }
 0x19c   :  { %v1765_v50 = vpop.eup %1764  ;;  %v758_v49 = vadd.f32 1.0, %v1763_v42  ;;  %v773_v58 = vmul.f32 %v757_v41, %v709_v46  ;;  %v1309_v42 = vld [vmem:[%s2356_s0 + $0x8] sm:$0xff] }
 0x19d   :  { %v1767_v55 = vpop.eup %1766  ;;  %v772_v52 = vmul.f32 %v756_v48, %v708_v47  ;;  %v791_v16 = vpack.c.bf16 %v771_v54, %v767_v62  ;;  %v759_v26 = vadd.f32 1.0, %v1765_v50  ;;  %v1313_v47 = vunpack.c.h.bf16 %v1308_v22  ;;  %v1310_v62 = vld [vmem:[%s2356_s0 + $0x10] sm:$0xff] }
 0x19e   :  { %v1769_v59 = vpop.eup %1768  ;;  %v774_v2 = vmul.f32 %v758_v49, %v710_v43  ;;  %v793_v18 = vpack.c.bf16 %v773_v58, %v769_v60  ;;  %v761_v32 = vadd.f32 1.0, %v1767_v55  ;;  %v1341_v48 = vrot.slane %v1336_v40, %v2066_v14 }
 0x19f   :  { %v1771_v53 = vpop.eup %1770  ;;  %v792_v13 = vpack.c.bf16 %v772_v52, %v768_v57  ;;  %v760_v44 = vadd.f32 1.0, %v1769_v59  ;;  %v775_v23 = vmul.f32 %v759_v26, %v711_v20  ;;  %v1345_v43 = vrot.slane %v1336_v40, %v2060_v12 }
 0x1a0   :  { %v1773_v15 = vpop.eup %1772  ;;  %v794_v7 = vpack.c.bf16 %v774_v2, %v770_v63  ;;  %v762_v28 = vadd.f32 1.0, %v1771_v53  ;;  %v777_v38 = vmul.f32 %v761_v32, %v713_v11  ;;  %v1314_v55 = vunpack.c.l.bf16 %v1309_v42 }
 0x1a1   :  { %v1775_v17 = vpop.eup %1774  ;;  %v763_v61 = vadd.f32 1.0, %v1773_v15  ;;  %1215 = vmatprep.mubr.bf16.mxu0 %v792_v13  ;;  %v776_v19 = vmul.f32 %v760_v44, %v712_v27  ;;  %v1315_v59 = vunpack.c.h.bf16 %v1309_v42  ;;  %v1316_v15 = vunpack.c.l.bf16 %v1310_v62 }
 0x1a2   :  { %v765_v21 = vadd.f32 1.0, %v1775_v17  ;;  %1268 = vmatprep.mubr.bf16.mxu1 %v794_v7  ;;  %1216 = vmatmul.mubr.bf16.vlgmr.msra.gmra.mxu0 %v791_v16  ;;  %v1777_v25 = vpop.eup %1776  ;;  %v778_v36 = vmul.f32 %v762_v28, %v714_v0  ;;  %v1311_v17 = vld [vmem:[%s2356_s0 + $0x18] sm:$0xff]  ;;  %v1317_v20 = vunpack.c.h.bf16 %v1310_v62 }
 0x1a3   :  { %1269 = vmatmul.mubr.bf16.vlgmr.msra.gmra.mxu1 %v793_v18  ;;  %v1779_v6 = vpop.eup %1778  ;;  %v764_v5 = vadd.f32 1.0, %v1777_v25  ;;  %v779_v9 = vmul.f32 %v763_v61, %v715_v29  ;;  %v1318_v29 = vunpack.c.l.bf16 %v1311_v17  ;;  %v1319_v0 = vunpack.c.h.bf16 %v1311_v17 }
 0x1a4   :  { %v766_v10 = vadd.f32 1.0, %v1779_v6  ;;  %v781_v8 = vmul.f32 %v765_v21, %v717_v33 }
 0x1a5   :  { %v780_v35 = vmul.f32 %v764_v5, %v716_v34  ;;  %v795_v39 = vpack.c.bf16 %v779_v9, %v775_v23 }
 0x1a6   :  { %v782_v37 = vmul.f32 %v766_v10, %v718_v4  ;;  %v797_v30 = vpack.c.bf16 %v781_v8, %v777_v38 }
 0x1a7   :  { %v796_v3 = vpack.c.bf16 %v780_v35, %v776_v19 }
 0x1a8   :  { %v798_v24 = vpack.c.bf16 %v782_v37, %v778_v36 }
 0x1a9   :  { %1225 = vmatprep.mubr.bf16.mxu0 %v796_v3 }
 0x1aa   :  { %1278 = vmatprep.mubr.bf16.mxu1 %v798_v24  ;;  %1226 = vmatmul.mubr.bf16.gmra.mxu0 %v795_v39 }
 0x1ab   :  { %1279 = vmatmul.mubr.bf16.gmra.mxu1 %v797_v30 }
 0x262   :  { %v1217_v1 = vpop.f32.mrf.mxu0 }
 0x263   :  { %v1270_v41 = vpop.f32.mrf.mxu1 }
 0x264   :  { %v1271_v45 = vadd.f32 %v1270_v41, %v1217_v1  ;;  %v1219_v46 = vpop.f32.mrf.mxu0 }
 0x265   :  { %v1272_v50 = vpop.f32.mrf.mxu1 }
 0x266   :  { %v1328_v51 = vadd.f32 %v1312_v31, %v1271_v45  ;;  %v1273_v54 = vadd.f32 %v1272_v50, %v1219_v46  ;;  %v1221_v49 = vpop.f32.mrf.mxu0 }
 0x267   :  { %v1274_v56 = vpop.f32.mrf.mxu1 }
 0x268   :  { %v1329_v57 = vadd.f32 %v1313_v47, %v1273_v54  ;;  %v1275_v58 = vadd.f32 %v1274_v56, %v1221_v49  ;;  %v1223_v52 = vpop.f32.mrf.mxu0  ;;  %v1348_v2 = vadd.f32 %v1341_v48, %v1328_v51 }
 0x269   :  { %v1276_v63 = vpop.f32.mrf.mxu1 }
 0x26a   :  { %v1349_v53 = vadd.f32 %v1345_v43, %v1329_v57  ;;  %v1330_v14 = vadd.f32 %v1314_v55, %v1275_v58  ;;  %v1277_v60 = vadd.f32 %v1276_v63, %v1223_v52  ;;  %v1227_v13 = vpop.f32.mrf.mxu0 }
 0x26b   :  { %v1280_v7 = vpop.f32.mrf.mxu1 }
 0x26c   :  { %v1532_v16 = vpack.c.bf16 %v1349_v53, %v1348_v2  ;;  %v1331_v12 = vadd.f32 %v1315_v59, %v1277_v60  ;;  %v1281_v18 = vadd.f32 %v1280_v7, %v1227_v13  ;;  %v1229_v61 = vpop.f32.mrf.mxu0  ;;  %v1350_v44 = vadd.f32 %v1341_v48, %v1330_v14 }
 0x26d   :  { %v1282_v25 = vpop.f32.mrf.mxu1 }
 0x26e   :  { %1380 = vst [vmem:[%s2362_s6] sm:$0xff] %v1532_v16  ;;  %v1351_v21 = vadd.f32 %v1345_v43, %v1331_v12  ;;  %v1332_v26 = vadd.f32 %v1316_v15, %v1281_v18  ;;  %v1283_v27 = vadd.f32 %v1282_v25, %v1229_v61  ;;  %v1231_v28 = vpop.f32.mrf.mxu0 }
 0x26f   :  { %v1284_v32 = vpop.f32.mrf.mxu1 }
 0x270   :  { %v1533_v6 = vpack.c.bf16 %v1351_v21, %v1350_v44  ;;  %v1333_v33 = vadd.f32 %v1317_v20, %v1283_v27  ;;  %v1285_v34 = vadd.f32 %v1284_v32, %v1231_v28  ;;  %v1233_v5 = vpop.f32.mrf.mxu0  ;;  %v1352_v4 = vadd.f32 %v1341_v48, %v1332_v26 }
 0x271   :  { %v1286_v9 = vpop.f32.mrf.mxu1 }
 0x272   :  { %1381 = vst [vmem:[%s2362_s6 + $0x8] sm:$0xff] %v1533_v6  ;;  %v1353_v10 = vadd.f32 %v1345_v43, %v1333_v33  ;;  %v1334_v11 = vadd.f32 %v1318_v29, %v1285_v34  ;;  %v1287_v19 = vadd.f32 %v1286_v9, %v1233_v5 }
 0x274   :  { %v1534_v8 = vpack.c.bf16 %v1353_v10, %v1352_v4  ;;  %v1335_v35 = vadd.f32 %v1319_v0, %v1287_v19  ;;  %v1354_v23 = vadd.f32 %v1341_v48, %v1334_v11 }
 0x276   :  { %1382 = vst [vmem:[%s2362_s6 + $0x10] sm:$0xff] %v1534_v8  ;;  %v1355_v36 = vadd.f32 %v1345_v43, %v1335_v35 }
 0x278   :  { %v1535_v37 = vpack.c.bf16 %v1355_v36, %v1354_v23 }
 0x27a   :  { %1383 = vst [vmem:[%s2362_s6 + $0x18] sm:$0xff] %v1535_v37 }

</bundles_post_ra>
